<compile_context>
chip_gen: v7x
topology: tpu7x:2x2x1
jax: 0.10.0
libtpu: 0.0.40
codegen_flags: <defaults>
</compile_context>

<pallas_src>
import functools

import jax
import jax.numpy as jnp
from jax import lax
from jax.experimental import pallas as pl
from jax.experimental.pallas import tpu as pltpu


def _bigru_stack_kernel(x_ref, len_ref, wi_ref, bi_ref, wh_ref, bhn_ref,
                        out_ref, act_scr, gi_scr, h_scr,
                        *, seq_len, batch_tile, hidden, n_layers):
    """All bidirectional GRU layers for one batch tile, fused in one kernel.

    x_ref    : (1, T*Bt, D)   bf16 embedded inputs, time-major rows (row = t*Bt + b)
    len_ref  : (Bt, 1)        int32 per-sequence lengths of this batch tile
    wi_ref   : (L, D, 6H)     bf16 input weights^T, cols = [fwd r|z|n || bwd r|z|n]
    bi_ref   : (L, 1, 6H)     f32  b_ih with b_hr / b_hz already folded in
    wh_ref   : (L, H, 6H)     bf16 recurrent weights^T, same column layout
    bhn_ref  : (L, 1, 2H)     f32  n-gate hidden bias [fwd b_hn || bwd b_hn]
    out_ref  : (1, T*Bt, 2H)  f32  last-layer outputs (fwd half || bwd half)
    act_scr  : (T*Bt, 2H)     f32  per-layer outputs / next-layer inputs (VMEM only)
    gi_scr   : (T*Bt, 6H)     f32  hoisted input projections for the current layer
    h_scr    : (2*Bt, H)      f32  stacked hidden state (rows 0..Bt-1 fwd, Bt..2Bt-1 bwd)
    """
    T, Bt, H, L = seq_len, batch_tile, hidden, n_layers
    G = 3 * H

    # Hoisted once per invocation (JAX does not CSE broadcast_in_dim): sequence
    # lengths broadcast to lane width for the per-step validity masks.
    len_b = jnp.broadcast_to(len_ref[...], (Bt, H))           # int32 (Bt, H)

    def cell(gi, gh, bhn, h_prev):
        # PyTorch GRU gate order (r, z, n). b_hr/b_hz already live in gi; only
        # b_hn (inside r*(...)) is added here, and only on the used n-slice.
        r = jax.nn.sigmoid(gi[:, 0:H] + gh[:, 0:H])
        z = jax.nn.sigmoid(gi[:, H:2 * H] + gh[:, H:2 * H])
        n = jnp.tanh(gi[:, 2 * H:G] + r * (gh[:, 2 * H:G] + bhn))
        return n + z * (h_prev - n)           # == (1 - z) * n + z * h_prev

    for l in range(L):
        # ---- (1) Hoisted input projection: one bf16 MXU matmul covering every
        # timestep and BOTH directions; only the recurrent matmul stays serial.
        if l == 0:
            src2d = x_ref[0]                                  # (T*Bt, D) bf16
        else:
            src2d = act_scr[...].astype(jnp.bfloat16)         # (T*Bt, 2H) bf16
        gi_scr[...] = (jnp.dot(src2d, wi_ref[l],
                               preferred_element_type=jnp.float32)
                       + bi_ref[l])                           # (T*Bt, 6H) f32

        # Loop-invariant per-layer hoists (weights, n-gate hidden biases).
        wh_l = wh_ref[l]                                      # (H, 6H) bf16
        bhn_l = bhn_ref[l]                                    # (1, 2H) f32
        bhn_f = jnp.broadcast_to(bhn_l[:, 0:H], (Bt, H))
        bhn_b = jnp.broadcast_to(bhn_l[:, H:2 * H], (Bt, H))

        h_scr[...] = jnp.zeros_like(h_scr)

        def step(i, carry, wh_l=wh_l, bhn_f=bhn_f, bhn_b=bhn_b):
            tf = i                        # forward time index
            tb = T - 1 - i                # backward time index
            row_f = pl.multiple_of(tf * Bt, Bt)
            row_b = pl.multiple_of(tb * Bt, Bt)

            # ---- (2) Single stacked recurrent matmul: fwd rows use columns
            # [0:3H], bwd rows use [3H:6H].  Kept as one launch while H is small
            # (latency-bound); see module-level TODO for the large-H split.
            h = h_scr[...]                                    # (2Bt, H) f32
            gh = jnp.dot(h.astype(jnp.bfloat16), wh_l,
                         preferred_element_type=jnp.float32)  # (2Bt, 6H) f32

            # Per-direction gate math on contiguous slices -- no concatenates
            # on the serial critical path.
            gi_f = gi_scr[pl.ds(row_f, Bt), 0:G]              # (Bt, 3H)
            gi_b = gi_scr[pl.ds(row_b, Bt), G:2 * G]          # (Bt, 3H)
            h_f, h_b = h[0:Bt], h[Bt:2 * Bt]
            hn_f = cell(gi_f, gh[0:Bt, 0:G], bhn_f, h_f)
            hn_b = cell(gi_b, gh[Bt:2 * Bt, G:2 * G], bhn_b, h_b)

            # Packed-sequence semantics, built from the lengths: freeze h past
            # each sequence length, zero padded outputs (pad_packed_sequence).
            m_f = len_b > tf
            m_b = len_b > tb
            h_scr[0:Bt] = jnp.where(m_f, hn_f, h_f)
            h_scr[Bt:2 * Bt] = jnp.where(m_b, hn_b, h_b)
            act_scr[pl.ds(row_f, Bt), 0:H] = jnp.where(m_f, hn_f, 0.0)
            act_scr[pl.ds(row_b, Bt), H:2 * H] = jnp.where(m_b, hn_b, 0.0)
            return carry

        # Partial unroll: LLO scheduling visibility without exploding code size
        # / vreg live ranges when T is large (full unroll only for tiny T).
        lax.fori_loop(0, T, step, 0, unroll=(T if T <= 8 else 8))

    # ---- (3) Single lane-dense bulk writeback of the last layer's outputs.
    out_ref[0] = act_scr[...]


def _vmem_bytes_estimate(T, Bt, D, H, L):
    f32, bf16 = 4, 2
    blocks = 2 * (T * Bt * D * bf16           # x block (double-buffered)
                  + Bt * 4                    # length column
                  + T * Bt * 2 * H * f32)     # output block
    weights = L * (D * 6 * H * bf16 + 6 * H * f32 + H * 6 * H * bf16 + 2 * H * f32)
    scratch = T * Bt * 6 * H * f32 + T * Bt * 2 * H * f32 + 2 * Bt * H * f32
    return blocks + weights + scratch


def birnn_forward(src, src_len, src_mask, params, *, batch_tile=8):
    """src: (T, B) int32 token ids, src_len: (B,) int32. Returns (B, T, hid_dim) f32.

    src_mask is accepted to mirror the PyTorch signature but (as in the
    reference forward) is unused.
    """
    del src_mask
    T, B = src.shape
    emb = params["embedding"]
    D = emb.shape[1]                 # hid_dim
    H = D // 2
    L = params["wi"].shape[0]

    # Embedding lookup + dropout (identity in eval mode) -- XLA glue.
    x = emb[src].astype(jnp.bfloat16)                          # (T, B, D) bf16

    # Pad batch to a sublane-aligned tile; padded rows get length 0 so the
    # kernel keeps them frozen at zero and they are sliced away below.
    Bt = max(8, ((batch_tile + 7) // 8) * 8)
    B_pad = ((B + Bt - 1) // Bt) * Bt
    lens = src_len.astype(jnp.int32)
    if B_pad != B:
        x = jnp.pad(x, ((0, 0), (0, B_pad - B), (0, 0)))
        lens = jnp.pad(lens, (0, B_pad - B))
    nbt = B_pad // Bt

    # Layout plumbing (cheap XLA relayouts): batch-tiled, time-major-per-tile
    # slabs so every in-kernel access is a contiguous 2-D (rows, lanes) slice.
    x_tiles = x.reshape(T, nbt, Bt, D).transpose(1, 0, 2, 3).reshape(nbt, T * Bt, D)
    lens_col = lens.reshape(B_pad, 1)

    # Parameter prep: bf16 matmul weights; fold b_hr/b_hz of b_hh into b_ih
    # (only the n-gate hidden bias must stay separate -- it sits inside r*(...)).
    wi = params["wi"].astype(jnp.bfloat16)
    wh = params["wh"].astype(jnp.bfloat16)
    bi = params["bi"].astype(jnp.float32)
    bh = params["bh"].astype(jnp.float32)
    bh_rz = bh.at[:, :, 2 * H:3 * H].set(0.0).at[:, :, 5 * H:6 * H].set(0.0)
    bi_fused = bi + bh_rz                                                   # (L, 1, 6H)
    bhn = jnp.concatenate([bh[:, :, 2 * H:3 * H], bh[:, :, 5 * H:6 * H]], axis=2)

    kernel = functools.partial(_bigru_stack_kernel, seq_len=T, batch_tile=Bt,
                               hidden=H, n_layers=L)
    est = _vmem_bytes_estimate(T, Bt, D, H, L)
    vmem_limit = int(min(max(2 * est, 32 << 20), 48 << 20))

    out = pl.pallas_call(
        kernel,
        out_shape=jax.ShapeDtypeStruct((nbt, T * Bt, 2 * H), jnp.float32),
        grid_spec=pltpu.PrefetchScalarGridSpec(
            num_scalar_prefetch=0,
            grid=(nbt,),                                         # batch-tile grid
            in_specs=[
                pl.BlockSpec((1, T * Bt, D), lambda b: (b, 0, 0)),   # x tile
                pl.BlockSpec((Bt, 1), lambda b: (b, 0)),             # lengths
                # Weights: constant index_map -> loaded once, stay VMEM-resident.
                pl.BlockSpec((L, D, 6 * H), lambda b: (0, 0, 0)),
                pl.BlockSpec((L, 1, 6 * H), lambda b: (0, 0, 0)),
                pl.BlockSpec((L, H, 6 * H), lambda b: (0, 0, 0)),
                pl.BlockSpec((L, 1, 2 * H), lambda b: (0, 0, 0)),
            ],
            out_specs=pl.BlockSpec((1, T * Bt, 2 * H), lambda b: (b, 0, 0)),
            scratch_shapes=[
                pltpu.VMEM((T * Bt, 2 * H), jnp.float32),   # layer acts / out staging
                pltpu.VMEM((T * Bt, 6 * H), jnp.float32),   # hoisted input projections
                pltpu.VMEM((2 * Bt, H), jnp.float32),       # stacked fwd/bwd hidden
            ],
        ),
        compiler_params=pltpu.CompilerParams(
            dimension_semantics=("parallel",),    # batch tiles are independent
            vmem_limit_bytes=vmem_limit,
        ),
    )(x_tiles, lens_col, wi, bi_fused, wh, bhn)

    # (nbt, T*Bt, 2H) -> (B, T, hid_dim): matches outputs.permute(1, 0, 2).
    out = out.reshape(nbt, T, Bt, 2 * H).transpose(0, 2, 1, 3).reshape(B_pad, T, 2 * H)
    return out[:B]


def init_params(key, vocab_size, hid_dim, n_layers, pad_idx):
    assert hid_dim % 2 == 0, "hid_dim must be even: bidirectional output is 2*(hid_dim//2)"
    H = hid_dim // 2
    k_emb, k_rnn = jax.random.split(key)

    # xavier_uniform on the embedding weight (only submodule with `.weight`
    # touched by initialize_rnn); padding_idx row zeroed like nn.Embedding.
    limit = (6.0 / (vocab_size + hid_dim)) ** 0.5
    emb = jax.random.uniform(k_emb, (vocab_size, hid_dim), jnp.float32, -limit, limit)
    emb = emb.at[pad_idx].set(0.0)

    # PyTorch GRU default init U(-1/sqrt(H), 1/sqrt(H)).
    # Weight layout per layer: transposed, columns = [fwd (r|z|n) || bwd (r|z|n)].
    # Layer-0 input size = hid_dim; deeper-layer input = 2*H = hid_dim, so all
    # layers share the same stacked shape.
    s = 1.0 / (H ** 0.5)
    ks = jax.random.split(k_rnn, 4)
    wi = jax.random.uniform(ks[0], (n_layers, hid_dim, 6 * H), jnp.float32, -s, s)
    wh = jax.random.uniform(ks[1], (n_layers, H, 6 * H), jnp.float32, -s, s)
    bi = jax.random.uniform(ks[2], (n_layers, 1, 6 * H), jnp.float32, -s, s)
    bh = jax.random.uniform(ks[3], (n_layers, 1, 6 * H), jnp.float32, -s, s)
    return dict(embedding=emb, wi=wi, wh=wh, bi=bi, bh=bh)


if __name__ == "__main__":
    vocab_size, hid_dim, n_layers, pad_idx = 50, 32, 2, 0
    T, B = 8, 10

    key = jax.random.PRNGKey(0)
    pkey, skey = jax.random.split(key)
    params = init_params(pkey, vocab_size, hid_dim, n_layers, pad_idx)

    src_len = jnp.array([8, 5, 8, 3, 7, 2, 8, 1, 6, 4], dtype=jnp.int32)
    tokens = jax.random.randint(skey, (T, B), 1, vocab_size, dtype=jnp.int32)
    time_idx = jnp.arange(T, dtype=jnp.int32)[:, None]
    src = jnp.where(time_idx < src_len[None, :], tokens, pad_idx)   # (T, B)
    src_mask = (src != pad_idx)

    out = birnn_forward(src, src_len, src_mask, params)
    out = jax.block_until_ready(out)

    assert out.shape == (B, T, hid_dim), out.shape
    # Positions past each sequence length must be exactly zero (pad_packed_sequence).
    for b in range(B):
        lb = int(src_len[b])
        assert bool(jnp.all(out[b, lb:, :] == 0.0)), f"nonzero padding at batch {b}"
    # Valid positions should be (generically) non-zero.
    assert bool(jnp.all(jnp.any(out[:, 0, :] != 0.0, axis=-1)))
    print("KERNEL_OK")
</pallas_src>

<mosaic_0001>
module attributes {stable_mosaic.version = 11 : i64} {
  func.func @_bigru_stack_kernel(%arg0: i32, %arg1: memref<1x64x32xbf16, #tpu.memory_space<vmem>>, %arg2: memref<8x1xi32, #tpu.memory_space<vmem>>, %arg3: memref<2x32x96xbf16, #tpu.memory_space<vmem>>, %arg4: memref<2x1x96xf32, #tpu.memory_space<vmem>>, %arg5: memref<2x16x96xbf16, #tpu.memory_space<vmem>>, %arg6: memref<2x1x32xf32, #tpu.memory_space<vmem>>, %arg7: memref<1x64x32xf32, #tpu.memory_space<vmem>>, %arg8: memref<64x32xf32, #tpu.memory_space<vmem>>, %arg9: memref<64x96xf32, #tpu.memory_space<vmem>>, %arg10: memref<16x16xf32, #tpu.memory_space<vmem>>) attributes {dimension_semantics = [#tpu.dimension_semantics<parallel>], iteration_bounds = array<i64: 2>, scalar_prefetch = 0 : i64, scratch_operands = 3 : i64, tpu.core_type = #tpu.core_type<tc>, window_params = [{transform_indices = @transform_0, window_bounds = array<i64: 1, 64, 32>}, {transform_indices = @transform_1, window_bounds = array<i64: 8, 1>}, {pipeline_mode = #tpu.pipeline_mode<synchronous>, transform_indices = @transform_2, window_bounds = array<i64: 2, 32, 96>}, {pipeline_mode = #tpu.pipeline_mode<synchronous>, transform_indices = @transform_3, window_bounds = array<i64: 2, 1, 96>}, {pipeline_mode = #tpu.pipeline_mode<synchronous>, transform_indices = @transform_4, window_bounds = array<i64: 2, 16, 96>}, {pipeline_mode = #tpu.pipeline_mode<synchronous>, transform_indices = @transform_5, window_bounds = array<i64: 2, 1, 32>}, {transform_indices = @transform_6, window_bounds = array<i64: 1, 64, 32>}]} {
    %c0 = arith.constant 0 : index
    %c0_0 = arith.constant 0 : index
    %0 = vector.load %arg2[%c0, %c0_0] : memref<8x1xi32, #tpu.memory_space<vmem>>, vector<8x1xi32>
    %1 = vector.shape_cast %0 : vector<8x1xi32> to vector<8x1xi32>
    %2 = vector.broadcast %1 : vector<8x1xi32> to vector<8x16xi32>
    %c0_1 = arith.constant 0 : index
    %c0_2 = arith.constant 0 : index
    %c0_3 = arith.constant 0 : index
    %3 = vector.load %arg1[%c0_1, %c0_2, %c0_3] : memref<1x64x32xbf16, #tpu.memory_space<vmem>>, vector<1x64x32xbf16>
    %4 = vector.shape_cast %3 : vector<1x64x32xbf16> to vector<64x32xbf16>
    %c0_4 = arith.constant 0 : index
    %c0_5 = arith.constant 0 : index
    %c0_6 = arith.constant 0 : index
    %5 = vector.load %arg3[%c0_4, %c0_5, %c0_6] : memref<2x32x96xbf16, #tpu.memory_space<vmem>>, vector<1x32x96xbf16>
    %6 = vector.shape_cast %5 : vector<1x32x96xbf16> to vector<32x96xbf16>
    %cst = arith.constant dense<0.000000e+00> : vector<64x96xf32>
    %7 = tpu.matmul %4, %6, %cst {dimension_numbers = #tpu.dot_dimension_numbers<[1], [0], [0], [1], [0, 0, 1, 1], [], []>} : vector<64x32xbf16>, vector<32x96xbf16>, vector<64x96xf32> -> vector<64x96xf32>
    %c0_7 = arith.constant 0 : index
    %c0_8 = arith.constant 0 : index
    %c0_9 = arith.constant 0 : index
    %8 = vector.load %arg4[%c0_7, %c0_8, %c0_9] : memref<2x1x96xf32, #tpu.memory_space<vmem>>, vector<1x1x96xf32>
    %9 = vector.shape_cast %8 : vector<1x1x96xf32> to vector<1x96xf32>
    %10 = vector.broadcast %9 : vector<1x96xf32> to vector<64x96xf32>
    %11 = arith.addf %7, %10 : vector<64x96xf32>
    %c0_10 = arith.constant 0 : index
    %c0_11 = arith.constant 0 : index
    %12 = vector.load %arg9[%c0_10, %c0_11] : memref<64x96xf32, #tpu.memory_space<vmem>>, vector<64x96xf32>
    tpu.vector_store %arg9[%c0_10, %c0_11], %11 {strides = array<i32>} : memref<64x96xf32, #tpu.memory_space<vmem>>, vector<64x96xf32>,
    %c0_12 = arith.constant 0 : index
    %c0_13 = arith.constant 0 : index
    %c0_14 = arith.constant 0 : index
    %13 = vector.load %arg5[%c0_12, %c0_13, %c0_14] : memref<2x16x96xbf16, #tpu.memory_space<vmem>>, vector<1x16x96xbf16>
    %14 = vector.shape_cast %13 : vector<1x16x96xbf16> to vector<16x96xbf16>
    %c0_15 = arith.constant 0 : index
    %c0_16 = arith.constant 0 : index
    %c0_17 = arith.constant 0 : index
    %15 = vector.load %arg6[%c0_15, %c0_16, %c0_17] : memref<2x1x32xf32, #tpu.memory_space<vmem>>, vector<1x1x32xf32>
    %16 = vector.shape_cast %15 : vector<1x1x32xf32> to vector<1x32xf32>
    %17 = vector.extract_strided_slice %16 {offsets = [0, 0], sizes = [1, 16], strides = [1, 1]} : vector<1x32xf32> to vector<1x16xf32>
    %18 = vector.shape_cast %17 : vector<1x16xf32> to vector<1x16xf32>
    %19 = vector.broadcast %18 : vector<1x16xf32> to vector<8x16xf32>
    %20 = vector.extract_strided_slice %16 {offsets = [0, 16], sizes = [1, 16], strides = [1, 1]} : vector<1x32xf32> to vector<1x16xf32>
    %21 = vector.shape_cast %20 : vector<1x16xf32> to vector<1x16xf32>
    %22 = vector.broadcast %21 : vector<1x16xf32> to vector<8x16xf32>
    %cst_18 = arith.constant 0.000000e+00 : f32
    %23 = vector.broadcast %cst_18 : f32 to vector<16x16xf32>
    %c0_19 = arith.constant 0 : index
    %c0_20 = arith.constant 0 : index
    %24 = vector.load %arg10[%c0_19, %c0_20] : memref<16x16xf32, #tpu.memory_space<vmem>>, vector<16x16xf32>
    tpu.vector_store %arg10[%c0_19, %c0_20], %23 {strides = array<i32>} : memref<16x16xf32, #tpu.memory_space<vmem>>, vector<16x16xf32>,
    %c0_i32 = arith.constant 0 : i32
    %c7_i32 = arith.constant 7 : i32
    %25 = arith.subi %c7_i32, %c0_i32 : i32
    %c8_i32 = arith.constant 8 : i32
    %26 = arith.muli %c0_i32, %c8_i32 : i32
    %27 = tpu.assume_multiple %26, 8 : i32
    %c8_i32_21 = arith.constant 8 : i32
    %28 = arith.muli %25, %c8_i32_21 : i32
    %29 = tpu.assume_multiple %28, 8 : i32
    %c0_22 = arith.constant 0 : index
    %c0_23 = arith.constant 0 : index
    %30 = vector.load %arg10[%c0_22, %c0_23] : memref<16x16xf32, #tpu.memory_space<vmem>>, vector<16x16xf32>
    %31 = arith.truncf %30 : vector<16x16xf32> to vector<16x16xbf16>
    %cst_24 = arith.constant dense<0.000000e+00> : vector<16x96xf32>
    %32 = tpu.matmul %31, %14, %cst_24 {dimension_numbers = #tpu.dot_dimension_numbers<[1], [0], [0], [1], [0, 0, 1, 1], [], []>} : vector<16x16xbf16>, vector<16x96xbf16>, vector<16x96xf32> -> vector<16x96xf32>
    %33 = arith.index_cast %27 : i32 to index
    %c0_25 = arith.constant 0 : index
    %34 = vector.load %arg9[%33, %c0_25] : memref<64x96xf32, #tpu.memory_space<vmem>>, vector<8x48xf32>
    %35 = arith.index_cast %29 : i32 to index
    %c48 = arith.constant 48 : index
    %36 = vector.load %arg9[%35, %c48] : memref<64x96xf32, #tpu.memory_space<vmem>>, vector<8x48xf32>
    %37 = vector.extract_strided_slice %30 {offsets = [0, 0], sizes = [8, 16], strides = [1, 1]} : vector<16x16xf32> to vector<8x16xf32>
    %38 = vector.extract_strided_slice %30 {offsets = [8, 0], sizes = [8, 16], strides = [1, 1]} : vector<16x16xf32> to vector<8x16xf32>
    %39 = vector.extract_strided_slice %32 {offsets = [0, 0], sizes = [8, 48], strides = [1, 1]} : vector<16x96xf32> to vector<8x48xf32>
    %40 = vector.extract_strided_slice %34 {offsets = [0, 0], sizes = [8, 16], strides = [1, 1]} : vector<8x48xf32> to vector<8x16xf32>
    %41 = vector.extract_strided_slice %39 {offsets = [0, 0], sizes = [8, 16], strides = [1, 1]} : vector<8x48xf32> to vector<8x16xf32>
    %42 = arith.addf %40, %41 : vector<8x16xf32>
    %43 = arith.negf %42 : vector<8x16xf32>
    %44 = math.exp %43 : vector<8x16xf32>
    %cst_26 = arith.constant 1.000000e+00 : f32
    %45 = vector.broadcast %cst_26 : f32 to vector<8x16xf32>
    %46 = arith.addf %45, %44 : vector<8x16xf32>
    %47 = arith.divf %45, %46 : vector<8x16xf32>
    %48 = vector.extract_strided_slice %34 {offsets = [0, 16], sizes = [8, 16], strides = [1, 1]} : vector<8x48xf32> to vector<8x16xf32>
    %49 = vector.extract_strided_slice %39 {offsets = [0, 16], sizes = [8, 16], strides = [1, 1]} : vector<8x48xf32> to vector<8x16xf32>
    %50 = arith.addf %48, %49 : vector<8x16xf32>
    %51 = arith.negf %50 : vector<8x16xf32>
    %52 = math.exp %51 : vector<8x16xf32>
    %cst_27 = arith.constant 1.000000e+00 : f32
    %53 = vector.broadcast %cst_27 : f32 to vector<8x16xf32>
    %54 = arith.addf %53, %52 : vector<8x16xf32>
    %55 = arith.divf %53, %54 : vector<8x16xf32>
    %56 = vector.extract_strided_slice %34 {offsets = [0, 32], sizes = [8, 16], strides = [1, 1]} : vector<8x48xf32> to vector<8x16xf32>
    %57 = vector.extract_strided_slice %39 {offsets = [0, 32], sizes = [8, 16], strides = [1, 1]} : vector<8x48xf32> to vector<8x16xf32>
    %58 = arith.addf %57, %19 : vector<8x16xf32>
    %59 = arith.mulf %47, %58 : vector<8x16xf32>
    %60 = arith.addf %56, %59 : vector<8x16xf32>
    %61 = math.tanh %60 : vector<8x16xf32>
    %62 = arith.subf %37, %61 : vector<8x16xf32>
    %63 = arith.mulf %55, %62 : vector<8x16xf32>
    %64 = arith.addf %61, %63 : vector<8x16xf32>
    %65 = vector.extract_strided_slice %32 {offsets = [8, 48], sizes = [8, 48], strides = [1, 1]} : vector<16x96xf32> to vector<8x48xf32>
    %66 = vector.extract_strided_slice %36 {offsets = [0, 0], sizes = [8, 16], strides = [1, 1]} : vector<8x48xf32> to vector<8x16xf32>
    %67 = vector.extract_strided_slice %65 {offsets = [0, 0], sizes = [8, 16], strides = [1, 1]} : vector<8x48xf32> to vector<8x16xf32>
    %68 = arith.addf %66, %67 : vector<8x16xf32>
    %69 = arith.negf %68 : vector<8x16xf32>
    %70 = math.exp %69 : vector<8x16xf32>
    %cst_28 = arith.constant 1.000000e+00 : f32
    %71 = vector.broadcast %cst_28 : f32 to vector<8x16xf32>
    %72 = arith.addf %71, %70 : vector<8x16xf32>
    %73 = arith.divf %71, %72 : vector<8x16xf32>
    %74 = vector.extract_strided_slice %36 {offsets = [0, 16], sizes = [8, 16], strides = [1, 1]} : vector<8x48xf32> to vector<8x16xf32>
    %75 = vector.extract_strided_slice %65 {offsets = [0, 16], sizes = [8, 16], strides = [1, 1]} : vector<8x48xf32> to vector<8x16xf32>
    %76 = arith.addf %74, %75 : vector<8x16xf32>
    %77 = arith.negf %76 : vector<8x16xf32>
    %78 = math.exp %77 : vector<8x16xf32>
    %cst_29 = arith.constant 1.000000e+00 : f32
    %79 = vector.broadcast %cst_29 : f32 to vector<8x16xf32>
    %80 = arith.addf %79, %78 : vector<8x16xf32>
    %81 = arith.divf %79, %80 : vector<8x16xf32>
    %82 = vector.extract_strided_slice %36 {offsets = [0, 32], sizes = [8, 16], strides = [1, 1]} : vector<8x48xf32> to vector<8x16xf32>
    %83 = vector.extract_strided_slice %65 {offsets = [0, 32], sizes = [8, 16], strides = [1, 1]} : vector<8x48xf32> to vector<8x16xf32>
    %84 = arith.addf %83, %22 : vector<8x16xf32>
    %85 = arith.mulf %73, %84 : vector<8x16xf32>
    %86 = arith.addf %82, %85 : vector<8x16xf32>
    %87 = math.tanh %86 : vector<8x16xf32>
    %88 = arith.subf %38, %87 : vector<8x16xf32>
    %89 = arith.mulf %81, %88 : vector<8x16xf32>
    %90 = arith.addf %87, %89 : vector<8x16xf32>
    %91 = vector.broadcast %c0_i32 : i32 to vector<8x16xi32>
    %92 = arith.cmpi sgt, %2, %91 : vector<8x16xi32>
    %93 = vector.broadcast %25 : i32 to vector<8x16xi32>
    %94 = arith.cmpi sgt, %2, %93 : vector<8x16xi32>
    %95 = arith.select %92, %64, %37 : vector<8x16xi1>, vector<8x16xf32>
    %c0_30 = arith.constant 0 : index
    %c0_31 = arith.constant 0 : index
    %96 = vector.load %arg10[%c0_30, %c0_31] : memref<16x16xf32, #tpu.memory_space<vmem>>, vector<8x16xf32>
    tpu.vector_store %arg10[%c0_30, %c0_31], %95 {strides = array<i32>} : memref<16x16xf32, #tpu.memory_space<vmem>>, vector<8x16xf32>,
    %97 = arith.select %94, %90, %38 : vector<8x16xi1>, vector<8x16xf32>
    %c8 = arith.constant 8 : index
    %c0_32 = arith.constant 0 : index
    %98 = vector.load %arg10[%c8, %c0_32] : memref<16x16xf32, #tpu.memory_space<vmem>>, vector<8x16xf32>
    tpu.vector_store %arg10[%c8, %c0_32], %97 {strides = array<i32>} : memref<16x16xf32, #tpu.memory_space<vmem>>, vector<8x16xf32>,
    %cst_33 = arith.constant 0.000000e+00 : f32
    %99 = vector.broadcast %cst_33 : f32 to vector<8x16xf32>
    %100 = arith.select %92, %64, %99 : vector<8x16xi1>, vector<8x16xf32>
    %101 = arith.index_cast %27 : i32 to index
    %c0_34 = arith.constant 0 : index
    %102 = vector.load %arg8[%101, %c0_34] : memref<64x32xf32, #tpu.memory_space<vmem>>, vector<8x16xf32>
    tpu.vector_store %arg8[%101, %c0_34], %100 {strides = array<i32>} : memref<64x32xf32, #tpu.memory_space<vmem>>, vector<8x16xf32>,
    %cst_35 = arith.constant 0.000000e+00 : f32
    %103 = vector.broadcast %cst_35 : f32 to vector<8x16xf32>
    %104 = arith.select %94, %90, %103 : vector<8x16xi1>, vector<8x16xf32>
    %105 = arith.index_cast %29 : i32 to index
    %c16 = arith.constant 16 : index
    %106 = vector.load %arg8[%105, %c16] : memref<64x32xf32, #tpu.memory_space<vmem>>, vector<8x16xf32>
    tpu.vector_store %arg8[%105, %c16], %104 {strides = array<i32>} : memref<64x32xf32, #tpu.memory_space<vmem>>, vector<8x16xf32>,
    %c1_i32 = arith.constant 1 : i32
    %c7_i32_36 = arith.constant 7 : i32
    %107 = arith.subi %c7_i32_36, %c1_i32 : i32
    %c8_i32_37 = arith.constant 8 : i32
    %108 = arith.muli %c1_i32, %c8_i32_37 : i32
    %109 = tpu.assume_multiple %108, 8 : i32
    %c8_i32_38 = arith.constant 8 : i32
    %110 = arith.muli %107, %c8_i32_38 : i32
    %111 = tpu.assume_multiple %110, 8 : i32
    %c0_39 = arith.constant 0 : index
    %c0_40 = arith.constant 0 : index
    %112 = vector.load %arg10[%c0_39, %c0_40] : memref<16x16xf32, #tpu.memory_space<vmem>>, vector<16x16xf32>
    %113 = arith.truncf %112 : vector<16x16xf32> to vector<16x16xbf16>
    %cst_41 = arith.constant dense<0.000000e+00> : vector<16x96xf32>
    %114 = tpu.matmul %113, %14, %cst_41 {dimension_numbers = #tpu.dot_dimension_numbers<[1], [0], [0], [1], [0, 0, 1, 1], [], []>} : vector<16x16xbf16>, vector<16x96xbf16>, vector<16x96xf32> -> vector<16x96xf32>
    %115 = arith.index_cast %109 : i32 to index
    %c0_42 = arith.constant 0 : index
    %116 = vector.load %arg9[%115, %c0_42] : memref<64x96xf32, #tpu.memory_space<vmem>>, vector<8x48xf32>
    %117 = arith.index_cast %111 : i32 to index
    %c48_43 = arith.constant 48 : index
    %118 = vector.load %arg9[%117, %c48_43] : memref<64x96xf32, #tpu.memory_space<vmem>>, vector<8x48xf32>
    %119 = vector.extract_strided_slice %112 {offsets = [0, 0], sizes = [8, 16], strides = [1, 1]} : vector<16x16xf32> to vector<8x16xf32>
    %120 = vector.extract_strided_slice %112 {offsets = [8, 0], sizes = [8, 16], strides = [1, 1]} : vector<16x16xf32> to vector<8x16xf32>
    %121 = vector.extract_strided_slice %114 {offsets = [0, 0], sizes = [8, 48], strides = [1, 1]} : vector<16x96xf32> to vector<8x48xf32>
    %122 = vector.extract_strided_slice %116 {offsets = [0, 0], sizes = [8, 16], strides = [1, 1]} : vector<8x48xf32> to vector<8x16xf32>
    %123 = vector.extract_strided_slice %121 {offsets = [0, 0], sizes = [8, 16], strides = [1, 1]} : vector<8x48xf32> to vector<8x16xf32>
    %124 = arith.addf %122, %123 : vector<8x16xf32>
    %125 = arith.negf %124 : vector<8x16xf32>
    %126 = math.exp %125 : vector<8x16xf32>
    %cst_44 = arith.constant 1.000000e+00 : f32
    %127 = vector.broadcast %cst_44 : f32 to vector<8x16xf32>
    %128 = arith.addf %127, %126 : vector<8x16xf32>
    %129 = arith.divf %127, %128 : vector<8x16xf32>
    %130 = vector.extract_strided_slice %116 {offsets = [0, 16], sizes = [8, 16], strides = [1, 1]} : vector<8x48xf32> to vector<8x16xf32>
    %131 = vector.extract_strided_slice %121 {offsets = [0, 16], sizes = [8, 16], strides = [1, 1]} : vector<8x48xf32> to vector<8x16xf32>
    %132 = arith.addf %130, %131 : vector<8x16xf32>
    %133 = arith.negf %132 : vector<8x16xf32>
    %134 = math.exp %133 : vector<8x16xf32>
    %cst_45 = arith.constant 1.000000e+00 : f32
    %135 = vector.broadcast %cst_45 : f32 to vector<8x16xf32>
    %136 = arith.addf %135, %134 : vector<8x16xf32>
    %137 = arith.divf %135, %136 : vector<8x16xf32>
    %138 = vector.extract_strided_slice %116 {offsets = [0, 32], sizes = [8, 16], strides = [1, 1]} : vector<8x48xf32> to vector<8x16xf32>
    %139 = vector.extract_strided_slice %121 {offsets = [0, 32], sizes = [8, 16], strides = [1, 1]} : vector<8x48xf32> to vector<8x16xf32>
    %140 = arith.addf %139, %19 : vector<8x16xf32>
    %141 = arith.mulf %129, %140 : vector<8x16xf32>
    %142 = arith.addf %138, %141 : vector<8x16xf32>
    %143 = math.tanh %142 : vector<8x16xf32>
    %144 = arith.subf %119, %143 : vector<8x16xf32>
    %145 = arith.mulf %137, %144 : vector<8x16xf32>
    %146 = arith.addf %143, %145 : vector<8x16xf32>
    %147 = vector.extract_strided_slice %114 {offsets = [8, 48], sizes = [8, 48], strides = [1, 1]} : vector<16x96xf32> to vector<8x48xf32>
    %148 = vector.extract_strided_slice %118 {offsets = [0, 0], sizes = [8, 16], strides = [1, 1]} : vector<8x48xf32> to vector<8x16xf32>
    %149 = vector.extract_strided_slice %147 {offsets = [0, 0], sizes = [8, 16], strides = [1, 1]} : vector<8x48xf32> to vector<8x16xf32>
    %150 = arith.addf %148, %149 : vector<8x16xf32>
    %151 = arith.negf %150 : vector<8x16xf32>
    %152 = math.exp %151 : vector<8x16xf32>
    %cst_46 = arith.constant 1.000000e+00 : f32
    %153 = vector.broadcast %cst_46 : f32 to vector<8x16xf32>
    %154 = arith.addf %153, %152 : vector<8x16xf32>
    %155 = arith.divf %153, %154 : vector<8x16xf32>
    %156 = vector.extract_strided_slice %118 {offsets = [0, 16], sizes = [8, 16], strides = [1, 1]} : vector<8x48xf32> to vector<8x16xf32>
    %157 = vector.extract_strided_slice %147 {offsets = [0, 16], sizes = [8, 16], strides = [1, 1]} : vector<8x48xf32> to vector<8x16xf32>
    %158 = arith.addf %156, %157 : vector<8x16xf32>
    %159 = arith.negf %158 : vector<8x16xf32>
    %160 = math.exp %159 : vector<8x16xf32>
    %cst_47 = arith.constant 1.000000e+00 : f32
    %161 = vector.broadcast %cst_47 : f32 to vector<8x16xf32>
    %162 = arith.addf %161, %160 : vector<8x16xf32>
    %163 = arith.divf %161, %162 : vector<8x16xf32>
    %164 = vector.extract_strided_slice %118 {offsets = [0, 32], sizes = [8, 16], strides = [1, 1]} : vector<8x48xf32> to vector<8x16xf32>
    %165 = vector.extract_strided_slice %147 {offsets = [0, 32], sizes = [8, 16], strides = [1, 1]} : vector<8x48xf32> to vector<8x16xf32>
    %166 = arith.addf %165, %22 : vector<8x16xf32>
    %167 = arith.mulf %155, %166 : vector<8x16xf32>
    %168 = arith.addf %164, %167 : vector<8x16xf32>
    %169 = math.tanh %168 : vector<8x16xf32>
    %170 = arith.subf %120, %169 : vector<8x16xf32>
    %171 = arith.mulf %163, %170 : vector<8x16xf32>
    %172 = arith.addf %169, %171 : vector<8x16xf32>
    %173 = vector.broadcast %c1_i32 : i32 to vector<8x16xi32>
    %174 = arith.cmpi sgt, %2, %173 : vector<8x16xi32>
    %175 = vector.broadcast %107 : i32 to vector<8x16xi32>
    %176 = arith.cmpi sgt, %2, %175 : vector<8x16xi32>
    %177 = arith.select %174, %146, %119 : vector<8x16xi1>, vector<8x16xf32>
    %c0_48 = arith.constant 0 : index
    %c0_49 = arith.constant 0 : index
    %178 = vector.load %arg10[%c0_48, %c0_49] : memref<16x16xf32, #tpu.memory_space<vmem>>, vector<8x16xf32>
    tpu.vector_store %arg10[%c0_48, %c0_49], %177 {strides = array<i32>} : memref<16x16xf32, #tpu.memory_space<vmem>>, vector<8x16xf32>,
    %179 = arith.select %176, %172, %120 : vector<8x16xi1>, vector<8x16xf32>
    %c8_50 = arith.constant 8 : index
    %c0_51 = arith.constant 0 : index
    %180 = vector.load %arg10[%c8_50, %c0_51] : memref<16x16xf32, #tpu.memory_space<vmem>>, vector<8x16xf32>
    tpu.vector_store %arg10[%c8_50, %c0_51], %179 {strides = array<i32>} : memref<16x16xf32, #tpu.memory_space<vmem>>, vector<8x16xf32>,
    %cst_52 = arith.constant 0.000000e+00 : f32
    %181 = vector.broadcast %cst_52 : f32 to vector<8x16xf32>
    %182 = arith.select %174, %146, %181 : vector<8x16xi1>, vector<8x16xf32>
    %183 = arith.index_cast %109 : i32 to index
    %c0_53 = arith.constant 0 : index
    %184 = vector.load %arg8[%183, %c0_53] : memref<64x32xf32, #tpu.memory_space<vmem>>, vector<8x16xf32>
    tpu.vector_store %arg8[%183, %c0_53], %182 {strides = array<i32>} : memref<64x32xf32, #tpu.memory_space<vmem>>, vector<8x16xf32>,
    %cst_54 = arith.constant 0.000000e+00 : f32
    %185 = vector.broadcast %cst_54 : f32 to vector<8x16xf32>
    %186 = arith.select %176, %172, %185 : vector<8x16xi1>, vector<8x16xf32>
    %187 = arith.index_cast %111 : i32 to index
    %c16_55 = arith.constant 16 : index
    %188 = vector.load %arg8[%187, %c16_55] : memref<64x32xf32, #tpu.memory_space<vmem>>, vector<8x16xf32>
    tpu.vector_store %arg8[%187, %c16_55], %186 {strides = array<i32>} : memref<64x32xf32, #tpu.memory_space<vmem>>, vector<8x16xf32>,
    %c2_i32 = arith.constant 2 : i32
    %c7_i32_56 = arith.constant 7 : i32
    %189 = arith.subi %c7_i32_56, %c2_i32 : i32
    %c8_i32_57 = arith.constant 8 : i32
    %190 = arith.muli %c2_i32, %c8_i32_57 : i32
    %191 = tpu.assume_multiple %190, 8 : i32
    %c8_i32_58 = arith.constant 8 : i32
    %192 = arith.muli %189, %c8_i32_58 : i32
    %193 = tpu.assume_multiple %192, 8 : i32
    %c0_59 = arith.constant 0 : index
    %c0_60 = arith.constant 0 : index
    %194 = vector.load %arg10[%c0_59, %c0_60] : memref<16x16xf32, #tpu.memory_space<vmem>>, vector<16x16xf32>
    %195 = arith.truncf %194 : vector<16x16xf32> to vector<16x16xbf16>
    %cst_61 = arith.constant dense<0.000000e+00> : vector<16x96xf32>
    %196 = tpu.matmul %195, %14, %cst_61 {dimension_numbers = #tpu.dot_dimension_numbers<[1], [0], [0], [1], [0, 0, 1, 1], [], []>} : vector<16x16xbf16>, vector<16x96xbf16>, vector<16x96xf32> -> vector<16x96xf32>
    %197 = arith.index_cast %191 : i32 to index
    %c0_62 = arith.constant 0 : index
    %198 = vector.load %arg9[%197, %c0_62] : memref<64x96xf32, #tpu.memory_space<vmem>>, vector<8x48xf32>
    %199 = arith.index_cast %193 : i32 to index
    %c48_63 = arith.constant 48 : index
    %200 = vector.load %arg9[%199, %c48_63] : memref<64x96xf32, #tpu.memory_space<vmem>>, vector<8x48xf32>
    %201 = vector.extract_strided_slice %194 {offsets = [0, 0], sizes = [8, 16], strides = [1, 1]} : vector<16x16xf32> to vector<8x16xf32>
    %202 = vector.extract_strided_slice %194 {offsets = [8, 0], sizes = [8, 16], strides = [1, 1]} : vector<16x16xf32> to vector<8x16xf32>
    %203 = vector.extract_strided_slice %196 {offsets = [0, 0], sizes = [8, 48], strides = [1, 1]} : vector<16x96xf32> to vector<8x48xf32>
    %204 = vector.extract_strided_slice %198 {offsets = [0, 0], sizes = [8, 16], strides = [1, 1]} : vector<8x48xf32> to vector<8x16xf32>
    %205 = vector.extract_strided_slice %203 {offsets = [0, 0], sizes = [8, 16], strides = [1, 1]} : vector<8x48xf32> to vector<8x16xf32>
    %206 = arith.addf %204, %205 : vector<8x16xf32>
    %207 = arith.negf %206 : vector<8x16xf32>
    %208 = math.exp %207 : vector<8x16xf32>
    %cst_64 = arith.constant 1.000000e+00 : f32
    %209 = vector.broadcast %cst_64 : f32 to vector<8x16xf32>
    %210 = arith.addf %209, %208 : vector<8x16xf32>
    %211 = arith.divf %209, %210 : vector<8x16xf32>
    %212 = vector.extract_strided_slice %198 {offsets = [0, 16], sizes = [8, 16], strides = [1, 1]} : vector<8x48xf32> to vector<8x16xf32>
    %213 = vector.extract_strided_slice %203 {offsets = [0, 16], sizes = [8, 16], strides = [1, 1]} : vector<8x48xf32> to vector<8x16xf32>
    %214 = arith.addf %212, %213 : vector<8x16xf32>
    %215 = arith.negf %214 : vector<8x16xf32>
    %216 = math.exp %215 : vector<8x16xf32>
    %cst_65 = arith.constant 1.000000e+00 : f32
    %217 = vector.broadcast %cst_65 : f32 to vector<8x16xf32>
    %218 = arith.addf %217, %216 : vector<8x16xf32>
    %219 = arith.divf %217, %218 : vector<8x16xf32>
    %220 = vector.extract_strided_slice %198 {offsets = [0, 32], sizes = [8, 16], strides = [1, 1]} : vector<8x48xf32> to vector<8x16xf32>
    %221 = vector.extract_strided_slice %203 {offsets = [0, 32], sizes = [8, 16], strides = [1, 1]} : vector<8x48xf32> to vector<8x16xf32>
    %222 = arith.addf %221, %19 : vector<8x16xf32>
    %223 = arith.mulf %211, %222 : vector<8x16xf32>
    %224 = arith.addf %220, %223 : vector<8x16xf32>
    %225 = math.tanh %224 : vector<8x16xf32>
    %226 = arith.subf %201, %225 : vector<8x16xf32>
    %227 = arith.mulf %219, %226 : vector<8x16xf32>
    %228 = arith.addf %225, %227 : vector<8x16xf32>
    %229 = vector.extract_strided_slice %196 {offsets = [8, 48], sizes = [8, 48], strides = [1, 1]} : vector<16x96xf32> to vector<8x48xf32>
    %230 = vector.extract_strided_slice %200 {offsets = [0, 0], sizes = [8, 16], strides = [1, 1]} : vector<8x48xf32> to vector<8x16xf32>
    %231 = vector.extract_strided_slice %229 {offsets = [0, 0], sizes = [8, 16], strides = [1, 1]} : vector<8x48xf32> to vector<8x16xf32>
    %232 = arith.addf %230, %231 : vector<8x16xf32>
    %233 = arith.negf %232 : vector<8x16xf32>
    %234 = math.exp %233 : vector<8x16xf32>
    %cst_66 = arith.constant 1.000000e+00 : f32
    %235 = vector.broadcast %cst_66 : f32 to vector<8x16xf32>
    %236 = arith.addf %235, %234 : vector<8x16xf32>
    %237 = arith.divf %235, %236 : vector<8x16xf32>
    %238 = vector.extract_strided_slice %200 {offsets = [0, 16], sizes = [8, 16], strides = [1, 1]} : vector<8x48xf32> to vector<8x16xf32>
    %239 = vector.extract_strided_slice %229 {offsets = [0, 16], sizes = [8, 16], strides = [1, 1]} : vector<8x48xf32> to vector<8x16xf32>
    %240 = arith.addf %238, %239 : vector<8x16xf32>
    %241 = arith.negf %240 : vector<8x16xf32>
    %242 = math.exp %241 : vector<8x16xf32>
    %cst_67 = arith.constant 1.000000e+00 : f32
    %243 = vector.broadcast %cst_67 : f32 to vector<8x16xf32>
    %244 = arith.addf %243, %242 : vector<8x16xf32>
    %245 = arith.divf %243, %244 : vector<8x16xf32>
    %246 = vector.extract_strided_slice %200 {offsets = [0, 32], sizes = [8, 16], strides = [1, 1]} : vector<8x48xf32> to vector<8x16xf32>
    %247 = vector.extract_strided_slice %229 {offsets = [0, 32], sizes = [8, 16], strides = [1, 1]} : vector<8x48xf32> to vector<8x16xf32>
    %248 = arith.addf %247, %22 : vector<8x16xf32>
    %249 = arith.mulf %237, %248 : vector<8x16xf32>
    %250 = arith.addf %246, %249 : vector<8x16xf32>
    %251 = math.tanh %250 : vector<8x16xf32>
    %252 = arith.subf %202, %251 : vector<8x16xf32>
    %253 = arith.mulf %245, %252 : vector<8x16xf32>
    %254 = arith.addf %251, %253 : vector<8x16xf32>
    %255 = vector.broadcast %c2_i32 : i32 to vector<8x16xi32>
    %256 = arith.cmpi sgt, %2, %255 : vector<8x16xi32>
    %257 = vector.broadcast %189 : i32 to vector<8x16xi32>
    %258 = arith.cmpi sgt, %2, %257 : vector<8x16xi32>
    %259 = arith.select %256, %228, %201 : vector<8x16xi1>, vector<8x16xf32>
    %c0_68 = arith.constant 0 : index
    %c0_69 = arith.constant 0 : index
    %260 = vector.load %arg10[%c0_68, %c0_69] : memref<16x16xf32, #tpu.memory_space<vmem>>, vector<8x16xf32>
    tpu.vector_store %arg10[%c0_68, %c0_69], %259 {strides = array<i32>} : memref<16x16xf32, #tpu.memory_space<vmem>>, vector<8x16xf32>,
    %261 = arith.select %258, %254, %202 : vector<8x16xi1>, vector<8x16xf32>
    %c8_70 = arith.constant 8 : index
    %c0_71 = arith.constant 0 : index
    %262 = vector.load %arg10[%c8_70, %c0_71] : memref<16x16xf32, #tpu.memory_space<vmem>>, vector<8x16xf32>
    tpu.vector_store %arg10[%c8_70, %c0_71], %261 {strides = array<i32>} : memref<16x16xf32, #tpu.memory_space<vmem>>, vector<8x16xf32>,
    %cst_72 = arith.constant 0.000000e+00 : f32
    %263 = vector.broadcast %cst_72 : f32 to vector<8x16xf32>
    %264 = arith.select %256, %228, %263 : vector<8x16xi1>, vector<8x16xf32>
    %265 = arith.index_cast %191 : i32 to index
    %c0_73 = arith.constant 0 : index
    %266 = vector.load %arg8[%265, %c0_73] : memref<64x32xf32, #tpu.memory_space<vmem>>, vector<8x16xf32>
    tpu.vector_store %arg8[%265, %c0_73], %264 {strides = array<i32>} : memref<64x32xf32, #tpu.memory_space<vmem>>, vector<8x16xf32>,
    %cst_74 = arith.constant 0.000000e+00 : f32
    %267 = vector.broadcast %cst_74 : f32 to vector<8x16xf32>
    %268 = arith.select %258, %254, %267 : vector<8x16xi1>, vector<8x16xf32>
    %269 = arith.index_cast %193 : i32 to index
    %c16_75 = arith.constant 16 : index
    %270 = vector.load %arg8[%269, %c16_75] : memref<64x32xf32, #tpu.memory_space<vmem>>, vector<8x16xf32>
    tpu.vector_store %arg8[%269, %c16_75], %268 {strides = array<i32>} : memref<64x32xf32, #tpu.memory_space<vmem>>, vector<8x16xf32>,
    %c3_i32 = arith.constant 3 : i32
    %c7_i32_76 = arith.constant 7 : i32
    %271 = arith.subi %c7_i32_76, %c3_i32 : i32
    %c8_i32_77 = arith.constant 8 : i32
    %272 = arith.muli %c3_i32, %c8_i32_77 : i32
    %273 = tpu.assume_multiple %272, 8 : i32
    %c8_i32_78 = arith.constant 8 : i32
    %274 = arith.muli %271, %c8_i32_78 : i32
    %275 = tpu.assume_multiple %274, 8 : i32
    %c0_79 = arith.constant 0 : index
    %c0_80 = arith.constant 0 : index
    %276 = vector.load %arg10[%c0_79, %c0_80] : memref<16x16xf32, #tpu.memory_space<vmem>>, vector<16x16xf32>
    %277 = arith.truncf %276 : vector<16x16xf32> to vector<16x16xbf16>
    %cst_81 = arith.constant dense<0.000000e+00> : vector<16x96xf32>
    %278 = tpu.matmul %277, %14, %cst_81 {dimension_numbers = #tpu.dot_dimension_numbers<[1], [0], [0], [1], [0, 0, 1, 1], [], []>} : vector<16x16xbf16>, vector<16x96xbf16>, vector<16x96xf32> -> vector<16x96xf32>
    %279 = arith.index_cast %273 : i32 to index
    %c0_82 = arith.constant 0 : index
    %280 = vector.load %arg9[%279, %c0_82] : memref<64x96xf32, #tpu.memory_space<vmem>>, vector<8x48xf32>
    %281 = arith.index_cast %275 : i32 to index
    %c48_83 = arith.constant 48 : index
    %282 = vector.load %arg9[%281, %c48_83] : memref<64x96xf32, #tpu.memory_space<vmem>>, vector<8x48xf32>
    %283 = vector.extract_strided_slice %276 {offsets = [0, 0], sizes = [8, 16], strides = [1, 1]} : vector<16x16xf32> to vector<8x16xf32>
    %284 = vector.extract_strided_slice %276 {offsets = [8, 0], sizes = [8, 16], strides = [1, 1]} : vector<16x16xf32> to vector<8x16xf32>
    %285 = vector.extract_strided_slice %278 {offsets = [0, 0], sizes = [8, 48], strides = [1, 1]} : vector<16x96xf32> to vector<8x48xf32>
    %286 = vector.extract_strided_slice %280 {offsets = [0, 0], sizes = [8, 16], strides = [1, 1]} : vector<8x48xf32> to vector<8x16xf32>
    %287 = vector.extract_strided_slice %285 {offsets = [0, 0], sizes = [8, 16], strides = [1, 1]} : vector<8x48xf32> to vector<8x16xf32>
    %288 = arith.addf %286, %287 : vector<8x16xf32>
    %289 = arith.negf %288 : vector<8x16xf32>
    %290 = math.exp %289 : vector<8x16xf32>
    %cst_84 = arith.constant 1.000000e+00 : f32
    %291 = vector.broadcast %cst_84 : f32 to vector<8x16xf32>
    %292 = arith.addf %291, %290 : vector<8x16xf32>
    %293 = arith.divf %291, %292 : vector<8x16xf32>
    %294 = vector.extract_strided_slice %280 {offsets = [0, 16], sizes = [8, 16], strides = [1, 1]} : vector<8x48xf32> to vector<8x16xf32>
    %295 = vector.extract_strided_slice %285 {offsets = [0, 16], sizes = [8, 16], strides = [1, 1]} : vector<8x48xf32> to vector<8x16xf32>
    %296 = arith.addf %294, %295 : vector<8x16xf32>
    %297 = arith.negf %296 : vector<8x16xf32>
    %298 = math.exp %297 : vector<8x16xf32>
    %cst_85 = arith.constant 1.000000e+00 : f32
    %299 = vector.broadcast %cst_85 : f32 to vector<8x16xf32>
    %300 = arith.addf %299, %298 : vector<8x16xf32>
    %301 = arith.divf %299, %300 : vector<8x16xf32>
    %302 = vector.extract_strided_slice %280 {offsets = [0, 32], sizes = [8, 16], strides = [1, 1]} : vector<8x48xf32> to vector<8x16xf32>
    %303 = vector.extract_strided_slice %285 {offsets = [0, 32], sizes = [8, 16], strides = [1, 1]} : vector<8x48xf32> to vector<8x16xf32>
    %304 = arith.addf %303, %19 : vector<8x16xf32>
    %305 = arith.mulf %293, %304 : vector<8x16xf32>
    %306 = arith.addf %302, %305 : vector<8x16xf32>
    %307 = math.tanh %306 : vector<8x16xf32>
    %308 = arith.subf %283, %307 : vector<8x16xf32>
    %309 = arith.mulf %301, %308 : vector<8x16xf32>
    %310 = arith.addf %307, %309 : vector<8x16xf32>
    %311 = vector.extract_strided_slice %278 {offsets = [8, 48], sizes = [8, 48], strides = [1, 1]} : vector<16x96xf32> to vector<8x48xf32>
    %312 = vector.extract_strided_slice %282 {offsets = [0, 0], sizes = [8, 16], strides = [1, 1]} : vector<8x48xf32> to vector<8x16xf32>
    %313 = vector.extract_strided_slice %311 {offsets = [0, 0], sizes = [8, 16], strides = [1, 1]} : vector<8x48xf32> to vector<8x16xf32>
    %314 = arith.addf %312, %313 : vector<8x16xf32>
    %315 = arith.negf %314 : vector<8x16xf32>
    %316 = math.exp %315 : vector<8x16xf32>
    %cst_86 = arith.constant 1.000000e+00 : f32
    %317 = vector.broadcast %cst_86 : f32 to vector<8x16xf32>
    %318 = arith.addf %317, %316 : vector<8x16xf32>
    %319 = arith.divf %317, %318 : vector<8x16xf32>
    %320 = vector.extract_strided_slice %282 {offsets = [0, 16], sizes = [8, 16], strides = [1, 1]} : vector<8x48xf32> to vector<8x16xf32>
    %321 = vector.extract_strided_slice %311 {offsets = [0, 16], sizes = [8, 16], strides = [1, 1]} : vector<8x48xf32> to vector<8x16xf32>
    %322 = arith.addf %320, %321 : vector<8x16xf32>
    %323 = arith.negf %322 : vector<8x16xf32>
    %324 = math.exp %323 : vector<8x16xf32>
    %cst_87 = arith.constant 1.000000e+00 : f32
    %325 = vector.broadcast %cst_87 : f32 to vector<8x16xf32>
    %326 = arith.addf %325, %324 : vector<8x16xf32>
    %327 = arith.divf %325, %326 : vector<8x16xf32>
    %328 = vector.extract_strided_slice %282 {offsets = [0, 32], sizes = [8, 16], strides = [1, 1]} : vector<8x48xf32> to vector<8x16xf32>
    %329 = vector.extract_strided_slice %311 {offsets = [0, 32], sizes = [8, 16], strides = [1, 1]} : vector<8x48xf32> to vector<8x16xf32>
    %330 = arith.addf %329, %22 : vector<8x16xf32>
    %331 = arith.mulf %319, %330 : vector<8x16xf32>
    %332 = arith.addf %328, %331 : vector<8x16xf32>
    %333 = math.tanh %332 : vector<8x16xf32>
    %334 = arith.subf %284, %333 : vector<8x16xf32>
    %335 = arith.mulf %327, %334 : vector<8x16xf32>
    %336 = arith.addf %333, %335 : vector<8x16xf32>
    %337 = vector.broadcast %c3_i32 : i32 to vector<8x16xi32>
    %338 = arith.cmpi sgt, %2, %337 : vector<8x16xi32>
    %339 = vector.broadcast %271 : i32 to vector<8x16xi32>
    %340 = arith.cmpi sgt, %2, %339 : vector<8x16xi32>
    %341 = arith.select %338, %310, %283 : vector<8x16xi1>, vector<8x16xf32>
    %c0_88 = arith.constant 0 : index
    %c0_89 = arith.constant 0 : index
    %342 = vector.load %arg10[%c0_88, %c0_89] : memref<16x16xf32, #tpu.memory_space<vmem>>, vector<8x16xf32>
    tpu.vector_store %arg10[%c0_88, %c0_89], %341 {strides = array<i32>} : memref<16x16xf32, #tpu.memory_space<vmem>>, vector<8x16xf32>,
    %343 = arith.select %340, %336, %284 : vector<8x16xi1>, vector<8x16xf32>
    %c8_90 = arith.constant 8 : index
    %c0_91 = arith.constant 0 : index
    %344 = vector.load %arg10[%c8_90, %c0_91] : memref<16x16xf32, #tpu.memory_space<vmem>>, vector<8x16xf32>
    tpu.vector_store %arg10[%c8_90, %c0_91], %343 {strides = array<i32>} : memref<16x16xf32, #tpu.memory_space<vmem>>, vector<8x16xf32>,
    %cst_92 = arith.constant 0.000000e+00 : f32
    %345 = vector.broadcast %cst_92 : f32 to vector<8x16xf32>
    %346 = arith.select %338, %310, %345 : vector<8x16xi1>, vector<8x16xf32>
    %347 = arith.index_cast %273 : i32 to index
    %c0_93 = arith.constant 0 : index
    %348 = vector.load %arg8[%347, %c0_93] : memref<64x32xf32, #tpu.memory_space<vmem>>, vector<8x16xf32>
    tpu.vector_store %arg8[%347, %c0_93], %346 {strides = array<i32>} : memref<64x32xf32, #tpu.memory_space<vmem>>, vector<8x16xf32>,
    %cst_94 = arith.constant 0.000000e+00 : f32
    %349 = vector.broadcast %cst_94 : f32 to vector<8x16xf32>
    %350 = arith.select %340, %336, %349 : vector<8x16xi1>, vector<8x16xf32>
    %351 = arith.index_cast %275 : i32 to index
    %c16_95 = arith.constant 16 : index
    %352 = vector.load %arg8[%351, %c16_95] : memref<64x32xf32, #tpu.memory_space<vmem>>, vector<8x16xf32>
    tpu.vector_store %arg8[%351, %c16_95], %350 {strides = array<i32>} : memref<64x32xf32, #tpu.memory_space<vmem>>, vector<8x16xf32>,
    %c4_i32 = arith.constant 4 : i32
    %c7_i32_96 = arith.constant 7 : i32
    %353 = arith.subi %c7_i32_96, %c4_i32 : i32
    %c8_i32_97 = arith.constant 8 : i32
    %354 = arith.muli %c4_i32, %c8_i32_97 : i32
    %355 = tpu.assume_multiple %354, 8 : i32
    %c8_i32_98 = arith.constant 8 : i32
    %356 = arith.muli %353, %c8_i32_98 : i32
    %357 = tpu.assume_multiple %356, 8 : i32
    %c0_99 = arith.constant 0 : index
    %c0_100 = arith.constant 0 : index
    %358 = vector.load %arg10[%c0_99, %c0_100] : memref<16x16xf32, #tpu.memory_space<vmem>>, vector<16x16xf32>
    %359 = arith.truncf %358 : vector<16x16xf32> to vector<16x16xbf16>
    %cst_101 = arith.constant dense<0.000000e+00> : vector<16x96xf32>
    %360 = tpu.matmul %359, %14, %cst_101 {dimension_numbers = #tpu.dot_dimension_numbers<[1], [0], [0], [1], [0, 0, 1, 1], [], []>} : vector<16x16xbf16>, vector<16x96xbf16>, vector<16x96xf32> -> vector<16x96xf32>
    %361 = arith.index_cast %355 : i32 to index
    %c0_102 = arith.constant 0 : index
    %362 = vector.load %arg9[%361, %c0_102] : memref<64x96xf32, #tpu.memory_space<vmem>>, vector<8x48xf32>
    %363 = arith.index_cast %357 : i32 to index
    %c48_103 = arith.constant 48 : index
    %364 = vector.load %arg9[%363, %c48_103] : memref<64x96xf32, #tpu.memory_space<vmem>>, vector<8x48xf32>
    %365 = vector.extract_strided_slice %358 {offsets = [0, 0], sizes = [8, 16], strides = [1, 1]} : vector<16x16xf32> to vector<8x16xf32>
    %366 = vector.extract_strided_slice %358 {offsets = [8, 0], sizes = [8, 16], strides = [1, 1]} : vector<16x16xf32> to vector<8x16xf32>
    %367 = vector.extract_strided_slice %360 {offsets = [0, 0], sizes = [8, 48], strides = [1, 1]} : vector<16x96xf32> to vector<8x48xf32>
    %368 = vector.extract_strided_slice %362 {offsets = [0, 0], sizes = [8, 16], strides = [1, 1]} : vector<8x48xf32> to vector<8x16xf32>
    %369 = vector.extract_strided_slice %367 {offsets = [0, 0], sizes = [8, 16], strides = [1, 1]} : vector<8x48xf32> to vector<8x16xf32>
    %370 = arith.addf %368, %369 : vector<8x16xf32>
    %371 = arith.negf %370 : vector<8x16xf32>
    %372 = math.exp %371 : vector<8x16xf32>
    %cst_104 = arith.constant 1.000000e+00 : f32
    %373 = vector.broadcast %cst_104 : f32 to vector<8x16xf32>
    %374 = arith.addf %373, %372 : vector<8x16xf32>
    %375 = arith.divf %373, %374 : vector<8x16xf32>
    %376 = vector.extract_strided_slice %362 {offsets = [0, 16], sizes = [8, 16], strides = [1, 1]} : vector<8x48xf32> to vector<8x16xf32>
    %377 = vector.extract_strided_slice %367 {offsets = [0, 16], sizes = [8, 16], strides = [1, 1]} : vector<8x48xf32> to vector<8x16xf32>
    %378 = arith.addf %376, %377 : vector<8x16xf32>
    %379 = arith.negf %378 : vector<8x16xf32>
    %380 = math.exp %379 : vector<8x16xf32>
    %cst_105 = arith.constant 1.000000e+00 : f32
    %381 = vector.broadcast %cst_105 : f32 to vector<8x16xf32>
    %382 = arith.addf %381, %380 : vector<8x16xf32>
    %383 = arith.divf %381, %382 : vector<8x16xf32>
    %384 = vector.extract_strided_slice %362 {offsets = [0, 32], sizes = [8, 16], strides = [1, 1]} : vector<8x48xf32> to vector<8x16xf32>
    %385 = vector.extract_strided_slice %367 {offsets = [0, 32], sizes = [8, 16], strides = [1, 1]} : vector<8x48xf32> to vector<8x16xf32>
    %386 = arith.addf %385, %19 : vector<8x16xf32>
    %387 = arith.mulf %375, %386 : vector<8x16xf32>
    %388 = arith.addf %384, %387 : vector<8x16xf32>
    %389 = math.tanh %388 : vector<8x16xf32>
    %390 = arith.subf %365, %389 : vector<8x16xf32>
    %391 = arith.mulf %383, %390 : vector<8x16xf32>
    %392 = arith.addf %389, %391 : vector<8x16xf32>
    %393 = vector.extract_strided_slice %360 {offsets = [8, 48], sizes = [8, 48], strides = [1, 1]} : vector<16x96xf32> to vector<8x48xf32>
    %394 = vector.extract_strided_slice %364 {offsets = [0, 0], sizes = [8, 16], strides = [1, 1]} : vector<8x48xf32> to vector<8x16xf32>
    %395 = vector.extract_strided_slice %393 {offsets = [0, 0], sizes = [8, 16], strides = [1, 1]} : vector<8x48xf32> to vector<8x16xf32>
    %396 = arith.addf %394, %395 : vector<8x16xf32>
    %397 = arith.negf %396 : vector<8x16xf32>
    %398 = math.exp %397 : vector<8x16xf32>
    %cst_106 = arith.constant 1.000000e+00 : f32
    %399 = vector.broadcast %cst_106 : f32 to vector<8x16xf32>
    %400 = arith.addf %399, %398 : vector<8x16xf32>
    %401 = arith.divf %399, %400 : vector<8x16xf32>
    %402 = vector.extract_strided_slice %364 {offsets = [0, 16], sizes = [8, 16], strides = [1, 1]} : vector<8x48xf32> to vector<8x16xf32>
    %403 = vector.extract_strided_slice %393 {offsets = [0, 16], sizes = [8, 16], strides = [1, 1]} : vector<8x48xf32> to vector<8x16xf32>
    %404 = arith.addf %402, %403 : vector<8x16xf32>
    %405 = arith.negf %404 : vector<8x16xf32>
    %406 = math.exp %405 : vector<8x16xf32>
    %cst_107 = arith.constant 1.000000e+00 : f32
    %407 = vector.broadcast %cst_107 : f32 to vector<8x16xf32>
    %408 = arith.addf %407, %406 : vector<8x16xf32>
    %409 = arith.divf %407, %408 : vector<8x16xf32>
    %410 = vector.extract_strided_slice %364 {offsets = [0, 32], sizes = [8, 16], strides = [1, 1]} : vector<8x48xf32> to vector<8x16xf32>
    %411 = vector.extract_strided_slice %393 {offsets = [0, 32], sizes = [8, 16], strides = [1, 1]} : vector<8x48xf32> to vector<8x16xf32>
    %412 = arith.addf %411, %22 : vector<8x16xf32>
    %413 = arith.mulf %401, %412 : vector<8x16xf32>
    %414 = arith.addf %410, %413 : vector<8x16xf32>
    %415 = math.tanh %414 : vector<8x16xf32>
    %416 = arith.subf %366, %415 : vector<8x16xf32>
    %417 = arith.mulf %409, %416 : vector<8x16xf32>
    %418 = arith.addf %415, %417 : vector<8x16xf32>
    %419 = vector.broadcast %c4_i32 : i32 to vector<8x16xi32>
    %420 = arith.cmpi sgt, %2, %419 : vector<8x16xi32>
    %421 = vector.broadcast %353 : i32 to vector<8x16xi32>
    %422 = arith.cmpi sgt, %2, %421 : vector<8x16xi32>
    %423 = arith.select %420, %392, %365 : vector<8x16xi1>, vector<8x16xf32>
    %c0_108 = arith.constant 0 : index
    %c0_109 = arith.constant 0 : index
    %424 = vector.load %arg10[%c0_108, %c0_109] : memref<16x16xf32, #tpu.memory_space<vmem>>, vector<8x16xf32>
    tpu.vector_store %arg10[%c0_108, %c0_109], %423 {strides = array<i32>} : memref<16x16xf32, #tpu.memory_space<vmem>>, vector<8x16xf32>,
    %425 = arith.select %422, %418, %366 : vector<8x16xi1>, vector<8x16xf32>
    %c8_110 = arith.constant 8 : index
    %c0_111 = arith.constant 0 : index
    %426 = vector.load %arg10[%c8_110, %c0_111] : memref<16x16xf32, #tpu.memory_space<vmem>>, vector<8x16xf32>
    tpu.vector_store %arg10[%c8_110, %c0_111], %425 {strides = array<i32>} : memref<16x16xf32, #tpu.memory_space<vmem>>, vector<8x16xf32>,
    %cst_112 = arith.constant 0.000000e+00 : f32
    %427 = vector.broadcast %cst_112 : f32 to vector<8x16xf32>
    %428 = arith.select %420, %392, %427 : vector<8x16xi1>, vector<8x16xf32>
    %429 = arith.index_cast %355 : i32 to index
    %c0_113 = arith.constant 0 : index
    %430 = vector.load %arg8[%429, %c0_113] : memref<64x32xf32, #tpu.memory_space<vmem>>, vector<8x16xf32>
    tpu.vector_store %arg8[%429, %c0_113], %428 {strides = array<i32>} : memref<64x32xf32, #tpu.memory_space<vmem>>, vector<8x16xf32>,
    %cst_114 = arith.constant 0.000000e+00 : f32
    %431 = vector.broadcast %cst_114 : f32 to vector<8x16xf32>
    %432 = arith.select %422, %418, %431 : vector<8x16xi1>, vector<8x16xf32>
    %433 = arith.index_cast %357 : i32 to index
    %c16_115 = arith.constant 16 : index
    %434 = vector.load %arg8[%433, %c16_115] : memref<64x32xf32, #tpu.memory_space<vmem>>, vector<8x16xf32>
    tpu.vector_store %arg8[%433, %c16_115], %432 {strides = array<i32>} : memref<64x32xf32, #tpu.memory_space<vmem>>, vector<8x16xf32>,
    %c5_i32 = arith.constant 5 : i32
    %c7_i32_116 = arith.constant 7 : i32
    %435 = arith.subi %c7_i32_116, %c5_i32 : i32
    %c8_i32_117 = arith.constant 8 : i32
    %436 = arith.muli %c5_i32, %c8_i32_117 : i32
    %437 = tpu.assume_multiple %436, 8 : i32
    %c8_i32_118 = arith.constant 8 : i32
    %438 = arith.muli %435, %c8_i32_118 : i32
    %439 = tpu.assume_multiple %438, 8 : i32
    %c0_119 = arith.constant 0 : index
    %c0_120 = arith.constant 0 : index
    %440 = vector.load %arg10[%c0_119, %c0_120] : memref<16x16xf32, #tpu.memory_space<vmem>>, vector<16x16xf32>
    %441 = arith.truncf %440 : vector<16x16xf32> to vector<16x16xbf16>
    %cst_121 = arith.constant dense<0.000000e+00> : vector<16x96xf32>
    %442 = tpu.matmul %441, %14, %cst_121 {dimension_numbers = #tpu.dot_dimension_numbers<[1], [0], [0], [1], [0, 0, 1, 1], [], []>} : vector<16x16xbf16>, vector<16x96xbf16>, vector<16x96xf32> -> vector<16x96xf32>
    %443 = arith.index_cast %437 : i32 to index
    %c0_122 = arith.constant 0 : index
    %444 = vector.load %arg9[%443, %c0_122] : memref<64x96xf32, #tpu.memory_space<vmem>>, vector<8x48xf32>
    %445 = arith.index_cast %439 : i32 to index
    %c48_123 = arith.constant 48 : index
    %446 = vector.load %arg9[%445, %c48_123] : memref<64x96xf32, #tpu.memory_space<vmem>>, vector<8x48xf32>
    %447 = vector.extract_strided_slice %440 {offsets = [0, 0], sizes = [8, 16], strides = [1, 1]} : vector<16x16xf32> to vector<8x16xf32>
    %448 = vector.extract_strided_slice %440 {offsets = [8, 0], sizes = [8, 16], strides = [1, 1]} : vector<16x16xf32> to vector<8x16xf32>
    %449 = vector.extract_strided_slice %442 {offsets = [0, 0], sizes = [8, 48], strides = [1, 1]} : vector<16x96xf32> to vector<8x48xf32>
    %450 = vector.extract_strided_slice %444 {offsets = [0, 0], sizes = [8, 16], strides = [1, 1]} : vector<8x48xf32> to vector<8x16xf32>
    %451 = vector.extract_strided_slice %449 {offsets = [0, 0], sizes = [8, 16], strides = [1, 1]} : vector<8x48xf32> to vector<8x16xf32>
    %452 = arith.addf %450, %451 : vector<8x16xf32>
    %453 = arith.negf %452 : vector<8x16xf32>
    %454 = math.exp %453 : vector<8x16xf32>
    %cst_124 = arith.constant 1.000000e+00 : f32
    %455 = vector.broadcast %cst_124 : f32 to vector<8x16xf32>
    %456 = arith.addf %455, %454 : vector<8x16xf32>
    %457 = arith.divf %455, %456 : vector<8x16xf32>
    %458 = vector.extract_strided_slice %444 {offsets = [0, 16], sizes = [8, 16], strides = [1, 1]} : vector<8x48xf32> to vector<8x16xf32>
    %459 = vector.extract_strided_slice %449 {offsets = [0, 16], sizes = [8, 16], strides = [1, 1]} : vector<8x48xf32> to vector<8x16xf32>
    %460 = arith.addf %458, %459 : vector<8x16xf32>
    %461 = arith.negf %460 : vector<8x16xf32>
    %462 = math.exp %461 : vector<8x16xf32>
    %cst_125 = arith.constant 1.000000e+00 : f32
    %463 = vector.broadcast %cst_125 : f32 to vector<8x16xf32>
    %464 = arith.addf %463, %462 : vector<8x16xf32>
    %465 = arith.divf %463, %464 : vector<8x16xf32>
    %466 = vector.extract_strided_slice %444 {offsets = [0, 32], sizes = [8, 16], strides = [1, 1]} : vector<8x48xf32> to vector<8x16xf32>
    %467 = vector.extract_strided_slice %449 {offsets = [0, 32], sizes = [8, 16], strides = [1, 1]} : vector<8x48xf32> to vector<8x16xf32>
    %468 = arith.addf %467, %19 : vector<8x16xf32>
    %469 = arith.mulf %457, %468 : vector<8x16xf32>
    %470 = arith.addf %466, %469 : vector<8x16xf32>
    %471 = math.tanh %470 : vector<8x16xf32>
    %472 = arith.subf %447, %471 : vector<8x16xf32>
    %473 = arith.mulf %465, %472 : vector<8x16xf32>
    %474 = arith.addf %471, %473 : vector<8x16xf32>
    %475 = vector.extract_strided_slice %442 {offsets = [8, 48], sizes = [8, 48], strides = [1, 1]} : vector<16x96xf32> to vector<8x48xf32>
    %476 = vector.extract_strided_slice %446 {offsets = [0, 0], sizes = [8, 16], strides = [1, 1]} : vector<8x48xf32> to vector<8x16xf32>
    %477 = vector.extract_strided_slice %475 {offsets = [0, 0], sizes = [8, 16], strides = [1, 1]} : vector<8x48xf32> to vector<8x16xf32>
    %478 = arith.addf %476, %477 : vector<8x16xf32>
    %479 = arith.negf %478 : vector<8x16xf32>
    %480 = math.exp %479 : vector<8x16xf32>
    %cst_126 = arith.constant 1.000000e+00 : f32
    %481 = vector.broadcast %cst_126 : f32 to vector<8x16xf32>
    %482 = arith.addf %481, %480 : vector<8x16xf32>
    %483 = arith.divf %481, %482 : vector<8x16xf32>
    %484 = vector.extract_strided_slice %446 {offsets = [0, 16], sizes = [8, 16], strides = [1, 1]} : vector<8x48xf32> to vector<8x16xf32>
    %485 = vector.extract_strided_slice %475 {offsets = [0, 16], sizes = [8, 16], strides = [1, 1]} : vector<8x48xf32> to vector<8x16xf32>
    %486 = arith.addf %484, %485 : vector<8x16xf32>
    %487 = arith.negf %486 : vector<8x16xf32>
    %488 = math.exp %487 : vector<8x16xf32>
    %cst_127 = arith.constant 1.000000e+00 : f32
    %489 = vector.broadcast %cst_127 : f32 to vector<8x16xf32>
    %490 = arith.addf %489, %488 : vector<8x16xf32>
    %491 = arith.divf %489, %490 : vector<8x16xf32>
    %492 = vector.extract_strided_slice %446 {offsets = [0, 32], sizes = [8, 16], strides = [1, 1]} : vector<8x48xf32> to vector<8x16xf32>
    %493 = vector.extract_strided_slice %475 {offsets = [0, 32], sizes = [8, 16], strides = [1, 1]} : vector<8x48xf32> to vector<8x16xf32>
    %494 = arith.addf %493, %22 : vector<8x16xf32>
    %495 = arith.mulf %483, %494 : vector<8x16xf32>
    %496 = arith.addf %492, %495 : vector<8x16xf32>
    %497 = math.tanh %496 : vector<8x16xf32>
    %498 = arith.subf %448, %497 : vector<8x16xf32>
    %499 = arith.mulf %491, %498 : vector<8x16xf32>
    %500 = arith.addf %497, %499 : vector<8x16xf32>
    %501 = vector.broadcast %c5_i32 : i32 to vector<8x16xi32>
    %502 = arith.cmpi sgt, %2, %501 : vector<8x16xi32>
    %503 = vector.broadcast %435 : i32 to vector<8x16xi32>
    %504 = arith.cmpi sgt, %2, %503 : vector<8x16xi32>
    %505 = arith.select %502, %474, %447 : vector<8x16xi1>, vector<8x16xf32>
    %c0_128 = arith.constant 0 : index
    %c0_129 = arith.constant 0 : index
    %506 = vector.load %arg10[%c0_128, %c0_129] : memref<16x16xf32, #tpu.memory_space<vmem>>, vector<8x16xf32>
    tpu.vector_store %arg10[%c0_128, %c0_129], %505 {strides = array<i32>} : memref<16x16xf32, #tpu.memory_space<vmem>>, vector<8x16xf32>,
    %507 = arith.select %504, %500, %448 : vector<8x16xi1>, vector<8x16xf32>
    %c8_130 = arith.constant 8 : index
    %c0_131 = arith.constant 0 : index
    %508 = vector.load %arg10[%c8_130, %c0_131] : memref<16x16xf32, #tpu.memory_space<vmem>>, vector<8x16xf32>
    tpu.vector_store %arg10[%c8_130, %c0_131], %507 {strides = array<i32>} : memref<16x16xf32, #tpu.memory_space<vmem>>, vector<8x16xf32>,
    %cst_132 = arith.constant 0.000000e+00 : f32
    %509 = vector.broadcast %cst_132 : f32 to vector<8x16xf32>
    %510 = arith.select %502, %474, %509 : vector<8x16xi1>, vector<8x16xf32>
    %511 = arith.index_cast %437 : i32 to index
    %c0_133 = arith.constant 0 : index
    %512 = vector.load %arg8[%511, %c0_133] : memref<64x32xf32, #tpu.memory_space<vmem>>, vector<8x16xf32>
    tpu.vector_store %arg8[%511, %c0_133], %510 {strides = array<i32>} : memref<64x32xf32, #tpu.memory_space<vmem>>, vector<8x16xf32>,
    %cst_134 = arith.constant 0.000000e+00 : f32
    %513 = vector.broadcast %cst_134 : f32 to vector<8x16xf32>
    %514 = arith.select %504, %500, %513 : vector<8x16xi1>, vector<8x16xf32>
    %515 = arith.index_cast %439 : i32 to index
    %c16_135 = arith.constant 16 : index
    %516 = vector.load %arg8[%515, %c16_135] : memref<64x32xf32, #tpu.memory_space<vmem>>, vector<8x16xf32>
    tpu.vector_store %arg8[%515, %c16_135], %514 {strides = array<i32>} : memref<64x32xf32, #tpu.memory_space<vmem>>, vector<8x16xf32>,
    %c6_i32 = arith.constant 6 : i32
    %c7_i32_136 = arith.constant 7 : i32
    %517 = arith.subi %c7_i32_136, %c6_i32 : i32
    %c8_i32_137 = arith.constant 8 : i32
    %518 = arith.muli %c6_i32, %c8_i32_137 : i32
    %519 = tpu.assume_multiple %518, 8 : i32
    %c8_i32_138 = arith.constant 8 : i32
    %520 = arith.muli %517, %c8_i32_138 : i32
    %521 = tpu.assume_multiple %520, 8 : i32
    %c0_139 = arith.constant 0 : index
    %c0_140 = arith.constant 0 : index
    %522 = vector.load %arg10[%c0_139, %c0_140] : memref<16x16xf32, #tpu.memory_space<vmem>>, vector<16x16xf32>
    %523 = arith.truncf %522 : vector<16x16xf32> to vector<16x16xbf16>
    %cst_141 = arith.constant dense<0.000000e+00> : vector<16x96xf32>
    %524 = tpu.matmul %523, %14, %cst_141 {dimension_numbers = #tpu.dot_dimension_numbers<[1], [0], [0], [1], [0, 0, 1, 1], [], []>} : vector<16x16xbf16>, vector<16x96xbf16>, vector<16x96xf32> -> vector<16x96xf32>
    %525 = arith.index_cast %519 : i32 to index
    %c0_142 = arith.constant 0 : index
    %526 = vector.load %arg9[%525, %c0_142] : memref<64x96xf32, #tpu.memory_space<vmem>>, vector<8x48xf32>
    %527 = arith.index_cast %521 : i32 to index
    %c48_143 = arith.constant 48 : index
    %528 = vector.load %arg9[%527, %c48_143] : memref<64x96xf32, #tpu.memory_space<vmem>>, vector<8x48xf32>
    %529 = vector.extract_strided_slice %522 {offsets = [0, 0], sizes = [8, 16], strides = [1, 1]} : vector<16x16xf32> to vector<8x16xf32>
    %530 = vector.extract_strided_slice %522 {offsets = [8, 0], sizes = [8, 16], strides = [1, 1]} : vector<16x16xf32> to vector<8x16xf32>
    %531 = vector.extract_strided_slice %524 {offsets = [0, 0], sizes = [8, 48], strides = [1, 1]} : vector<16x96xf32> to vector<8x48xf32>
    %532 = vector.extract_strided_slice %526 {offsets = [0, 0], sizes = [8, 16], strides = [1, 1]} : vector<8x48xf32> to vector<8x16xf32>
    %533 = vector.extract_strided_slice %531 {offsets = [0, 0], sizes = [8, 16], strides = [1, 1]} : vector<8x48xf32> to vector<8x16xf32>
    %534 = arith.addf %532, %533 : vector<8x16xf32>
    %535 = arith.negf %534 : vector<8x16xf32>
    %536 = math.exp %535 : vector<8x16xf32>
    %cst_144 = arith.constant 1.000000e+00 : f32
    %537 = vector.broadcast %cst_144 : f32 to vector<8x16xf32>
    %538 = arith.addf %537, %536 : vector<8x16xf32>
    %539 = arith.divf %537, %538 : vector<8x16xf32>
    %540 = vector.extract_strided_slice %526 {offsets = [0, 16], sizes = [8, 16], strides = [1, 1]} : vector<8x48xf32> to vector<8x16xf32>
    %541 = vector.extract_strided_slice %531 {offsets = [0, 16], sizes = [8, 16], strides = [1, 1]} : vector<8x48xf32> to vector<8x16xf32>
    %542 = arith.addf %540, %541 : vector<8x16xf32>
    %543 = arith.negf %542 : vector<8x16xf32>
    %544 = math.exp %543 : vector<8x16xf32>
    %cst_145 = arith.constant 1.000000e+00 : f32
    %545 = vector.broadcast %cst_145 : f32 to vector<8x16xf32>
    %546 = arith.addf %545, %544 : vector<8x16xf32>
    %547 = arith.divf %545, %546 : vector<8x16xf32>
    %548 = vector.extract_strided_slice %526 {offsets = [0, 32], sizes = [8, 16], strides = [1, 1]} : vector<8x48xf32> to vector<8x16xf32>
    %549 = vector.extract_strided_slice %531 {offsets = [0, 32], sizes = [8, 16], strides = [1, 1]} : vector<8x48xf32> to vector<8x16xf32>
    %550 = arith.addf %549, %19 : vector<8x16xf32>
    %551 = arith.mulf %539, %550 : vector<8x16xf32>
    %552 = arith.addf %548, %551 : vector<8x16xf32>
    %553 = math.tanh %552 : vector<8x16xf32>
    %554 = arith.subf %529, %553 : vector<8x16xf32>
    %555 = arith.mulf %547, %554 : vector<8x16xf32>
    %556 = arith.addf %553, %555 : vector<8x16xf32>
    %557 = vector.extract_strided_slice %524 {offsets = [8, 48], sizes = [8, 48], strides = [1, 1]} : vector<16x96xf32> to vector<8x48xf32>
    %558 = vector.extract_strided_slice %528 {offsets = [0, 0], sizes = [8, 16], strides = [1, 1]} : vector<8x48xf32> to vector<8x16xf32>
    %559 = vector.extract_strided_slice %557 {offsets = [0, 0], sizes = [8, 16], strides = [1, 1]} : vector<8x48xf32> to vector<8x16xf32>
    %560 = arith.addf %558, %559 : vector<8x16xf32>
    %561 = arith.negf %560 : vector<8x16xf32>
    %562 = math.exp %561 : vector<8x16xf32>
    %cst_146 = arith.constant 1.000000e+00 : f32
    %563 = vector.broadcast %cst_146 : f32 to vector<8x16xf32>
    %564 = arith.addf %563, %562 : vector<8x16xf32>
    %565 = arith.divf %563, %564 : vector<8x16xf32>
    %566 = vector.extract_strided_slice %528 {offsets = [0, 16], sizes = [8, 16], strides = [1, 1]} : vector<8x48xf32> to vector<8x16xf32>
    %567 = vector.extract_strided_slice %557 {offsets = [0, 16], sizes = [8, 16], strides = [1, 1]} : vector<8x48xf32> to vector<8x16xf32>
    %568 = arith.addf %566, %567 : vector<8x16xf32>
    %569 = arith.negf %568 : vector<8x16xf32>
    %570 = math.exp %569 : vector<8x16xf32>
    %cst_147 = arith.constant 1.000000e+00 : f32
    %571 = vector.broadcast %cst_147 : f32 to vector<8x16xf32>
    %572 = arith.addf %571, %570 : vector<8x16xf32>
    %573 = arith.divf %571, %572 : vector<8x16xf32>
    %574 = vector.extract_strided_slice %528 {offsets = [0, 32], sizes = [8, 16], strides = [1, 1]} : vector<8x48xf32> to vector<8x16xf32>
    %575 = vector.extract_strided_slice %557 {offsets = [0, 32], sizes = [8, 16], strides = [1, 1]} : vector<8x48xf32> to vector<8x16xf32>
    %576 = arith.addf %575, %22 : vector<8x16xf32>
    %577 = arith.mulf %565, %576 : vector<8x16xf32>
    %578 = arith.addf %574, %577 : vector<8x16xf32>
    %579 = math.tanh %578 : vector<8x16xf32>
    %580 = arith.subf %530, %579 : vector<8x16xf32>
    %581 = arith.mulf %573, %580 : vector<8x16xf32>
    %582 = arith.addf %579, %581 : vector<8x16xf32>
    %583 = vector.broadcast %c6_i32 : i32 to vector<8x16xi32>
    %584 = arith.cmpi sgt, %2, %583 : vector<8x16xi32>
    %585 = vector.broadcast %517 : i32 to vector<8x16xi32>
    %586 = arith.cmpi sgt, %2, %585 : vector<8x16xi32>
    %587 = arith.select %584, %556, %529 : vector<8x16xi1>, vector<8x16xf32>
    %c0_148 = arith.constant 0 : index
    %c0_149 = arith.constant 0 : index
    %588 = vector.load %arg10[%c0_148, %c0_149] : memref<16x16xf32, #tpu.memory_space<vmem>>, vector<8x16xf32>
    tpu.vector_store %arg10[%c0_148, %c0_149], %587 {strides = array<i32>} : memref<16x16xf32, #tpu.memory_space<vmem>>, vector<8x16xf32>,
    %589 = arith.select %586, %582, %530 : vector<8x16xi1>, vector<8x16xf32>
    %c8_150 = arith.constant 8 : index
    %c0_151 = arith.constant 0 : index
    %590 = vector.load %arg10[%c8_150, %c0_151] : memref<16x16xf32, #tpu.memory_space<vmem>>, vector<8x16xf32>
    tpu.vector_store %arg10[%c8_150, %c0_151], %589 {strides = array<i32>} : memref<16x16xf32, #tpu.memory_space<vmem>>, vector<8x16xf32>,
    %cst_152 = arith.constant 0.000000e+00 : f32
    %591 = vector.broadcast %cst_152 : f32 to vector<8x16xf32>
    %592 = arith.select %584, %556, %591 : vector<8x16xi1>, vector<8x16xf32>
    %593 = arith.index_cast %519 : i32 to index
    %c0_153 = arith.constant 0 : index
    %594 = vector.load %arg8[%593, %c0_153] : memref<64x32xf32, #tpu.memory_space<vmem>>, vector<8x16xf32>
    tpu.vector_store %arg8[%593, %c0_153], %592 {strides = array<i32>} : memref<64x32xf32, #tpu.memory_space<vmem>>, vector<8x16xf32>,
    %cst_154 = arith.constant 0.000000e+00 : f32
    %595 = vector.broadcast %cst_154 : f32 to vector<8x16xf32>
    %596 = arith.select %586, %582, %595 : vector<8x16xi1>, vector<8x16xf32>
    %597 = arith.index_cast %521 : i32 to index
    %c16_155 = arith.constant 16 : index
    %598 = vector.load %arg8[%597, %c16_155] : memref<64x32xf32, #tpu.memory_space<vmem>>, vector<8x16xf32>
    tpu.vector_store %arg8[%597, %c16_155], %596 {strides = array<i32>} : memref<64x32xf32, #tpu.memory_space<vmem>>, vector<8x16xf32>,
    %c7_i32_156 = arith.constant 7 : i32
    %c7_i32_157 = arith.constant 7 : i32
    %599 = arith.subi %c7_i32_157, %c7_i32_156 : i32
    %c8_i32_158 = arith.constant 8 : i32
    %600 = arith.muli %c7_i32_156, %c8_i32_158 : i32
    %601 = tpu.assume_multiple %600, 8 : i32
    %c8_i32_159 = arith.constant 8 : i32
    %602 = arith.muli %599, %c8_i32_159 : i32
    %603 = tpu.assume_multiple %602, 8 : i32
    %c0_160 = arith.constant 0 : index
    %c0_161 = arith.constant 0 : index
    %604 = vector.load %arg10[%c0_160, %c0_161] : memref<16x16xf32, #tpu.memory_space<vmem>>, vector<16x16xf32>
    %605 = arith.truncf %604 : vector<16x16xf32> to vector<16x16xbf16>
    %cst_162 = arith.constant dense<0.000000e+00> : vector<16x96xf32>
    %606 = tpu.matmul %605, %14, %cst_162 {dimension_numbers = #tpu.dot_dimension_numbers<[1], [0], [0], [1], [0, 0, 1, 1], [], []>} : vector<16x16xbf16>, vector<16x96xbf16>, vector<16x96xf32> -> vector<16x96xf32>
    %607 = arith.index_cast %601 : i32 to index
    %c0_163 = arith.constant 0 : index
    %608 = vector.load %arg9[%607, %c0_163] : memref<64x96xf32, #tpu.memory_space<vmem>>, vector<8x48xf32>
    %609 = arith.index_cast %603 : i32 to index
    %c48_164 = arith.constant 48 : index
    %610 = vector.load %arg9[%609, %c48_164] : memref<64x96xf32, #tpu.memory_space<vmem>>, vector<8x48xf32>
    %611 = vector.extract_strided_slice %604 {offsets = [0, 0], sizes = [8, 16], strides = [1, 1]} : vector<16x16xf32> to vector<8x16xf32>
    %612 = vector.extract_strided_slice %604 {offsets = [8, 0], sizes = [8, 16], strides = [1, 1]} : vector<16x16xf32> to vector<8x16xf32>
    %613 = vector.extract_strided_slice %606 {offsets = [0, 0], sizes = [8, 48], strides = [1, 1]} : vector<16x96xf32> to vector<8x48xf32>
    %614 = vector.extract_strided_slice %608 {offsets = [0, 0], sizes = [8, 16], strides = [1, 1]} : vector<8x48xf32> to vector<8x16xf32>
    %615 = vector.extract_strided_slice %613 {offsets = [0, 0], sizes = [8, 16], strides = [1, 1]} : vector<8x48xf32> to vector<8x16xf32>
    %616 = arith.addf %614, %615 : vector<8x16xf32>
    %617 = arith.negf %616 : vector<8x16xf32>
    %618 = math.exp %617 : vector<8x16xf32>
    %cst_165 = arith.constant 1.000000e+00 : f32
    %619 = vector.broadcast %cst_165 : f32 to vector<8x16xf32>
    %620 = arith.addf %619, %618 : vector<8x16xf32>
    %621 = arith.divf %619, %620 : vector<8x16xf32>
    %622 = vector.extract_strided_slice %608 {offsets = [0, 16], sizes = [8, 16], strides = [1, 1]} : vector<8x48xf32> to vector<8x16xf32>
    %623 = vector.extract_strided_slice %613 {offsets = [0, 16], sizes = [8, 16], strides = [1, 1]} : vector<8x48xf32> to vector<8x16xf32>
    %624 = arith.addf %622, %623 : vector<8x16xf32>
    %625 = arith.negf %624 : vector<8x16xf32>
    %626 = math.exp %625 : vector<8x16xf32>
    %cst_166 = arith.constant 1.000000e+00 : f32
    %627 = vector.broadcast %cst_166 : f32 to vector<8x16xf32>
    %628 = arith.addf %627, %626 : vector<8x16xf32>
    %629 = arith.divf %627, %628 : vector<8x16xf32>
    %630 = vector.extract_strided_slice %608 {offsets = [0, 32], sizes = [8, 16], strides = [1, 1]} : vector<8x48xf32> to vector<8x16xf32>
    %631 = vector.extract_strided_slice %613 {offsets = [0, 32], sizes = [8, 16], strides = [1, 1]} : vector<8x48xf32> to vector<8x16xf32>
    %632 = arith.addf %631, %19 : vector<8x16xf32>
    %633 = arith.mulf %621, %632 : vector<8x16xf32>
    %634 = arith.addf %630, %633 : vector<8x16xf32>
    %635 = math.tanh %634 : vector<8x16xf32>
    %636 = arith.subf %611, %635 : vector<8x16xf32>
    %637 = arith.mulf %629, %636 : vector<8x16xf32>
    %638 = arith.addf %635, %637 : vector<8x16xf32>
    %639 = vector.extract_strided_slice %606 {offsets = [8, 48], sizes = [8, 48], strides = [1, 1]} : vector<16x96xf32> to vector<8x48xf32>
    %640 = vector.extract_strided_slice %610 {offsets = [0, 0], sizes = [8, 16], strides = [1, 1]} : vector<8x48xf32> to vector<8x16xf32>
    %641 = vector.extract_strided_slice %639 {offsets = [0, 0], sizes = [8, 16], strides = [1, 1]} : vector<8x48xf32> to vector<8x16xf32>
    %642 = arith.addf %640, %641 : vector<8x16xf32>
    %643 = arith.negf %642 : vector<8x16xf32>
    %644 = math.exp %643 : vector<8x16xf32>
    %cst_167 = arith.constant 1.000000e+00 : f32
    %645 = vector.broadcast %cst_167 : f32 to vector<8x16xf32>
    %646 = arith.addf %645, %644 : vector<8x16xf32>
    %647 = arith.divf %645, %646 : vector<8x16xf32>
    %648 = vector.extract_strided_slice %610 {offsets = [0, 16], sizes = [8, 16], strides = [1, 1]} : vector<8x48xf32> to vector<8x16xf32>
    %649 = vector.extract_strided_slice %639 {offsets = [0, 16], sizes = [8, 16], strides = [1, 1]} : vector<8x48xf32> to vector<8x16xf32>
    %650 = arith.addf %648, %649 : vector<8x16xf32>
    %651 = arith.negf %650 : vector<8x16xf32>
    %652 = math.exp %651 : vector<8x16xf32>
    %cst_168 = arith.constant 1.000000e+00 : f32
    %653 = vector.broadcast %cst_168 : f32 to vector<8x16xf32>
    %654 = arith.addf %653, %652 : vector<8x16xf32>
    %655 = arith.divf %653, %654 : vector<8x16xf32>
    %656 = vector.extract_strided_slice %610 {offsets = [0, 32], sizes = [8, 16], strides = [1, 1]} : vector<8x48xf32> to vector<8x16xf32>
    %657 = vector.extract_strided_slice %639 {offsets = [0, 32], sizes = [8, 16], strides = [1, 1]} : vector<8x48xf32> to vector<8x16xf32>
    %658 = arith.addf %657, %22 : vector<8x16xf32>
    %659 = arith.mulf %647, %658 : vector<8x16xf32>
    %660 = arith.addf %656, %659 : vector<8x16xf32>
    %661 = math.tanh %660 : vector<8x16xf32>
    %662 = arith.subf %612, %661 : vector<8x16xf32>
    %663 = arith.mulf %655, %662 : vector<8x16xf32>
    %664 = arith.addf %661, %663 : vector<8x16xf32>
    %665 = vector.broadcast %c7_i32_156 : i32 to vector<8x16xi32>
    %666 = arith.cmpi sgt, %2, %665 : vector<8x16xi32>
    %667 = vector.broadcast %599 : i32 to vector<8x16xi32>
    %668 = arith.cmpi sgt, %2, %667 : vector<8x16xi32>
    %669 = arith.select %666, %638, %611 : vector<8x16xi1>, vector<8x16xf32>
    %c0_169 = arith.constant 0 : index
    %c0_170 = arith.constant 0 : index
    %670 = vector.load %arg10[%c0_169, %c0_170] : memref<16x16xf32, #tpu.memory_space<vmem>>, vector<8x16xf32>
    tpu.vector_store %arg10[%c0_169, %c0_170], %669 {strides = array<i32>} : memref<16x16xf32, #tpu.memory_space<vmem>>, vector<8x16xf32>,
    %671 = arith.select %668, %664, %612 : vector<8x16xi1>, vector<8x16xf32>
    %c8_171 = arith.constant 8 : index
    %c0_172 = arith.constant 0 : index
    %672 = vector.load %arg10[%c8_171, %c0_172] : memref<16x16xf32, #tpu.memory_space<vmem>>, vector<8x16xf32>
    tpu.vector_store %arg10[%c8_171, %c0_172], %671 {strides = array<i32>} : memref<16x16xf32, #tpu.memory_space<vmem>>, vector<8x16xf32>,
    %cst_173 = arith.constant 0.000000e+00 : f32
    %673 = vector.broadcast %cst_173 : f32 to vector<8x16xf32>
    %674 = arith.select %666, %638, %673 : vector<8x16xi1>, vector<8x16xf32>
    %675 = arith.index_cast %601 : i32 to index
    %c0_174 = arith.constant 0 : index
    %676 = vector.load %arg8[%675, %c0_174] : memref<64x32xf32, #tpu.memory_space<vmem>>, vector<8x16xf32>
    tpu.vector_store %arg8[%675, %c0_174], %674 {strides = array<i32>} : memref<64x32xf32, #tpu.memory_space<vmem>>, vector<8x16xf32>,
    %cst_175 = arith.constant 0.000000e+00 : f32
    %677 = vector.broadcast %cst_175 : f32 to vector<8x16xf32>
    %678 = arith.select %668, %664, %677 : vector<8x16xi1>, vector<8x16xf32>
    %679 = arith.index_cast %603 : i32 to index
    %c16_176 = arith.constant 16 : index
    %680 = vector.load %arg8[%679, %c16_176] : memref<64x32xf32, #tpu.memory_space<vmem>>, vector<8x16xf32>
    tpu.vector_store %arg8[%679, %c16_176], %678 {strides = array<i32>} : memref<64x32xf32, #tpu.memory_space<vmem>>, vector<8x16xf32>,
    %c8_i32_177 = arith.constant 8 : i32
    %c0_178 = arith.constant 0 : index
    %c0_179 = arith.constant 0 : index
    %681 = vector.load %arg8[%c0_178, %c0_179] : memref<64x32xf32, #tpu.memory_space<vmem>>, vector<64x32xf32>
    %682 = arith.truncf %681 : vector<64x32xf32> to vector<64x32xbf16>
    %c1 = arith.constant 1 : index
    %c0_180 = arith.constant 0 : index
    %c0_181 = arith.constant 0 : index
    %683 = vector.load %arg3[%c1, %c0_180, %c0_181] : memref<2x32x96xbf16, #tpu.memory_space<vmem>>, vector<1x32x96xbf16>
    %684 = vector.shape_cast %683 : vector<1x32x96xbf16> to vector<32x96xbf16>
    %cst_182 = arith.constant dense<0.000000e+00> : vector<64x96xf32>
    %685 = tpu.matmul %682, %684, %cst_182 {dimension_numbers = #tpu.dot_dimension_numbers<[1], [0], [0], [1], [0, 0, 1, 1], [], []>} : vector<64x32xbf16>, vector<32x96xbf16>, vector<64x96xf32> -> vector<64x96xf32>
    %c1_183 = arith.constant 1 : index
    %c0_184 = arith.constant 0 : index
    %c0_185 = arith.constant 0 : index
    %686 = vector.load %arg4[%c1_183, %c0_184, %c0_185] : memref<2x1x96xf32, #tpu.memory_space<vmem>>, vector<1x1x96xf32>
    %687 = vector.shape_cast %686 : vector<1x1x96xf32> to vector<1x96xf32>
    %688 = vector.broadcast %687 : vector<1x96xf32> to vector<64x96xf32>
    %689 = arith.addf %685, %688 : vector<64x96xf32>
    %c0_186 = arith.constant 0 : index
    %c0_187 = arith.constant 0 : index
    %690 = vector.load %arg9[%c0_186, %c0_187] : memref<64x96xf32, #tpu.memory_space<vmem>>, vector<64x96xf32>
    tpu.vector_store %arg9[%c0_186, %c0_187], %689 {strides = array<i32>} : memref<64x96xf32, #tpu.memory_space<vmem>>, vector<64x96xf32>,
    %c1_188 = arith.constant 1 : index
    %c0_189 = arith.constant 0 : index
    %c0_190 = arith.constant 0 : index
    %691 = vector.load %arg5[%c1_188, %c0_189, %c0_190] : memref<2x16x96xbf16, #tpu.memory_space<vmem>>, vector<1x16x96xbf16>
    %692 = vector.shape_cast %691 : vector<1x16x96xbf16> to vector<16x96xbf16>
    %c1_191 = arith.constant 1 : index
    %c0_192 = arith.constant 0 : index
    %c0_193 = arith.constant 0 : index
    %693 = vector.load %arg6[%c1_191, %c0_192, %c0_193] : memref<2x1x32xf32, #tpu.memory_space<vmem>>, vector<1x1x32xf32>
    %694 = vector.shape_cast %693 : vector<1x1x32xf32> to vector<1x32xf32>
    %695 = vector.extract_strided_slice %694 {offsets = [0, 0], sizes = [1, 16], strides = [1, 1]} : vector<1x32xf32> to vector<1x16xf32>
    %696 = vector.shape_cast %695 : vector<1x16xf32> to vector<1x16xf32>
    %697 = vector.broadcast %696 : vector<1x16xf32> to vector<8x16xf32>
    %698 = vector.extract_strided_slice %694 {offsets = [0, 16], sizes = [1, 16], strides = [1, 1]} : vector<1x32xf32> to vector<1x16xf32>
    %699 = vector.shape_cast %698 : vector<1x16xf32> to vector<1x16xf32>
    %700 = vector.broadcast %699 : vector<1x16xf32> to vector<8x16xf32>
    %cst_194 = arith.constant 0.000000e+00 : f32
    %701 = vector.broadcast %cst_194 : f32 to vector<16x16xf32>
    %c0_195 = arith.constant 0 : index
    %c0_196 = arith.constant 0 : index
    %702 = vector.load %arg10[%c0_195, %c0_196] : memref<16x16xf32, #tpu.memory_space<vmem>>, vector<16x16xf32>
    tpu.vector_store %arg10[%c0_195, %c0_196], %701 {strides = array<i32>} : memref<16x16xf32, #tpu.memory_space<vmem>>, vector<16x16xf32>,
    %c0_i32_197 = arith.constant 0 : i32
    %c7_i32_198 = arith.constant 7 : i32
    %703 = arith.subi %c7_i32_198, %c0_i32_197 : i32
    %c8_i32_199 = arith.constant 8 : i32
    %704 = arith.muli %c0_i32_197, %c8_i32_199 : i32
    %705 = tpu.assume_multiple %704, 8 : i32
    %c8_i32_200 = arith.constant 8 : i32
    %706 = arith.muli %703, %c8_i32_200 : i32
    %707 = tpu.assume_multiple %706, 8 : i32
    %c0_201 = arith.constant 0 : index
    %c0_202 = arith.constant 0 : index
    %708 = vector.load %arg10[%c0_201, %c0_202] : memref<16x16xf32, #tpu.memory_space<vmem>>, vector<16x16xf32>
    %709 = arith.truncf %708 : vector<16x16xf32> to vector<16x16xbf16>
    %cst_203 = arith.constant dense<0.000000e+00> : vector<16x96xf32>
    %710 = tpu.matmul %709, %692, %cst_203 {dimension_numbers = #tpu.dot_dimension_numbers<[1], [0], [0], [1], [0, 0, 1, 1], [], []>} : vector<16x16xbf16>, vector<16x96xbf16>, vector<16x96xf32> -> vector<16x96xf32>
    %711 = arith.index_cast %705 : i32 to index
    %c0_204 = arith.constant 0 : index
    %712 = vector.load %arg9[%711, %c0_204] : memref<64x96xf32, #tpu.memory_space<vmem>>, vector<8x48xf32>
    %713 = arith.index_cast %707 : i32 to index
    %c48_205 = arith.constant 48 : index
    %714 = vector.load %arg9[%713, %c48_205] : memref<64x96xf32, #tpu.memory_space<vmem>>, vector<8x48xf32>
    %715 = vector.extract_strided_slice %708 {offsets = [0, 0], sizes = [8, 16], strides = [1, 1]} : vector<16x16xf32> to vector<8x16xf32>
    %716 = vector.extract_strided_slice %708 {offsets = [8, 0], sizes = [8, 16], strides = [1, 1]} : vector<16x16xf32> to vector<8x16xf32>
    %717 = vector.extract_strided_slice %710 {offsets = [0, 0], sizes = [8, 48], strides = [1, 1]} : vector<16x96xf32> to vector<8x48xf32>
    %718 = vector.extract_strided_slice %712 {offsets = [0, 0], sizes = [8, 16], strides = [1, 1]} : vector<8x48xf32> to vector<8x16xf32>
    %719 = vector.extract_strided_slice %717 {offsets = [0, 0], sizes = [8, 16], strides = [1, 1]} : vector<8x48xf32> to vector<8x16xf32>
    %720 = arith.addf %718, %719 : vector<8x16xf32>
    %721 = arith.negf %720 : vector<8x16xf32>
    %722 = math.exp %721 : vector<8x16xf32>
    %cst_206 = arith.constant 1.000000e+00 : f32
    %723 = vector.broadcast %cst_206 : f32 to vector<8x16xf32>
    %724 = arith.addf %723, %722 : vector<8x16xf32>
    %725 = arith.divf %723, %724 : vector<8x16xf32>
    %726 = vector.extract_strided_slice %712 {offsets = [0, 16], sizes = [8, 16], strides = [1, 1]} : vector<8x48xf32> to vector<8x16xf32>
    %727 = vector.extract_strided_slice %717 {offsets = [0, 16], sizes = [8, 16], strides = [1, 1]} : vector<8x48xf32> to vector<8x16xf32>
    %728 = arith.addf %726, %727 : vector<8x16xf32>
    %729 = arith.negf %728 : vector<8x16xf32>
    %730 = math.exp %729 : vector<8x16xf32>
    %cst_207 = arith.constant 1.000000e+00 : f32
    %731 = vector.broadcast %cst_207 : f32 to vector<8x16xf32>
    %732 = arith.addf %731, %730 : vector<8x16xf32>
    %733 = arith.divf %731, %732 : vector<8x16xf32>
    %734 = vector.extract_strided_slice %712 {offsets = [0, 32], sizes = [8, 16], strides = [1, 1]} : vector<8x48xf32> to vector<8x16xf32>
    %735 = vector.extract_strided_slice %717 {offsets = [0, 32], sizes = [8, 16], strides = [1, 1]} : vector<8x48xf32> to vector<8x16xf32>
    %736 = arith.addf %735, %697 : vector<8x16xf32>
    %737 = arith.mulf %725, %736 : vector<8x16xf32>
    %738 = arith.addf %734, %737 : vector<8x16xf32>
    %739 = math.tanh %738 : vector<8x16xf32>
    %740 = arith.subf %715, %739 : vector<8x16xf32>
    %741 = arith.mulf %733, %740 : vector<8x16xf32>
    %742 = arith.addf %739, %741 : vector<8x16xf32>
    %743 = vector.extract_strided_slice %710 {offsets = [8, 48], sizes = [8, 48], strides = [1, 1]} : vector<16x96xf32> to vector<8x48xf32>
    %744 = vector.extract_strided_slice %714 {offsets = [0, 0], sizes = [8, 16], strides = [1, 1]} : vector<8x48xf32> to vector<8x16xf32>
    %745 = vector.extract_strided_slice %743 {offsets = [0, 0], sizes = [8, 16], strides = [1, 1]} : vector<8x48xf32> to vector<8x16xf32>
    %746 = arith.addf %744, %745 : vector<8x16xf32>
    %747 = arith.negf %746 : vector<8x16xf32>
    %748 = math.exp %747 : vector<8x16xf32>
    %cst_208 = arith.constant 1.000000e+00 : f32
    %749 = vector.broadcast %cst_208 : f32 to vector<8x16xf32>
    %750 = arith.addf %749, %748 : vector<8x16xf32>
    %751 = arith.divf %749, %750 : vector<8x16xf32>
    %752 = vector.extract_strided_slice %714 {offsets = [0, 16], sizes = [8, 16], strides = [1, 1]} : vector<8x48xf32> to vector<8x16xf32>
    %753 = vector.extract_strided_slice %743 {offsets = [0, 16], sizes = [8, 16], strides = [1, 1]} : vector<8x48xf32> to vector<8x16xf32>
    %754 = arith.addf %752, %753 : vector<8x16xf32>
    %755 = arith.negf %754 : vector<8x16xf32>
    %756 = math.exp %755 : vector<8x16xf32>
    %cst_209 = arith.constant 1.000000e+00 : f32
    %757 = vector.broadcast %cst_209 : f32 to vector<8x16xf32>
    %758 = arith.addf %757, %756 : vector<8x16xf32>
    %759 = arith.divf %757, %758 : vector<8x16xf32>
    %760 = vector.extract_strided_slice %714 {offsets = [0, 32], sizes = [8, 16], strides = [1, 1]} : vector<8x48xf32> to vector<8x16xf32>
    %761 = vector.extract_strided_slice %743 {offsets = [0, 32], sizes = [8, 16], strides = [1, 1]} : vector<8x48xf32> to vector<8x16xf32>
    %762 = arith.addf %761, %700 : vector<8x16xf32>
    %763 = arith.mulf %751, %762 : vector<8x16xf32>
    %764 = arith.addf %760, %763 : vector<8x16xf32>
    %765 = math.tanh %764 : vector<8x16xf32>
    %766 = arith.subf %716, %765 : vector<8x16xf32>
    %767 = arith.mulf %759, %766 : vector<8x16xf32>
    %768 = arith.addf %765, %767 : vector<8x16xf32>
    %769 = vector.broadcast %c0_i32_197 : i32 to vector<8x16xi32>
    %770 = arith.cmpi sgt, %2, %769 : vector<8x16xi32>
    %771 = vector.broadcast %703 : i32 to vector<8x16xi32>
    %772 = arith.cmpi sgt, %2, %771 : vector<8x16xi32>
    %773 = arith.select %770, %742, %715 : vector<8x16xi1>, vector<8x16xf32>
    %c0_210 = arith.constant 0 : index
    %c0_211 = arith.constant 0 : index
    %774 = vector.load %arg10[%c0_210, %c0_211] : memref<16x16xf32, #tpu.memory_space<vmem>>, vector<8x16xf32>
    tpu.vector_store %arg10[%c0_210, %c0_211], %773 {strides = array<i32>} : memref<16x16xf32, #tpu.memory_space<vmem>>, vector<8x16xf32>,
    %775 = arith.select %772, %768, %716 : vector<8x16xi1>, vector<8x16xf32>
    %c8_212 = arith.constant 8 : index
    %c0_213 = arith.constant 0 : index
    %776 = vector.load %arg10[%c8_212, %c0_213] : memref<16x16xf32, #tpu.memory_space<vmem>>, vector<8x16xf32>
    tpu.vector_store %arg10[%c8_212, %c0_213], %775 {strides = array<i32>} : memref<16x16xf32, #tpu.memory_space<vmem>>, vector<8x16xf32>,
    %cst_214 = arith.constant 0.000000e+00 : f32
    %777 = vector.broadcast %cst_214 : f32 to vector<8x16xf32>
    %778 = arith.select %770, %742, %777 : vector<8x16xi1>, vector<8x16xf32>
    %779 = arith.index_cast %705 : i32 to index
    %c0_215 = arith.constant 0 : index
    %780 = vector.load %arg8[%779, %c0_215] : memref<64x32xf32, #tpu.memory_space<vmem>>, vector<8x16xf32>
    tpu.vector_store %arg8[%779, %c0_215], %778 {strides = array<i32>} : memref<64x32xf32, #tpu.memory_space<vmem>>, vector<8x16xf32>,
    %cst_216 = arith.constant 0.000000e+00 : f32
    %781 = vector.broadcast %cst_216 : f32 to vector<8x16xf32>
    %782 = arith.select %772, %768, %781 : vector<8x16xi1>, vector<8x16xf32>
    %783 = arith.index_cast %707 : i32 to index
    %c16_217 = arith.constant 16 : index
    %784 = vector.load %arg8[%783, %c16_217] : memref<64x32xf32, #tpu.memory_space<vmem>>, vector<8x16xf32>
    tpu.vector_store %arg8[%783, %c16_217], %782 {strides = array<i32>} : memref<64x32xf32, #tpu.memory_space<vmem>>, vector<8x16xf32>,
    %c1_i32_218 = arith.constant 1 : i32
    %c7_i32_219 = arith.constant 7 : i32
    %785 = arith.subi %c7_i32_219, %c1_i32_218 : i32
    %c8_i32_220 = arith.constant 8 : i32
    %786 = arith.muli %c1_i32_218, %c8_i32_220 : i32
    %787 = tpu.assume_multiple %786, 8 : i32
    %c8_i32_221 = arith.constant 8 : i32
    %788 = arith.muli %785, %c8_i32_221 : i32
    %789 = tpu.assume_multiple %788, 8 : i32
    %c0_222 = arith.constant 0 : index
    %c0_223 = arith.constant 0 : index
    %790 = vector.load %arg10[%c0_222, %c0_223] : memref<16x16xf32, #tpu.memory_space<vmem>>, vector<16x16xf32>
    %791 = arith.truncf %790 : vector<16x16xf32> to vector<16x16xbf16>
    %cst_224 = arith.constant dense<0.000000e+00> : vector<16x96xf32>
    %792 = tpu.matmul %791, %692, %cst_224 {dimension_numbers = #tpu.dot_dimension_numbers<[1], [0], [0], [1], [0, 0, 1, 1], [], []>} : vector<16x16xbf16>, vector<16x96xbf16>, vector<16x96xf32> -> vector<16x96xf32>
    %793 = arith.index_cast %787 : i32 to index
    %c0_225 = arith.constant 0 : index
    %794 = vector.load %arg9[%793, %c0_225] : memref<64x96xf32, #tpu.memory_space<vmem>>, vector<8x48xf32>
    %795 = arith.index_cast %789 : i32 to index
    %c48_226 = arith.constant 48 : index
    %796 = vector.load %arg9[%795, %c48_226] : memref<64x96xf32, #tpu.memory_space<vmem>>, vector<8x48xf32>
    %797 = vector.extract_strided_slice %790 {offsets = [0, 0], sizes = [8, 16], strides = [1, 1]} : vector<16x16xf32> to vector<8x16xf32>
    %798 = vector.extract_strided_slice %790 {offsets = [8, 0], sizes = [8, 16], strides = [1, 1]} : vector<16x16xf32> to vector<8x16xf32>
    %799 = vector.extract_strided_slice %792 {offsets = [0, 0], sizes = [8, 48], strides = [1, 1]} : vector<16x96xf32> to vector<8x48xf32>
    %800 = vector.extract_strided_slice %794 {offsets = [0, 0], sizes = [8, 16], strides = [1, 1]} : vector<8x48xf32> to vector<8x16xf32>
    %801 = vector.extract_strided_slice %799 {offsets = [0, 0], sizes = [8, 16], strides = [1, 1]} : vector<8x48xf32> to vector<8x16xf32>
    %802 = arith.addf %800, %801 : vector<8x16xf32>
    %803 = arith.negf %802 : vector<8x16xf32>
    %804 = math.exp %803 : vector<8x16xf32>
    %cst_227 = arith.constant 1.000000e+00 : f32
    %805 = vector.broadcast %cst_227 : f32 to vector<8x16xf32>
    %806 = arith.addf %805, %804 : vector<8x16xf32>
    %807 = arith.divf %805, %806 : vector<8x16xf32>
    %808 = vector.extract_strided_slice %794 {offsets = [0, 16], sizes = [8, 16], strides = [1, 1]} : vector<8x48xf32> to vector<8x16xf32>
    %809 = vector.extract_strided_slice %799 {offsets = [0, 16], sizes = [8, 16], strides = [1, 1]} : vector<8x48xf32> to vector<8x16xf32>
    %810 = arith.addf %808, %809 : vector<8x16xf32>
    %811 = arith.negf %810 : vector<8x16xf32>
    %812 = math.exp %811 : vector<8x16xf32>
    %cst_228 = arith.constant 1.000000e+00 : f32
    %813 = vector.broadcast %cst_228 : f32 to vector<8x16xf32>
    %814 = arith.addf %813, %812 : vector<8x16xf32>
    %815 = arith.divf %813, %814 : vector<8x16xf32>
    %816 = vector.extract_strided_slice %794 {offsets = [0, 32], sizes = [8, 16], strides = [1, 1]} : vector<8x48xf32> to vector<8x16xf32>
    %817 = vector.extract_strided_slice %799 {offsets = [0, 32], sizes = [8, 16], strides = [1, 1]} : vector<8x48xf32> to vector<8x16xf32>
    %818 = arith.addf %817, %697 : vector<8x16xf32>
    %819 = arith.mulf %807, %818 : vector<8x16xf32>
    %820 = arith.addf %816, %819 : vector<8x16xf32>
    %821 = math.tanh %820 : vector<8x16xf32>
    %822 = arith.subf %797, %821 : vector<8x16xf32>
    %823 = arith.mulf %815, %822 : vector<8x16xf32>
    %824 = arith.addf %821, %823 : vector<8x16xf32>
    %825 = vector.extract_strided_slice %792 {offsets = [8, 48], sizes = [8, 48], strides = [1, 1]} : vector<16x96xf32> to vector<8x48xf32>
    %826 = vector.extract_strided_slice %796 {offsets = [0, 0], sizes = [8, 16], strides = [1, 1]} : vector<8x48xf32> to vector<8x16xf32>
    %827 = vector.extract_strided_slice %825 {offsets = [0, 0], sizes = [8, 16], strides = [1, 1]} : vector<8x48xf32> to vector<8x16xf32>
    %828 = arith.addf %826, %827 : vector<8x16xf32>
    %829 = arith.negf %828 : vector<8x16xf32>
    %830 = math.exp %829 : vector<8x16xf32>
    %cst_229 = arith.constant 1.000000e+00 : f32
    %831 = vector.broadcast %cst_229 : f32 to vector<8x16xf32>
    %832 = arith.addf %831, %830 : vector<8x16xf32>
    %833 = arith.divf %831, %832 : vector<8x16xf32>
    %834 = vector.extract_strided_slice %796 {offsets = [0, 16], sizes = [8, 16], strides = [1, 1]} : vector<8x48xf32> to vector<8x16xf32>
    %835 = vector.extract_strided_slice %825 {offsets = [0, 16], sizes = [8, 16], strides = [1, 1]} : vector<8x48xf32> to vector<8x16xf32>
    %836 = arith.addf %834, %835 : vector<8x16xf32>
    %837 = arith.negf %836 : vector<8x16xf32>
    %838 = math.exp %837 : vector<8x16xf32>
    %cst_230 = arith.constant 1.000000e+00 : f32
    %839 = vector.broadcast %cst_230 : f32 to vector<8x16xf32>
    %840 = arith.addf %839, %838 : vector<8x16xf32>
    %841 = arith.divf %839, %840 : vector<8x16xf32>
    %842 = vector.extract_strided_slice %796 {offsets = [0, 32], sizes = [8, 16], strides = [1, 1]} : vector<8x48xf32> to vector<8x16xf32>
    %843 = vector.extract_strided_slice %825 {offsets = [0, 32], sizes = [8, 16], strides = [1, 1]} : vector<8x48xf32> to vector<8x16xf32>
    %844 = arith.addf %843, %700 : vector<8x16xf32>
    %845 = arith.mulf %833, %844 : vector<8x16xf32>
    %846 = arith.addf %842, %845 : vector<8x16xf32>
    %847 = math.tanh %846 : vector<8x16xf32>
    %848 = arith.subf %798, %847 : vector<8x16xf32>
    %849 = arith.mulf %841, %848 : vector<8x16xf32>
    %850 = arith.addf %847, %849 : vector<8x16xf32>
    %851 = vector.broadcast %c1_i32_218 : i32 to vector<8x16xi32>
    %852 = arith.cmpi sgt, %2, %851 : vector<8x16xi32>
    %853 = vector.broadcast %785 : i32 to vector<8x16xi32>
    %854 = arith.cmpi sgt, %2, %853 : vector<8x16xi32>
    %855 = arith.select %852, %824, %797 : vector<8x16xi1>, vector<8x16xf32>
    %c0_231 = arith.constant 0 : index
    %c0_232 = arith.constant 0 : index
    %856 = vector.load %arg10[%c0_231, %c0_232] : memref<16x16xf32, #tpu.memory_space<vmem>>, vector<8x16xf32>
    tpu.vector_store %arg10[%c0_231, %c0_232], %855 {strides = array<i32>} : memref<16x16xf32, #tpu.memory_space<vmem>>, vector<8x16xf32>,
    %857 = arith.select %854, %850, %798 : vector<8x16xi1>, vector<8x16xf32>
    %c8_233 = arith.constant 8 : index
    %c0_234 = arith.constant 0 : index
    %858 = vector.load %arg10[%c8_233, %c0_234] : memref<16x16xf32, #tpu.memory_space<vmem>>, vector<8x16xf32>
    tpu.vector_store %arg10[%c8_233, %c0_234], %857 {strides = array<i32>} : memref<16x16xf32, #tpu.memory_space<vmem>>, vector<8x16xf32>,
    %cst_235 = arith.constant 0.000000e+00 : f32
    %859 = vector.broadcast %cst_235 : f32 to vector<8x16xf32>
    %860 = arith.select %852, %824, %859 : vector<8x16xi1>, vector<8x16xf32>
    %861 = arith.index_cast %787 : i32 to index
    %c0_236 = arith.constant 0 : index
    %862 = vector.load %arg8[%861, %c0_236] : memref<64x32xf32, #tpu.memory_space<vmem>>, vector<8x16xf32>
    tpu.vector_store %arg8[%861, %c0_236], %860 {strides = array<i32>} : memref<64x32xf32, #tpu.memory_space<vmem>>, vector<8x16xf32>,
    %cst_237 = arith.constant 0.000000e+00 : f32
    %863 = vector.broadcast %cst_237 : f32 to vector<8x16xf32>
    %864 = arith.select %854, %850, %863 : vector<8x16xi1>, vector<8x16xf32>
    %865 = arith.index_cast %789 : i32 to index
    %c16_238 = arith.constant 16 : index
    %866 = vector.load %arg8[%865, %c16_238] : memref<64x32xf32, #tpu.memory_space<vmem>>, vector<8x16xf32>
    tpu.vector_store %arg8[%865, %c16_238], %864 {strides = array<i32>} : memref<64x32xf32, #tpu.memory_space<vmem>>, vector<8x16xf32>,
    %c2_i32_239 = arith.constant 2 : i32
    %c7_i32_240 = arith.constant 7 : i32
    %867 = arith.subi %c7_i32_240, %c2_i32_239 : i32
    %c8_i32_241 = arith.constant 8 : i32
    %868 = arith.muli %c2_i32_239, %c8_i32_241 : i32
    %869 = tpu.assume_multiple %868, 8 : i32
    %c8_i32_242 = arith.constant 8 : i32
    %870 = arith.muli %867, %c8_i32_242 : i32
    %871 = tpu.assume_multiple %870, 8 : i32
    %c0_243 = arith.constant 0 : index
    %c0_244 = arith.constant 0 : index
    %872 = vector.load %arg10[%c0_243, %c0_244] : memref<16x16xf32, #tpu.memory_space<vmem>>, vector<16x16xf32>
    %873 = arith.truncf %872 : vector<16x16xf32> to vector<16x16xbf16>
    %cst_245 = arith.constant dense<0.000000e+00> : vector<16x96xf32>
    %874 = tpu.matmul %873, %692, %cst_245 {dimension_numbers = #tpu.dot_dimension_numbers<[1], [0], [0], [1], [0, 0, 1, 1], [], []>} : vector<16x16xbf16>, vector<16x96xbf16>, vector<16x96xf32> -> vector<16x96xf32>
    %875 = arith.index_cast %869 : i32 to index
    %c0_246 = arith.constant 0 : index
    %876 = vector.load %arg9[%875, %c0_246] : memref<64x96xf32, #tpu.memory_space<vmem>>, vector<8x48xf32>
    %877 = arith.index_cast %871 : i32 to index
    %c48_247 = arith.constant 48 : index
    %878 = vector.load %arg9[%877, %c48_247] : memref<64x96xf32, #tpu.memory_space<vmem>>, vector<8x48xf32>
    %879 = vector.extract_strided_slice %872 {offsets = [0, 0], sizes = [8, 16], strides = [1, 1]} : vector<16x16xf32> to vector<8x16xf32>
    %880 = vector.extract_strided_slice %872 {offsets = [8, 0], sizes = [8, 16], strides = [1, 1]} : vector<16x16xf32> to vector<8x16xf32>
    %881 = vector.extract_strided_slice %874 {offsets = [0, 0], sizes = [8, 48], strides = [1, 1]} : vector<16x96xf32> to vector<8x48xf32>
    %882 = vector.extract_strided_slice %876 {offsets = [0, 0], sizes = [8, 16], strides = [1, 1]} : vector<8x48xf32> to vector<8x16xf32>
    %883 = vector.extract_strided_slice %881 {offsets = [0, 0], sizes = [8, 16], strides = [1, 1]} : vector<8x48xf32> to vector<8x16xf32>
    %884 = arith.addf %882, %883 : vector<8x16xf32>
    %885 = arith.negf %884 : vector<8x16xf32>
    %886 = math.exp %885 : vector<8x16xf32>
    %cst_248 = arith.constant 1.000000e+00 : f32
    %887 = vector.broadcast %cst_248 : f32 to vector<8x16xf32>
    %888 = arith.addf %887, %886 : vector<8x16xf32>
    %889 = arith.divf %887, %888 : vector<8x16xf32>
    %890 = vector.extract_strided_slice %876 {offsets = [0, 16], sizes = [8, 16], strides = [1, 1]} : vector<8x48xf32> to vector<8x16xf32>
    %891 = vector.extract_strided_slice %881 {offsets = [0, 16], sizes = [8, 16], strides = [1, 1]} : vector<8x48xf32> to vector<8x16xf32>
    %892 = arith.addf %890, %891 : vector<8x16xf32>
    %893 = arith.negf %892 : vector<8x16xf32>
    %894 = math.exp %893 : vector<8x16xf32>
    %cst_249 = arith.constant 1.000000e+00 : f32
    %895 = vector.broadcast %cst_249 : f32 to vector<8x16xf32>
    %896 = arith.addf %895, %894 : vector<8x16xf32>
    %897 = arith.divf %895, %896 : vector<8x16xf32>
    %898 = vector.extract_strided_slice %876 {offsets = [0, 32], sizes = [8, 16], strides = [1, 1]} : vector<8x48xf32> to vector<8x16xf32>
    %899 = vector.extract_strided_slice %881 {offsets = [0, 32], sizes = [8, 16], strides = [1, 1]} : vector<8x48xf32> to vector<8x16xf32>
    %900 = arith.addf %899, %697 : vector<8x16xf32>
    %901 = arith.mulf %889, %900 : vector<8x16xf32>
    %902 = arith.addf %898, %901 : vector<8x16xf32>
    %903 = math.tanh %902 : vector<8x16xf32>
    %904 = arith.subf %879, %903 : vector<8x16xf32>
    %905 = arith.mulf %897, %904 : vector<8x16xf32>
    %906 = arith.addf %903, %905 : vector<8x16xf32>
    %907 = vector.extract_strided_slice %874 {offsets = [8, 48], sizes = [8, 48], strides = [1, 1]} : vector<16x96xf32> to vector<8x48xf32>
    %908 = vector.extract_strided_slice %878 {offsets = [0, 0], sizes = [8, 16], strides = [1, 1]} : vector<8x48xf32> to vector<8x16xf32>
    %909 = vector.extract_strided_slice %907 {offsets = [0, 0], sizes = [8, 16], strides = [1, 1]} : vector<8x48xf32> to vector<8x16xf32>
    %910 = arith.addf %908, %909 : vector<8x16xf32>
    %911 = arith.negf %910 : vector<8x16xf32>
    %912 = math.exp %911 : vector<8x16xf32>
    %cst_250 = arith.constant 1.000000e+00 : f32
    %913 = vector.broadcast %cst_250 : f32 to vector<8x16xf32>
    %914 = arith.addf %913, %912 : vector<8x16xf32>
    %915 = arith.divf %913, %914 : vector<8x16xf32>
    %916 = vector.extract_strided_slice %878 {offsets = [0, 16], sizes = [8, 16], strides = [1, 1]} : vector<8x48xf32> to vector<8x16xf32>
    %917 = vector.extract_strided_slice %907 {offsets = [0, 16], sizes = [8, 16], strides = [1, 1]} : vector<8x48xf32> to vector<8x16xf32>
    %918 = arith.addf %916, %917 : vector<8x16xf32>
    %919 = arith.negf %918 : vector<8x16xf32>
    %920 = math.exp %919 : vector<8x16xf32>
    %cst_251 = arith.constant 1.000000e+00 : f32
    %921 = vector.broadcast %cst_251 : f32 to vector<8x16xf32>
    %922 = arith.addf %921, %920 : vector<8x16xf32>
    %923 = arith.divf %921, %922 : vector<8x16xf32>
    %924 = vector.extract_strided_slice %878 {offsets = [0, 32], sizes = [8, 16], strides = [1, 1]} : vector<8x48xf32> to vector<8x16xf32>
    %925 = vector.extract_strided_slice %907 {offsets = [0, 32], sizes = [8, 16], strides = [1, 1]} : vector<8x48xf32> to vector<8x16xf32>
    %926 = arith.addf %925, %700 : vector<8x16xf32>
    %927 = arith.mulf %915, %926 : vector<8x16xf32>
    %928 = arith.addf %924, %927 : vector<8x16xf32>
    %929 = math.tanh %928 : vector<8x16xf32>
    %930 = arith.subf %880, %929 : vector<8x16xf32>
    %931 = arith.mulf %923, %930 : vector<8x16xf32>
    %932 = arith.addf %929, %931 : vector<8x16xf32>
    %933 = vector.broadcast %c2_i32_239 : i32 to vector<8x16xi32>
    %934 = arith.cmpi sgt, %2, %933 : vector<8x16xi32>
    %935 = vector.broadcast %867 : i32 to vector<8x16xi32>
    %936 = arith.cmpi sgt, %2, %935 : vector<8x16xi32>
    %937 = arith.select %934, %906, %879 : vector<8x16xi1>, vector<8x16xf32>
    %c0_252 = arith.constant 0 : index
    %c0_253 = arith.constant 0 : index
    %938 = vector.load %arg10[%c0_252, %c0_253] : memref<16x16xf32, #tpu.memory_space<vmem>>, vector<8x16xf32>
    tpu.vector_store %arg10[%c0_252, %c0_253], %937 {strides = array<i32>} : memref<16x16xf32, #tpu.memory_space<vmem>>, vector<8x16xf32>,
    %939 = arith.select %936, %932, %880 : vector<8x16xi1>, vector<8x16xf32>
    %c8_254 = arith.constant 8 : index
    %c0_255 = arith.constant 0 : index
    %940 = vector.load %arg10[%c8_254, %c0_255] : memref<16x16xf32, #tpu.memory_space<vmem>>, vector<8x16xf32>
    tpu.vector_store %arg10[%c8_254, %c0_255], %939 {strides = array<i32>} : memref<16x16xf32, #tpu.memory_space<vmem>>, vector<8x16xf32>,
    %cst_256 = arith.constant 0.000000e+00 : f32
    %941 = vector.broadcast %cst_256 : f32 to vector<8x16xf32>
    %942 = arith.select %934, %906, %941 : vector<8x16xi1>, vector<8x16xf32>
    %943 = arith.index_cast %869 : i32 to index
    %c0_257 = arith.constant 0 : index
    %944 = vector.load %arg8[%943, %c0_257] : memref<64x32xf32, #tpu.memory_space<vmem>>, vector<8x16xf32>
    tpu.vector_store %arg8[%943, %c0_257], %942 {strides = array<i32>} : memref<64x32xf32, #tpu.memory_space<vmem>>, vector<8x16xf32>,
    %cst_258 = arith.constant 0.000000e+00 : f32
    %945 = vector.broadcast %cst_258 : f32 to vector<8x16xf32>
    %946 = arith.select %936, %932, %945 : vector<8x16xi1>, vector<8x16xf32>
    %947 = arith.index_cast %871 : i32 to index
    %c16_259 = arith.constant 16 : index
    %948 = vector.load %arg8[%947, %c16_259] : memref<64x32xf32, #tpu.memory_space<vmem>>, vector<8x16xf32>
    tpu.vector_store %arg8[%947, %c16_259], %946 {strides = array<i32>} : memref<64x32xf32, #tpu.memory_space<vmem>>, vector<8x16xf32>,
    %c3_i32_260 = arith.constant 3 : i32
    %c7_i32_261 = arith.constant 7 : i32
    %949 = arith.subi %c7_i32_261, %c3_i32_260 : i32
    %c8_i32_262 = arith.constant 8 : i32
    %950 = arith.muli %c3_i32_260, %c8_i32_262 : i32
    %951 = tpu.assume_multiple %950, 8 : i32
    %c8_i32_263 = arith.constant 8 : i32
    %952 = arith.muli %949, %c8_i32_263 : i32
    %953 = tpu.assume_multiple %952, 8 : i32
    %c0_264 = arith.constant 0 : index
    %c0_265 = arith.constant 0 : index
    %954 = vector.load %arg10[%c0_264, %c0_265] : memref<16x16xf32, #tpu.memory_space<vmem>>, vector<16x16xf32>
    %955 = arith.truncf %954 : vector<16x16xf32> to vector<16x16xbf16>
    %cst_266 = arith.constant dense<0.000000e+00> : vector<16x96xf32>
    %956 = tpu.matmul %955, %692, %cst_266 {dimension_numbers = #tpu.dot_dimension_numbers<[1], [0], [0], [1], [0, 0, 1, 1], [], []>} : vector<16x16xbf16>, vector<16x96xbf16>, vector<16x96xf32> -> vector<16x96xf32>
    %957 = arith.index_cast %951 : i32 to index
    %c0_267 = arith.constant 0 : index
    %958 = vector.load %arg9[%957, %c0_267] : memref<64x96xf32, #tpu.memory_space<vmem>>, vector<8x48xf32>
    %959 = arith.index_cast %953 : i32 to index
    %c48_268 = arith.constant 48 : index
    %960 = vector.load %arg9[%959, %c48_268] : memref<64x96xf32, #tpu.memory_space<vmem>>, vector<8x48xf32>
    %961 = vector.extract_strided_slice %954 {offsets = [0, 0], sizes = [8, 16], strides = [1, 1]} : vector<16x16xf32> to vector<8x16xf32>
    %962 = vector.extract_strided_slice %954 {offsets = [8, 0], sizes = [8, 16], strides = [1, 1]} : vector<16x16xf32> to vector<8x16xf32>
    %963 = vector.extract_strided_slice %956 {offsets = [0, 0], sizes = [8, 48], strides = [1, 1]} : vector<16x96xf32> to vector<8x48xf32>
    %964 = vector.extract_strided_slice %958 {offsets = [0, 0], sizes = [8, 16], strides = [1, 1]} : vector<8x48xf32> to vector<8x16xf32>
    %965 = vector.extract_strided_slice %963 {offsets = [0, 0], sizes = [8, 16], strides = [1, 1]} : vector<8x48xf32> to vector<8x16xf32>
    %966 = arith.addf %964, %965 : vector<8x16xf32>
    %967 = arith.negf %966 : vector<8x16xf32>
    %968 = math.exp %967 : vector<8x16xf32>
    %cst_269 = arith.constant 1.000000e+00 : f32
    %969 = vector.broadcast %cst_269 : f32 to vector<8x16xf32>
    %970 = arith.addf %969, %968 : vector<8x16xf32>
    %971 = arith.divf %969, %970 : vector<8x16xf32>
    %972 = vector.extract_strided_slice %958 {offsets = [0, 16], sizes = [8, 16], strides = [1, 1]} : vector<8x48xf32> to vector<8x16xf32>
    %973 = vector.extract_strided_slice %963 {offsets = [0, 16], sizes = [8, 16], strides = [1, 1]} : vector<8x48xf32> to vector<8x16xf32>
    %974 = arith.addf %972, %973 : vector<8x16xf32>
    %975 = arith.negf %974 : vector<8x16xf32>
    %976 = math.exp %975 : vector<8x16xf32>
    %cst_270 = arith.constant 1.000000e+00 : f32
    %977 = vector.broadcast %cst_270 : f32 to vector<8x16xf32>
    %978 = arith.addf %977, %976 : vector<8x16xf32>
    %979 = arith.divf %977, %978 : vector<8x16xf32>
    %980 = vector.extract_strided_slice %958 {offsets = [0, 32], sizes = [8, 16], strides = [1, 1]} : vector<8x48xf32> to vector<8x16xf32>
    %981 = vector.extract_strided_slice %963 {offsets = [0, 32], sizes = [8, 16], strides = [1, 1]} : vector<8x48xf32> to vector<8x16xf32>
    %982 = arith.addf %981, %697 : vector<8x16xf32>
    %983 = arith.mulf %971, %982 : vector<8x16xf32>
    %984 = arith.addf %980, %983 : vector<8x16xf32>
    %985 = math.tanh %984 : vector<8x16xf32>
    %986 = arith.subf %961, %985 : vector<8x16xf32>
    %987 = arith.mulf %979, %986 : vector<8x16xf32>
    %988 = arith.addf %985, %987 : vector<8x16xf32>
    %989 = vector.extract_strided_slice %956 {offsets = [8, 48], sizes = [8, 48], strides = [1, 1]} : vector<16x96xf32> to vector<8x48xf32>
    %990 = vector.extract_strided_slice %960 {offsets = [0, 0], sizes = [8, 16], strides = [1, 1]} : vector<8x48xf32> to vector<8x16xf32>
    %991 = vector.extract_strided_slice %989 {offsets = [0, 0], sizes = [8, 16], strides = [1, 1]} : vector<8x48xf32> to vector<8x16xf32>
    %992 = arith.addf %990, %991 : vector<8x16xf32>
    %993 = arith.negf %992 : vector<8x16xf32>
    %994 = math.exp %993 : vector<8x16xf32>
    %cst_271 = arith.constant 1.000000e+00 : f32
    %995 = vector.broadcast %cst_271 : f32 to vector<8x16xf32>
    %996 = arith.addf %995, %994 : vector<8x16xf32>
    %997 = arith.divf %995, %996 : vector<8x16xf32>
    %998 = vector.extract_strided_slice %960 {offsets = [0, 16], sizes = [8, 16], strides = [1, 1]} : vector<8x48xf32> to vector<8x16xf32>
    %999 = vector.extract_strided_slice %989 {offsets = [0, 16], sizes = [8, 16], strides = [1, 1]} : vector<8x48xf32> to vector<8x16xf32>
    %1000 = arith.addf %998, %999 : vector<8x16xf32>
    %1001 = arith.negf %1000 : vector<8x16xf32>
    %1002 = math.exp %1001 : vector<8x16xf32>
    %cst_272 = arith.constant 1.000000e+00 : f32
    %1003 = vector.broadcast %cst_272 : f32 to vector<8x16xf32>
    %1004 = arith.addf %1003, %1002 : vector<8x16xf32>
    %1005 = arith.divf %1003, %1004 : vector<8x16xf32>
    %1006 = vector.extract_strided_slice %960 {offsets = [0, 32], sizes = [8, 16], strides = [1, 1]} : vector<8x48xf32> to vector<8x16xf32>
    %1007 = vector.extract_strided_slice %989 {offsets = [0, 32], sizes = [8, 16], strides = [1, 1]} : vector<8x48xf32> to vector<8x16xf32>
    %1008 = arith.addf %1007, %700 : vector<8x16xf32>
    %1009 = arith.mulf %997, %1008 : vector<8x16xf32>
    %1010 = arith.addf %1006, %1009 : vector<8x16xf32>
    %1011 = math.tanh %1010 : vector<8x16xf32>
    %1012 = arith.subf %962, %1011 : vector<8x16xf32>
    %1013 = arith.mulf %1005, %1012 : vector<8x16xf32>
    %1014 = arith.addf %1011, %1013 : vector<8x16xf32>
    %1015 = vector.broadcast %c3_i32_260 : i32 to vector<8x16xi32>
    %1016 = arith.cmpi sgt, %2, %1015 : vector<8x16xi32>
    %1017 = vector.broadcast %949 : i32 to vector<8x16xi32>
    %1018 = arith.cmpi sgt, %2, %1017 : vector<8x16xi32>
    %1019 = arith.select %1016, %988, %961 : vector<8x16xi1>, vector<8x16xf32>
    %c0_273 = arith.constant 0 : index
    %c0_274 = arith.constant 0 : index
    %1020 = vector.load %arg10[%c0_273, %c0_274] : memref<16x16xf32, #tpu.memory_space<vmem>>, vector<8x16xf32>
    tpu.vector_store %arg10[%c0_273, %c0_274], %1019 {strides = array<i32>} : memref<16x16xf32, #tpu.memory_space<vmem>>, vector<8x16xf32>,
    %1021 = arith.select %1018, %1014, %962 : vector<8x16xi1>, vector<8x16xf32>
    %c8_275 = arith.constant 8 : index
    %c0_276 = arith.constant 0 : index
    %1022 = vector.load %arg10[%c8_275, %c0_276] : memref<16x16xf32, #tpu.memory_space<vmem>>, vector<8x16xf32>
    tpu.vector_store %arg10[%c8_275, %c0_276], %1021 {strides = array<i32>} : memref<16x16xf32, #tpu.memory_space<vmem>>, vector<8x16xf32>,
    %cst_277 = arith.constant 0.000000e+00 : f32
    %1023 = vector.broadcast %cst_277 : f32 to vector<8x16xf32>
    %1024 = arith.select %1016, %988, %1023 : vector<8x16xi1>, vector<8x16xf32>
    %1025 = arith.index_cast %951 : i32 to index
    %c0_278 = arith.constant 0 : index
    %1026 = vector.load %arg8[%1025, %c0_278] : memref<64x32xf32, #tpu.memory_space<vmem>>, vector<8x16xf32>
    tpu.vector_store %arg8[%1025, %c0_278], %1024 {strides = array<i32>} : memref<64x32xf32, #tpu.memory_space<vmem>>, vector<8x16xf32>,
    %cst_279 = arith.constant 0.000000e+00 : f32
    %1027 = vector.broadcast %cst_279 : f32 to vector<8x16xf32>
    %1028 = arith.select %1018, %1014, %1027 : vector<8x16xi1>, vector<8x16xf32>
    %1029 = arith.index_cast %953 : i32 to index
    %c16_280 = arith.constant 16 : index
    %1030 = vector.load %arg8[%1029, %c16_280] : memref<64x32xf32, #tpu.memory_space<vmem>>, vector<8x16xf32>
    tpu.vector_store %arg8[%1029, %c16_280], %1028 {strides = array<i32>} : memref<64x32xf32, #tpu.memory_space<vmem>>, vector<8x16xf32>,
    %c4_i32_281 = arith.constant 4 : i32
    %c7_i32_282 = arith.constant 7 : i32
    %1031 = arith.subi %c7_i32_282, %c4_i32_281 : i32
    %c8_i32_283 = arith.constant 8 : i32
    %1032 = arith.muli %c4_i32_281, %c8_i32_283 : i32
    %1033 = tpu.assume_multiple %1032, 8 : i32
    %c8_i32_284 = arith.constant 8 : i32
    %1034 = arith.muli %1031, %c8_i32_284 : i32
    %1035 = tpu.assume_multiple %1034, 8 : i32
    %c0_285 = arith.constant 0 : index
    %c0_286 = arith.constant 0 : index
    %1036 = vector.load %arg10[%c0_285, %c0_286] : memref<16x16xf32, #tpu.memory_space<vmem>>, vector<16x16xf32>
    %1037 = arith.truncf %1036 : vector<16x16xf32> to vector<16x16xbf16>
    %cst_287 = arith.constant dense<0.000000e+00> : vector<16x96xf32>
    %1038 = tpu.matmul %1037, %692, %cst_287 {dimension_numbers = #tpu.dot_dimension_numbers<[1], [0], [0], [1], [0, 0, 1, 1], [], []>} : vector<16x16xbf16>, vector<16x96xbf16>, vector<16x96xf32> -> vector<16x96xf32>
    %1039 = arith.index_cast %1033 : i32 to index
    %c0_288 = arith.constant 0 : index
    %1040 = vector.load %arg9[%1039, %c0_288] : memref<64x96xf32, #tpu.memory_space<vmem>>, vector<8x48xf32>
    %1041 = arith.index_cast %1035 : i32 to index
    %c48_289 = arith.constant 48 : index
    %1042 = vector.load %arg9[%1041, %c48_289] : memref<64x96xf32, #tpu.memory_space<vmem>>, vector<8x48xf32>
    %1043 = vector.extract_strided_slice %1036 {offsets = [0, 0], sizes = [8, 16], strides = [1, 1]} : vector<16x16xf32> to vector<8x16xf32>
    %1044 = vector.extract_strided_slice %1036 {offsets = [8, 0], sizes = [8, 16], strides = [1, 1]} : vector<16x16xf32> to vector<8x16xf32>
    %1045 = vector.extract_strided_slice %1038 {offsets = [0, 0], sizes = [8, 48], strides = [1, 1]} : vector<16x96xf32> to vector<8x48xf32>
    %1046 = vector.extract_strided_slice %1040 {offsets = [0, 0], sizes = [8, 16], strides = [1, 1]} : vector<8x48xf32> to vector<8x16xf32>
    %1047 = vector.extract_strided_slice %1045 {offsets = [0, 0], sizes = [8, 16], strides = [1, 1]} : vector<8x48xf32> to vector<8x16xf32>
    %1048 = arith.addf %1046, %1047 : vector<8x16xf32>
    %1049 = arith.negf %1048 : vector<8x16xf32>
    %1050 = math.exp %1049 : vector<8x16xf32>
    %cst_290 = arith.constant 1.000000e+00 : f32
    %1051 = vector.broadcast %cst_290 : f32 to vector<8x16xf32>
    %1052 = arith.addf %1051, %1050 : vector<8x16xf32>
    %1053 = arith.divf %1051, %1052 : vector<8x16xf32>
    %1054 = vector.extract_strided_slice %1040 {offsets = [0, 16], sizes = [8, 16], strides = [1, 1]} : vector<8x48xf32> to vector<8x16xf32>
    %1055 = vector.extract_strided_slice %1045 {offsets = [0, 16], sizes = [8, 16], strides = [1, 1]} : vector<8x48xf32> to vector<8x16xf32>
    %1056 = arith.addf %1054, %1055 : vector<8x16xf32>
    %1057 = arith.negf %1056 : vector<8x16xf32>
    %1058 = math.exp %1057 : vector<8x16xf32>
    %cst_291 = arith.constant 1.000000e+00 : f32
    %1059 = vector.broadcast %cst_291 : f32 to vector<8x16xf32>
    %1060 = arith.addf %1059, %1058 : vector<8x16xf32>
    %1061 = arith.divf %1059, %1060 : vector<8x16xf32>
    %1062 = vector.extract_strided_slice %1040 {offsets = [0, 32], sizes = [8, 16], strides = [1, 1]} : vector<8x48xf32> to vector<8x16xf32>
    %1063 = vector.extract_strided_slice %1045 {offsets = [0, 32], sizes = [8, 16], strides = [1, 1]} : vector<8x48xf32> to vector<8x16xf32>
    %1064 = arith.addf %1063, %697 : vector<8x16xf32>
    %1065 = arith.mulf %1053, %1064 : vector<8x16xf32>
    %1066 = arith.addf %1062, %1065 : vector<8x16xf32>
    %1067 = math.tanh %1066 : vector<8x16xf32>
    %1068 = arith.subf %1043, %1067 : vector<8x16xf32>
    %1069 = arith.mulf %1061, %1068 : vector<8x16xf32>
    %1070 = arith.addf %1067, %1069 : vector<8x16xf32>
    %1071 = vector.extract_strided_slice %1038 {offsets = [8, 48], sizes = [8, 48], strides = [1, 1]} : vector<16x96xf32> to vector<8x48xf32>
    %1072 = vector.extract_strided_slice %1042 {offsets = [0, 0], sizes = [8, 16], strides = [1, 1]} : vector<8x48xf32> to vector<8x16xf32>
    %1073 = vector.extract_strided_slice %1071 {offsets = [0, 0], sizes = [8, 16], strides = [1, 1]} : vector<8x48xf32> to vector<8x16xf32>
    %1074 = arith.addf %1072, %1073 : vector<8x16xf32>
    %1075 = arith.negf %1074 : vector<8x16xf32>
    %1076 = math.exp %1075 : vector<8x16xf32>
    %cst_292 = arith.constant 1.000000e+00 : f32
    %1077 = vector.broadcast %cst_292 : f32 to vector<8x16xf32>
    %1078 = arith.addf %1077, %1076 : vector<8x16xf32>
    %1079 = arith.divf %1077, %1078 : vector<8x16xf32>
    %1080 = vector.extract_strided_slice %1042 {offsets = [0, 16], sizes = [8, 16], strides = [1, 1]} : vector<8x48xf32> to vector<8x16xf32>
    %1081 = vector.extract_strided_slice %1071 {offsets = [0, 16], sizes = [8, 16], strides = [1, 1]} : vector<8x48xf32> to vector<8x16xf32>
    %1082 = arith.addf %1080, %1081 : vector<8x16xf32>
    %1083 = arith.negf %1082 : vector<8x16xf32>
    %1084 = math.exp %1083 : vector<8x16xf32>
    %cst_293 = arith.constant 1.000000e+00 : f32
    %1085 = vector.broadcast %cst_293 : f32 to vector<8x16xf32>
    %1086 = arith.addf %1085, %1084 : vector<8x16xf32>
    %1087 = arith.divf %1085, %1086 : vector<8x16xf32>
    %1088 = vector.extract_strided_slice %1042 {offsets = [0, 32], sizes = [8, 16], strides = [1, 1]} : vector<8x48xf32> to vector<8x16xf32>
    %1089 = vector.extract_strided_slice %1071 {offsets = [0, 32], sizes = [8, 16], strides = [1, 1]} : vector<8x48xf32> to vector<8x16xf32>
    %1090 = arith.addf %1089, %700 : vector<8x16xf32>
    %1091 = arith.mulf %1079, %1090 : vector<8x16xf32>
    %1092 = arith.addf %1088, %1091 : vector<8x16xf32>
    %1093 = math.tanh %1092 : vector<8x16xf32>
    %1094 = arith.subf %1044, %1093 : vector<8x16xf32>
    %1095 = arith.mulf %1087, %1094 : vector<8x16xf32>
    %1096 = arith.addf %1093, %1095 : vector<8x16xf32>
    %1097 = vector.broadcast %c4_i32_281 : i32 to vector<8x16xi32>
    %1098 = arith.cmpi sgt, %2, %1097 : vector<8x16xi32>
    %1099 = vector.broadcast %1031 : i32 to vector<8x16xi32>
    %1100 = arith.cmpi sgt, %2, %1099 : vector<8x16xi32>
    %1101 = arith.select %1098, %1070, %1043 : vector<8x16xi1>, vector<8x16xf32>
    %c0_294 = arith.constant 0 : index
    %c0_295 = arith.constant 0 : index
    %1102 = vector.load %arg10[%c0_294, %c0_295] : memref<16x16xf32, #tpu.memory_space<vmem>>, vector<8x16xf32>
    tpu.vector_store %arg10[%c0_294, %c0_295], %1101 {strides = array<i32>} : memref<16x16xf32, #tpu.memory_space<vmem>>, vector<8x16xf32>,
    %1103 = arith.select %1100, %1096, %1044 : vector<8x16xi1>, vector<8x16xf32>
    %c8_296 = arith.constant 8 : index
    %c0_297 = arith.constant 0 : index
    %1104 = vector.load %arg10[%c8_296, %c0_297] : memref<16x16xf32, #tpu.memory_space<vmem>>, vector<8x16xf32>
    tpu.vector_store %arg10[%c8_296, %c0_297], %1103 {strides = array<i32>} : memref<16x16xf32, #tpu.memory_space<vmem>>, vector<8x16xf32>,
    %cst_298 = arith.constant 0.000000e+00 : f32
    %1105 = vector.broadcast %cst_298 : f32 to vector<8x16xf32>
    %1106 = arith.select %1098, %1070, %1105 : vector<8x16xi1>, vector<8x16xf32>
    %1107 = arith.index_cast %1033 : i32 to index
    %c0_299 = arith.constant 0 : index
    %1108 = vector.load %arg8[%1107, %c0_299] : memref<64x32xf32, #tpu.memory_space<vmem>>, vector<8x16xf32>
    tpu.vector_store %arg8[%1107, %c0_299], %1106 {strides = array<i32>} : memref<64x32xf32, #tpu.memory_space<vmem>>, vector<8x16xf32>,
    %cst_300 = arith.constant 0.000000e+00 : f32
    %1109 = vector.broadcast %cst_300 : f32 to vector<8x16xf32>
    %1110 = arith.select %1100, %1096, %1109 : vector<8x16xi1>, vector<8x16xf32>
    %1111 = arith.index_cast %1035 : i32 to index
    %c16_301 = arith.constant 16 : index
    %1112 = vector.load %arg8[%1111, %c16_301] : memref<64x32xf32, #tpu.memory_space<vmem>>, vector<8x16xf32>
    tpu.vector_store %arg8[%1111, %c16_301], %1110 {strides = array<i32>} : memref<64x32xf32, #tpu.memory_space<vmem>>, vector<8x16xf32>,
    %c5_i32_302 = arith.constant 5 : i32
    %c7_i32_303 = arith.constant 7 : i32
    %1113 = arith.subi %c7_i32_303, %c5_i32_302 : i32
    %c8_i32_304 = arith.constant 8 : i32
    %1114 = arith.muli %c5_i32_302, %c8_i32_304 : i32
    %1115 = tpu.assume_multiple %1114, 8 : i32
    %c8_i32_305 = arith.constant 8 : i32
    %1116 = arith.muli %1113, %c8_i32_305 : i32
    %1117 = tpu.assume_multiple %1116, 8 : i32
    %c0_306 = arith.constant 0 : index
    %c0_307 = arith.constant 0 : index
    %1118 = vector.load %arg10[%c0_306, %c0_307] : memref<16x16xf32, #tpu.memory_space<vmem>>, vector<16x16xf32>
    %1119 = arith.truncf %1118 : vector<16x16xf32> to vector<16x16xbf16>
    %cst_308 = arith.constant dense<0.000000e+00> : vector<16x96xf32>
    %1120 = tpu.matmul %1119, %692, %cst_308 {dimension_numbers = #tpu.dot_dimension_numbers<[1], [0], [0], [1], [0, 0, 1, 1], [], []>} : vector<16x16xbf16>, vector<16x96xbf16>, vector<16x96xf32> -> vector<16x96xf32>
    %1121 = arith.index_cast %1115 : i32 to index
    %c0_309 = arith.constant 0 : index
    %1122 = vector.load %arg9[%1121, %c0_309] : memref<64x96xf32, #tpu.memory_space<vmem>>, vector<8x48xf32>
    %1123 = arith.index_cast %1117 : i32 to index
    %c48_310 = arith.constant 48 : index
    %1124 = vector.load %arg9[%1123, %c48_310] : memref<64x96xf32, #tpu.memory_space<vmem>>, vector<8x48xf32>
    %1125 = vector.extract_strided_slice %1118 {offsets = [0, 0], sizes = [8, 16], strides = [1, 1]} : vector<16x16xf32> to vector<8x16xf32>
    %1126 = vector.extract_strided_slice %1118 {offsets = [8, 0], sizes = [8, 16], strides = [1, 1]} : vector<16x16xf32> to vector<8x16xf32>
    %1127 = vector.extract_strided_slice %1120 {offsets = [0, 0], sizes = [8, 48], strides = [1, 1]} : vector<16x96xf32> to vector<8x48xf32>
    %1128 = vector.extract_strided_slice %1122 {offsets = [0, 0], sizes = [8, 16], strides = [1, 1]} : vector<8x48xf32> to vector<8x16xf32>
    %1129 = vector.extract_strided_slice %1127 {offsets = [0, 0], sizes = [8, 16], strides = [1, 1]} : vector<8x48xf32> to vector<8x16xf32>
    %1130 = arith.addf %1128, %1129 : vector<8x16xf32>
    %1131 = arith.negf %1130 : vector<8x16xf32>
    %1132 = math.exp %1131 : vector<8x16xf32>
    %cst_311 = arith.constant 1.000000e+00 : f32
    %1133 = vector.broadcast %cst_311 : f32 to vector<8x16xf32>
    %1134 = arith.addf %1133, %1132 : vector<8x16xf32>
    %1135 = arith.divf %1133, %1134 : vector<8x16xf32>
    %1136 = vector.extract_strided_slice %1122 {offsets = [0, 16], sizes = [8, 16], strides = [1, 1]} : vector<8x48xf32> to vector<8x16xf32>
    %1137 = vector.extract_strided_slice %1127 {offsets = [0, 16], sizes = [8, 16], strides = [1, 1]} : vector<8x48xf32> to vector<8x16xf32>
    %1138 = arith.addf %1136, %1137 : vector<8x16xf32>
    %1139 = arith.negf %1138 : vector<8x16xf32>
    %1140 = math.exp %1139 : vector<8x16xf32>
    %cst_312 = arith.constant 1.000000e+00 : f32
    %1141 = vector.broadcast %cst_312 : f32 to vector<8x16xf32>
    %1142 = arith.addf %1141, %1140 : vector<8x16xf32>
    %1143 = arith.divf %1141, %1142 : vector<8x16xf32>
    %1144 = vector.extract_strided_slice %1122 {offsets = [0, 32], sizes = [8, 16], strides = [1, 1]} : vector<8x48xf32> to vector<8x16xf32>
    %1145 = vector.extract_strided_slice %1127 {offsets = [0, 32], sizes = [8, 16], strides = [1, 1]} : vector<8x48xf32> to vector<8x16xf32>
    %1146 = arith.addf %1145, %697 : vector<8x16xf32>
    %1147 = arith.mulf %1135, %1146 : vector<8x16xf32>
    %1148 = arith.addf %1144, %1147 : vector<8x16xf32>
    %1149 = math.tanh %1148 : vector<8x16xf32>
    %1150 = arith.subf %1125, %1149 : vector<8x16xf32>
    %1151 = arith.mulf %1143, %1150 : vector<8x16xf32>
    %1152 = arith.addf %1149, %1151 : vector<8x16xf32>
    %1153 = vector.extract_strided_slice %1120 {offsets = [8, 48], sizes = [8, 48], strides = [1, 1]} : vector<16x96xf32> to vector<8x48xf32>
    %1154 = vector.extract_strided_slice %1124 {offsets = [0, 0], sizes = [8, 16], strides = [1, 1]} : vector<8x48xf32> to vector<8x16xf32>
    %1155 = vector.extract_strided_slice %1153 {offsets = [0, 0], sizes = [8, 16], strides = [1, 1]} : vector<8x48xf32> to vector<8x16xf32>
    %1156 = arith.addf %1154, %1155 : vector<8x16xf32>
    %1157 = arith.negf %1156 : vector<8x16xf32>
    %1158 = math.exp %1157 : vector<8x16xf32>
    %cst_313 = arith.constant 1.000000e+00 : f32
    %1159 = vector.broadcast %cst_313 : f32 to vector<8x16xf32>
    %1160 = arith.addf %1159, %1158 : vector<8x16xf32>
    %1161 = arith.divf %1159, %1160 : vector<8x16xf32>
    %1162 = vector.extract_strided_slice %1124 {offsets = [0, 16], sizes = [8, 16], strides = [1, 1]} : vector<8x48xf32> to vector<8x16xf32>
    %1163 = vector.extract_strided_slice %1153 {offsets = [0, 16], sizes = [8, 16], strides = [1, 1]} : vector<8x48xf32> to vector<8x16xf32>
    %1164 = arith.addf %1162, %1163 : vector<8x16xf32>
    %1165 = arith.negf %1164 : vector<8x16xf32>
    %1166 = math.exp %1165 : vector<8x16xf32>
    %cst_314 = arith.constant 1.000000e+00 : f32
    %1167 = vector.broadcast %cst_314 : f32 to vector<8x16xf32>
    %1168 = arith.addf %1167, %1166 : vector<8x16xf32>
    %1169 = arith.divf %1167, %1168 : vector<8x16xf32>
    %1170 = vector.extract_strided_slice %1124 {offsets = [0, 32], sizes = [8, 16], strides = [1, 1]} : vector<8x48xf32> to vector<8x16xf32>
    %1171 = vector.extract_strided_slice %1153 {offsets = [0, 32], sizes = [8, 16], strides = [1, 1]} : vector<8x48xf32> to vector<8x16xf32>
    %1172 = arith.addf %1171, %700 : vector<8x16xf32>
    %1173 = arith.mulf %1161, %1172 : vector<8x16xf32>
    %1174 = arith.addf %1170, %1173 : vector<8x16xf32>
    %1175 = math.tanh %1174 : vector<8x16xf32>
    %1176 = arith.subf %1126, %1175 : vector<8x16xf32>
    %1177 = arith.mulf %1169, %1176 : vector<8x16xf32>
    %1178 = arith.addf %1175, %1177 : vector<8x16xf32>
    %1179 = vector.broadcast %c5_i32_302 : i32 to vector<8x16xi32>
    %1180 = arith.cmpi sgt, %2, %1179 : vector<8x16xi32>
    %1181 = vector.broadcast %1113 : i32 to vector<8x16xi32>
    %1182 = arith.cmpi sgt, %2, %1181 : vector<8x16xi32>
    %1183 = arith.select %1180, %1152, %1125 : vector<8x16xi1>, vector<8x16xf32>
    %c0_315 = arith.constant 0 : index
    %c0_316 = arith.constant 0 : index
    %1184 = vector.load %arg10[%c0_315, %c0_316] : memref<16x16xf32, #tpu.memory_space<vmem>>, vector<8x16xf32>
    tpu.vector_store %arg10[%c0_315, %c0_316], %1183 {strides = array<i32>} : memref<16x16xf32, #tpu.memory_space<vmem>>, vector<8x16xf32>,
    %1185 = arith.select %1182, %1178, %1126 : vector<8x16xi1>, vector<8x16xf32>
    %c8_317 = arith.constant 8 : index
    %c0_318 = arith.constant 0 : index
    %1186 = vector.load %arg10[%c8_317, %c0_318] : memref<16x16xf32, #tpu.memory_space<vmem>>, vector<8x16xf32>
    tpu.vector_store %arg10[%c8_317, %c0_318], %1185 {strides = array<i32>} : memref<16x16xf32, #tpu.memory_space<vmem>>, vector<8x16xf32>,
    %cst_319 = arith.constant 0.000000e+00 : f32
    %1187 = vector.broadcast %cst_319 : f32 to vector<8x16xf32>
    %1188 = arith.select %1180, %1152, %1187 : vector<8x16xi1>, vector<8x16xf32>
    %1189 = arith.index_cast %1115 : i32 to index
    %c0_320 = arith.constant 0 : index
    %1190 = vector.load %arg8[%1189, %c0_320] : memref<64x32xf32, #tpu.memory_space<vmem>>, vector<8x16xf32>
    tpu.vector_store %arg8[%1189, %c0_320], %1188 {strides = array<i32>} : memref<64x32xf32, #tpu.memory_space<vmem>>, vector<8x16xf32>,
    %cst_321 = arith.constant 0.000000e+00 : f32
    %1191 = vector.broadcast %cst_321 : f32 to vector<8x16xf32>
    %1192 = arith.select %1182, %1178, %1191 : vector<8x16xi1>, vector<8x16xf32>
    %1193 = arith.index_cast %1117 : i32 to index
    %c16_322 = arith.constant 16 : index
    %1194 = vector.load %arg8[%1193, %c16_322] : memref<64x32xf32, #tpu.memory_space<vmem>>, vector<8x16xf32>
    tpu.vector_store %arg8[%1193, %c16_322], %1192 {strides = array<i32>} : memref<64x32xf32, #tpu.memory_space<vmem>>, vector<8x16xf32>,
    %c6_i32_323 = arith.constant 6 : i32
    %c7_i32_324 = arith.constant 7 : i32
    %1195 = arith.subi %c7_i32_324, %c6_i32_323 : i32
    %c8_i32_325 = arith.constant 8 : i32
    %1196 = arith.muli %c6_i32_323, %c8_i32_325 : i32
    %1197 = tpu.assume_multiple %1196, 8 : i32
    %c8_i32_326 = arith.constant 8 : i32
    %1198 = arith.muli %1195, %c8_i32_326 : i32
    %1199 = tpu.assume_multiple %1198, 8 : i32
    %c0_327 = arith.constant 0 : index
    %c0_328 = arith.constant 0 : index
    %1200 = vector.load %arg10[%c0_327, %c0_328] : memref<16x16xf32, #tpu.memory_space<vmem>>, vector<16x16xf32>
    %1201 = arith.truncf %1200 : vector<16x16xf32> to vector<16x16xbf16>
    %cst_329 = arith.constant dense<0.000000e+00> : vector<16x96xf32>
    %1202 = tpu.matmul %1201, %692, %cst_329 {dimension_numbers = #tpu.dot_dimension_numbers<[1], [0], [0], [1], [0, 0, 1, 1], [], []>} : vector<16x16xbf16>, vector<16x96xbf16>, vector<16x96xf32> -> vector<16x96xf32>
    %1203 = arith.index_cast %1197 : i32 to index
    %c0_330 = arith.constant 0 : index
    %1204 = vector.load %arg9[%1203, %c0_330] : memref<64x96xf32, #tpu.memory_space<vmem>>, vector<8x48xf32>
    %1205 = arith.index_cast %1199 : i32 to index
    %c48_331 = arith.constant 48 : index
    %1206 = vector.load %arg9[%1205, %c48_331] : memref<64x96xf32, #tpu.memory_space<vmem>>, vector<8x48xf32>
    %1207 = vector.extract_strided_slice %1200 {offsets = [0, 0], sizes = [8, 16], strides = [1, 1]} : vector<16x16xf32> to vector<8x16xf32>
    %1208 = vector.extract_strided_slice %1200 {offsets = [8, 0], sizes = [8, 16], strides = [1, 1]} : vector<16x16xf32> to vector<8x16xf32>
    %1209 = vector.extract_strided_slice %1202 {offsets = [0, 0], sizes = [8, 48], strides = [1, 1]} : vector<16x96xf32> to vector<8x48xf32>
    %1210 = vector.extract_strided_slice %1204 {offsets = [0, 0], sizes = [8, 16], strides = [1, 1]} : vector<8x48xf32> to vector<8x16xf32>
    %1211 = vector.extract_strided_slice %1209 {offsets = [0, 0], sizes = [8, 16], strides = [1, 1]} : vector<8x48xf32> to vector<8x16xf32>
    %1212 = arith.addf %1210, %1211 : vector<8x16xf32>
    %1213 = arith.negf %1212 : vector<8x16xf32>
    %1214 = math.exp %1213 : vector<8x16xf32>
    %cst_332 = arith.constant 1.000000e+00 : f32
    %1215 = vector.broadcast %cst_332 : f32 to vector<8x16xf32>
    %1216 = arith.addf %1215, %1214 : vector<8x16xf32>
    %1217 = arith.divf %1215, %1216 : vector<8x16xf32>
    %1218 = vector.extract_strided_slice %1204 {offsets = [0, 16], sizes = [8, 16], strides = [1, 1]} : vector<8x48xf32> to vector<8x16xf32>
    %1219 = vector.extract_strided_slice %1209 {offsets = [0, 16], sizes = [8, 16], strides = [1, 1]} : vector<8x48xf32> to vector<8x16xf32>
    %1220 = arith.addf %1218, %1219 : vector<8x16xf32>
    %1221 = arith.negf %1220 : vector<8x16xf32>
    %1222 = math.exp %1221 : vector<8x16xf32>
    %cst_333 = arith.constant 1.000000e+00 : f32
    %1223 = vector.broadcast %cst_333 : f32 to vector<8x16xf32>
    %1224 = arith.addf %1223, %1222 : vector<8x16xf32>
    %1225 = arith.divf %1223, %1224 : vector<8x16xf32>
    %1226 = vector.extract_strided_slice %1204 {offsets = [0, 32], sizes = [8, 16], strides = [1, 1]} : vector<8x48xf32> to vector<8x16xf32>
    %1227 = vector.extract_strided_slice %1209 {offsets = [0, 32], sizes = [8, 16], strides = [1, 1]} : vector<8x48xf32> to vector<8x16xf32>
    %1228 = arith.addf %1227, %697 : vector<8x16xf32>
    %1229 = arith.mulf %1217, %1228 : vector<8x16xf32>
    %1230 = arith.addf %1226, %1229 : vector<8x16xf32>
    %1231 = math.tanh %1230 : vector<8x16xf32>
    %1232 = arith.subf %1207, %1231 : vector<8x16xf32>
    %1233 = arith.mulf %1225, %1232 : vector<8x16xf32>
    %1234 = arith.addf %1231, %1233 : vector<8x16xf32>
    %1235 = vector.extract_strided_slice %1202 {offsets = [8, 48], sizes = [8, 48], strides = [1, 1]} : vector<16x96xf32> to vector<8x48xf32>
    %1236 = vector.extract_strided_slice %1206 {offsets = [0, 0], sizes = [8, 16], strides = [1, 1]} : vector<8x48xf32> to vector<8x16xf32>
    %1237 = vector.extract_strided_slice %1235 {offsets = [0, 0], sizes = [8, 16], strides = [1, 1]} : vector<8x48xf32> to vector<8x16xf32>
    %1238 = arith.addf %1236, %1237 : vector<8x16xf32>
    %1239 = arith.negf %1238 : vector<8x16xf32>
    %1240 = math.exp %1239 : vector<8x16xf32>
    %cst_334 = arith.constant 1.000000e+00 : f32
    %1241 = vector.broadcast %cst_334 : f32 to vector<8x16xf32>
    %1242 = arith.addf %1241, %1240 : vector<8x16xf32>
    %1243 = arith.divf %1241, %1242 : vector<8x16xf32>
    %1244 = vector.extract_strided_slice %1206 {offsets = [0, 16], sizes = [8, 16], strides = [1, 1]} : vector<8x48xf32> to vector<8x16xf32>
    %1245 = vector.extract_strided_slice %1235 {offsets = [0, 16], sizes = [8, 16], strides = [1, 1]} : vector<8x48xf32> to vector<8x16xf32>
    %1246 = arith.addf %1244, %1245 : vector<8x16xf32>
    %1247 = arith.negf %1246 : vector<8x16xf32>
    %1248 = math.exp %1247 : vector<8x16xf32>
    %cst_335 = arith.constant 1.000000e+00 : f32
    %1249 = vector.broadcast %cst_335 : f32 to vector<8x16xf32>
    %1250 = arith.addf %1249, %1248 : vector<8x16xf32>
    %1251 = arith.divf %1249, %1250 : vector<8x16xf32>
    %1252 = vector.extract_strided_slice %1206 {offsets = [0, 32], sizes = [8, 16], strides = [1, 1]} : vector<8x48xf32> to vector<8x16xf32>
    %1253 = vector.extract_strided_slice %1235 {offsets = [0, 32], sizes = [8, 16], strides = [1, 1]} : vector<8x48xf32> to vector<8x16xf32>
    %1254 = arith.addf %1253, %700 : vector<8x16xf32>
    %1255 = arith.mulf %1243, %1254 : vector<8x16xf32>
    %1256 = arith.addf %1252, %1255 : vector<8x16xf32>
    %1257 = math.tanh %1256 : vector<8x16xf32>
    %1258 = arith.subf %1208, %1257 : vector<8x16xf32>
    %1259 = arith.mulf %1251, %1258 : vector<8x16xf32>
    %1260 = arith.addf %1257, %1259 : vector<8x16xf32>
    %1261 = vector.broadcast %c6_i32_323 : i32 to vector<8x16xi32>
    %1262 = arith.cmpi sgt, %2, %1261 : vector<8x16xi32>
    %1263 = vector.broadcast %1195 : i32 to vector<8x16xi32>
    %1264 = arith.cmpi sgt, %2, %1263 : vector<8x16xi32>
    %1265 = arith.select %1262, %1234, %1207 : vector<8x16xi1>, vector<8x16xf32>
    %c0_336 = arith.constant 0 : index
    %c0_337 = arith.constant 0 : index
    %1266 = vector.load %arg10[%c0_336, %c0_337] : memref<16x16xf32, #tpu.memory_space<vmem>>, vector<8x16xf32>
    tpu.vector_store %arg10[%c0_336, %c0_337], %1265 {strides = array<i32>} : memref<16x16xf32, #tpu.memory_space<vmem>>, vector<8x16xf32>,
    %1267 = arith.select %1264, %1260, %1208 : vector<8x16xi1>, vector<8x16xf32>
    %c8_338 = arith.constant 8 : index
    %c0_339 = arith.constant 0 : index
    %1268 = vector.load %arg10[%c8_338, %c0_339] : memref<16x16xf32, #tpu.memory_space<vmem>>, vector<8x16xf32>
    tpu.vector_store %arg10[%c8_338, %c0_339], %1267 {strides = array<i32>} : memref<16x16xf32, #tpu.memory_space<vmem>>, vector<8x16xf32>,
    %cst_340 = arith.constant 0.000000e+00 : f32
    %1269 = vector.broadcast %cst_340 : f32 to vector<8x16xf32>
    %1270 = arith.select %1262, %1234, %1269 : vector<8x16xi1>, vector<8x16xf32>
    %1271 = arith.index_cast %1197 : i32 to index
    %c0_341 = arith.constant 0 : index
    %1272 = vector.load %arg8[%1271, %c0_341] : memref<64x32xf32, #tpu.memory_space<vmem>>, vector<8x16xf32>
    tpu.vector_store %arg8[%1271, %c0_341], %1270 {strides = array<i32>} : memref<64x32xf32, #tpu.memory_space<vmem>>, vector<8x16xf32>,
    %cst_342 = arith.constant 0.000000e+00 : f32
    %1273 = vector.broadcast %cst_342 : f32 to vector<8x16xf32>
    %1274 = arith.select %1264, %1260, %1273 : vector<8x16xi1>, vector<8x16xf32>
    %1275 = arith.index_cast %1199 : i32 to index
    %c16_343 = arith.constant 16 : index
    %1276 = vector.load %arg8[%1275, %c16_343] : memref<64x32xf32, #tpu.memory_space<vmem>>, vector<8x16xf32>
    tpu.vector_store %arg8[%1275, %c16_343], %1274 {strides = array<i32>} : memref<64x32xf32, #tpu.memory_space<vmem>>, vector<8x16xf32>,
    %c7_i32_344 = arith.constant 7 : i32
    %c7_i32_345 = arith.constant 7 : i32
    %1277 = arith.subi %c7_i32_345, %c7_i32_344 : i32
    %c8_i32_346 = arith.constant 8 : i32
    %1278 = arith.muli %c7_i32_344, %c8_i32_346 : i32
    %1279 = tpu.assume_multiple %1278, 8 : i32
    %c8_i32_347 = arith.constant 8 : i32
    %1280 = arith.muli %1277, %c8_i32_347 : i32
    %1281 = tpu.assume_multiple %1280, 8 : i32
    %c0_348 = arith.constant 0 : index
    %c0_349 = arith.constant 0 : index
    %1282 = vector.load %arg10[%c0_348, %c0_349] : memref<16x16xf32, #tpu.memory_space<vmem>>, vector<16x16xf32>
    %1283 = arith.truncf %1282 : vector<16x16xf32> to vector<16x16xbf16>
    %cst_350 = arith.constant dense<0.000000e+00> : vector<16x96xf32>
    %1284 = tpu.matmul %1283, %692, %cst_350 {dimension_numbers = #tpu.dot_dimension_numbers<[1], [0], [0], [1], [0, 0, 1, 1], [], []>} : vector<16x16xbf16>, vector<16x96xbf16>, vector<16x96xf32> -> vector<16x96xf32>
    %1285 = arith.index_cast %1279 : i32 to index
    %c0_351 = arith.constant 0 : index
    %1286 = vector.load %arg9[%1285, %c0_351] : memref<64x96xf32, #tpu.memory_space<vmem>>, vector<8x48xf32>
    %1287 = arith.index_cast %1281 : i32 to index
    %c48_352 = arith.constant 48 : index
    %1288 = vector.load %arg9[%1287, %c48_352] : memref<64x96xf32, #tpu.memory_space<vmem>>, vector<8x48xf32>
    %1289 = vector.extract_strided_slice %1282 {offsets = [0, 0], sizes = [8, 16], strides = [1, 1]} : vector<16x16xf32> to vector<8x16xf32>
    %1290 = vector.extract_strided_slice %1282 {offsets = [8, 0], sizes = [8, 16], strides = [1, 1]} : vector<16x16xf32> to vector<8x16xf32>
    %1291 = vector.extract_strided_slice %1284 {offsets = [0, 0], sizes = [8, 48], strides = [1, 1]} : vector<16x96xf32> to vector<8x48xf32>
    %1292 = vector.extract_strided_slice %1286 {offsets = [0, 0], sizes = [8, 16], strides = [1, 1]} : vector<8x48xf32> to vector<8x16xf32>
    %1293 = vector.extract_strided_slice %1291 {offsets = [0, 0], sizes = [8, 16], strides = [1, 1]} : vector<8x48xf32> to vector<8x16xf32>
    %1294 = arith.addf %1292, %1293 : vector<8x16xf32>
    %1295 = arith.negf %1294 : vector<8x16xf32>
    %1296 = math.exp %1295 : vector<8x16xf32>
    %cst_353 = arith.constant 1.000000e+00 : f32
    %1297 = vector.broadcast %cst_353 : f32 to vector<8x16xf32>
    %1298 = arith.addf %1297, %1296 : vector<8x16xf32>
    %1299 = arith.divf %1297, %1298 : vector<8x16xf32>
    %1300 = vector.extract_strided_slice %1286 {offsets = [0, 16], sizes = [8, 16], strides = [1, 1]} : vector<8x48xf32> to vector<8x16xf32>
    %1301 = vector.extract_strided_slice %1291 {offsets = [0, 16], sizes = [8, 16], strides = [1, 1]} : vector<8x48xf32> to vector<8x16xf32>
    %1302 = arith.addf %1300, %1301 : vector<8x16xf32>
    %1303 = arith.negf %1302 : vector<8x16xf32>
    %1304 = math.exp %1303 : vector<8x16xf32>
    %cst_354 = arith.constant 1.000000e+00 : f32
    %1305 = vector.broadcast %cst_354 : f32 to vector<8x16xf32>
    %1306 = arith.addf %1305, %1304 : vector<8x16xf32>
    %1307 = arith.divf %1305, %1306 : vector<8x16xf32>
    %1308 = vector.extract_strided_slice %1286 {offsets = [0, 32], sizes = [8, 16], strides = [1, 1]} : vector<8x48xf32> to vector<8x16xf32>
    %1309 = vector.extract_strided_slice %1291 {offsets = [0, 32], sizes = [8, 16], strides = [1, 1]} : vector<8x48xf32> to vector<8x16xf32>
    %1310 = arith.addf %1309, %697 : vector<8x16xf32>
    %1311 = arith.mulf %1299, %1310 : vector<8x16xf32>
    %1312 = arith.addf %1308, %1311 : vector<8x16xf32>
    %1313 = math.tanh %1312 : vector<8x16xf32>
    %1314 = arith.subf %1289, %1313 : vector<8x16xf32>
    %1315 = arith.mulf %1307, %1314 : vector<8x16xf32>
    %1316 = arith.addf %1313, %1315 : vector<8x16xf32>
    %1317 = vector.extract_strided_slice %1284 {offsets = [8, 48], sizes = [8, 48], strides = [1, 1]} : vector<16x96xf32> to vector<8x48xf32>
    %1318 = vector.extract_strided_slice %1288 {offsets = [0, 0], sizes = [8, 16], strides = [1, 1]} : vector<8x48xf32> to vector<8x16xf32>
    %1319 = vector.extract_strided_slice %1317 {offsets = [0, 0], sizes = [8, 16], strides = [1, 1]} : vector<8x48xf32> to vector<8x16xf32>
    %1320 = arith.addf %1318, %1319 : vector<8x16xf32>
    %1321 = arith.negf %1320 : vector<8x16xf32>
    %1322 = math.exp %1321 : vector<8x16xf32>
    %cst_355 = arith.constant 1.000000e+00 : f32
    %1323 = vector.broadcast %cst_355 : f32 to vector<8x16xf32>
    %1324 = arith.addf %1323, %1322 : vector<8x16xf32>
    %1325 = arith.divf %1323, %1324 : vector<8x16xf32>
    %1326 = vector.extract_strided_slice %1288 {offsets = [0, 16], sizes = [8, 16], strides = [1, 1]} : vector<8x48xf32> to vector<8x16xf32>
    %1327 = vector.extract_strided_slice %1317 {offsets = [0, 16], sizes = [8, 16], strides = [1, 1]} : vector<8x48xf32> to vector<8x16xf32>
    %1328 = arith.addf %1326, %1327 : vector<8x16xf32>
    %1329 = arith.negf %1328 : vector<8x16xf32>
    %1330 = math.exp %1329 : vector<8x16xf32>
    %cst_356 = arith.constant 1.000000e+00 : f32
    %1331 = vector.broadcast %cst_356 : f32 to vector<8x16xf32>
    %1332 = arith.addf %1331, %1330 : vector<8x16xf32>
    %1333 = arith.divf %1331, %1332 : vector<8x16xf32>
    %1334 = vector.extract_strided_slice %1288 {offsets = [0, 32], sizes = [8, 16], strides = [1, 1]} : vector<8x48xf32> to vector<8x16xf32>
    %1335 = vector.extract_strided_slice %1317 {offsets = [0, 32], sizes = [8, 16], strides = [1, 1]} : vector<8x48xf32> to vector<8x16xf32>
    %1336 = arith.addf %1335, %700 : vector<8x16xf32>
    %1337 = arith.mulf %1325, %1336 : vector<8x16xf32>
    %1338 = arith.addf %1334, %1337 : vector<8x16xf32>
    %1339 = math.tanh %1338 : vector<8x16xf32>
    %1340 = arith.subf %1290, %1339 : vector<8x16xf32>
    %1341 = arith.mulf %1333, %1340 : vector<8x16xf32>
    %1342 = arith.addf %1339, %1341 : vector<8x16xf32>
    %1343 = vector.broadcast %c7_i32_344 : i32 to vector<8x16xi32>
    %1344 = arith.cmpi sgt, %2, %1343 : vector<8x16xi32>
    %1345 = vector.broadcast %1277 : i32 to vector<8x16xi32>
    %1346 = arith.cmpi sgt, %2, %1345 : vector<8x16xi32>
    %1347 = arith.select %1344, %1316, %1289 : vector<8x16xi1>, vector<8x16xf32>
    %c0_357 = arith.constant 0 : index
    %c0_358 = arith.constant 0 : index
    %1348 = vector.load %arg10[%c0_357, %c0_358] : memref<16x16xf32, #tpu.memory_space<vmem>>, vector<8x16xf32>
    tpu.vector_store %arg10[%c0_357, %c0_358], %1347 {strides = array<i32>} : memref<16x16xf32, #tpu.memory_space<vmem>>, vector<8x16xf32>,
    %1349 = arith.select %1346, %1342, %1290 : vector<8x16xi1>, vector<8x16xf32>
    %c8_359 = arith.constant 8 : index
    %c0_360 = arith.constant 0 : index
    %1350 = vector.load %arg10[%c8_359, %c0_360] : memref<16x16xf32, #tpu.memory_space<vmem>>, vector<8x16xf32>
    tpu.vector_store %arg10[%c8_359, %c0_360], %1349 {strides = array<i32>} : memref<16x16xf32, #tpu.memory_space<vmem>>, vector<8x16xf32>,
    %cst_361 = arith.constant 0.000000e+00 : f32
    %1351 = vector.broadcast %cst_361 : f32 to vector<8x16xf32>
    %1352 = arith.select %1344, %1316, %1351 : vector<8x16xi1>, vector<8x16xf32>
    %1353 = arith.index_cast %1279 : i32 to index
    %c0_362 = arith.constant 0 : index
    %1354 = vector.load %arg8[%1353, %c0_362] : memref<64x32xf32, #tpu.memory_space<vmem>>, vector<8x16xf32>
    tpu.vector_store %arg8[%1353, %c0_362], %1352 {strides = array<i32>} : memref<64x32xf32, #tpu.memory_space<vmem>>, vector<8x16xf32>,
    %cst_363 = arith.constant 0.000000e+00 : f32
    %1355 = vector.broadcast %cst_363 : f32 to vector<8x16xf32>
    %1356 = arith.select %1346, %1342, %1355 : vector<8x16xi1>, vector<8x16xf32>
    %1357 = arith.index_cast %1281 : i32 to index
    %c16_364 = arith.constant 16 : index
    %1358 = vector.load %arg8[%1357, %c16_364] : memref<64x32xf32, #tpu.memory_space<vmem>>, vector<8x16xf32>
    tpu.vector_store %arg8[%1357, %c16_364], %1356 {strides = array<i32>} : memref<64x32xf32, #tpu.memory_space<vmem>>, vector<8x16xf32>,
    %c8_i32_365 = arith.constant 8 : i32
    %c0_366 = arith.constant 0 : index
    %c0_367 = arith.constant 0 : index
    %1359 = vector.load %arg8[%c0_366, %c0_367] : memref<64x32xf32, #tpu.memory_space<vmem>>, vector<64x32xf32>
    %c0_368 = arith.constant 0 : index
    %c0_369 = arith.constant 0 : index
    %c0_370 = arith.constant 0 : index
    %1360 = vector.load %arg7[%c0_368, %c0_369, %c0_370] : memref<1x64x32xf32, #tpu.memory_space<vmem>>, vector<1x64x32xf32>
    %1361 = vector.shape_cast %1360 : vector<1x64x32xf32> to vector<64x32xf32>
    %1362 = vector.shape_cast %1359 : vector<64x32xf32> to vector<1x64x32xf32>
    tpu.vector_store %arg7[%c0_368, %c0_369, %c0_370], %1362 {strides = array<i32>} : memref<1x64x32xf32, #tpu.memory_space<vmem>>, vector<1x64x32xf32>,
    return
  }
  func.func @transform_0(%arg0: i32) -> (i32, i32, i32) {
    %c0_i32 = arith.constant 0 : i32
    %c0_i32_0 = arith.constant 0 : i32
    %c0_i32_1 = arith.constant 0 : i32
    return %arg0, %c0_i32, %c0_i32_0 : i32, i32, i32
  }
  func.func @transform_1(%arg0: i32) -> (i32, i32) {
    %c0_i32 = arith.constant 0 : i32
    %c0_i32_0 = arith.constant 0 : i32
    return %arg0, %c0_i32 : i32, i32
  }
  func.func @transform_2(%arg0: i32) -> (i32, i32, i32) {
    %c0_i32 = arith.constant 0 : i32
    %c0_i32_0 = arith.constant 0 : i32
    %c0_i32_1 = arith.constant 0 : i32
    %c0_i32_2 = arith.constant 0 : i32
    return %c0_i32, %c0_i32_0, %c0_i32_1 : i32, i32, i32
  }
  func.func @transform_3(%arg0: i32) -> (i32, i32, i32) {
    %c0_i32 = arith.constant 0 : i32
    %c0_i32_0 = arith.constant 0 : i32
    %c0_i32_1 = arith.constant 0 : i32
    %c0_i32_2 = arith.constant 0 : i32
    return %c0_i32, %c0_i32_0, %c0_i32_1 : i32, i32, i32
  }
  func.func @transform_4(%arg0: i32) -> (i32, i32, i32) {
    %c0_i32 = arith.constant 0 : i32
    %c0_i32_0 = arith.constant 0 : i32
    %c0_i32_1 = arith.constant 0 : i32
    %c0_i32_2 = arith.constant 0 : i32
    return %c0_i32, %c0_i32_0, %c0_i32_1 : i32, i32, i32
  }
  func.func @transform_5(%arg0: i32) -> (i32, i32, i32) {
    %c0_i32 = arith.constant 0 : i32
    %c0_i32_0 = arith.constant 0 : i32
    %c0_i32_1 = arith.constant 0 : i32
    %c0_i32_2 = arith.constant 0 : i32
    return %c0_i32, %c0_i32_0, %c0_i32_1 : i32, i32, i32
  }
  func.func @transform_6(%arg0: i32) -> (i32, i32, i32) {
    %c0_i32 = arith.constant 0 : i32
    %c0_i32_0 = arith.constant 0 : i32
    %c0_i32_1 = arith.constant 0 : i32
    return %arg0, %c0_i32, %c0_i32_0 : i32, i32, i32
  }
}

</mosaic_0001>

<bundles_post_ra>
// kernel: tpu_custom_call.1
= control target key start
LH: loop header
LB: loop body
LE: loop exit
PB: predicated region body
PF: predicated region fallthrough
CT: control target
= control target key end

     0   :  { %s3603_s21 = smov 0   ;;  %s4493_s0 = inlined_call_operand.vmem [shape: bf16[2,64,32], index: 0, kind: input, shape index: {}]   ;;  %s4494_s1 = inlined_call_operand.vmem [shape: s32[16,1], index: 1, kind: input, shape index: {}]   ;;  %s4495_s2 = inlined_call_operand.vmem [shape: bf16[2,32,96], index: 2, kind: input, shape index: {}]   ;;  %s4496_s3 = inlined_call_operand.vmem [shape: f32[2,1,96], index: 3, kind: input, shape index: {}]   ;;  %s4497_s4 = inlined_call_operand.vmem [shape: bf16[2,16,96], index: 4, kind: input, shape index: {}]   ;;  %s4498_s5 = inlined_call_operand.vmem [shape: f32[2,1,32], index: 5, kind: input, shape index: {}]   ;;  %s4499_s6 = inlined_call_operand.vmem [shape: f32[2,64,32], index: 6, kind: output, shape index: {}]  }
   0x1 LB: > { %s3071_s22 = sadd.s32 4294967295, %s3557_s21   ;;  %p3075_p0 = scmp.ge.s32.totalorder %s3557_s21, 1  ;;  %s3557_s21 = sphi %s3603_s21, %s16_s21  }
   0x2   : > { %p221_p1 = scmp.lt.s32.totalorder %s3557_s21, 3 }
   0x4   : > { %p222_p2 = pnand %p3075_p0, %p221_p1 }
   0x5   : > { %v3345_v0 = vld [vmem:[%s4495_s2] sm:$0xff] (!%p222_p2)   ;;  %v3346_v1 = vld [vmem:[%s4495_s2 + $0x8] sm:$0xff] (!%p222_p2)   ;;  %v3559_v2 = vmov (!%p222_p2), 0.0   ;;  %p255_p3 = scmp.lt.s32.totalorder (!%p222_p2), %s3071_s22, 1  ;;  %vm420_vm0 = vcmask (!%p222_p2), 130048   ;;  %vm3560_vm1 = vmmov (!%p222_p2), 0  }
   0x6   : > { %225 = sbr.rel (%p222_p2) target bundleno = 15056 (0x3ad0), region = 44  ;;  %3219 = vmatprep.subr.bf16.mxu1 (!%p222_p2), %v3559_v2  ;;  %3207 = vmatprep.subr.bf16.mxu0 (!%p222_p2), %v3345_v0  ;;  %v3621_v3 = vld [vmem:[%s4497_s4] sm:$0xff] (!%p222_p2)   ;;  %421 = vst.msk [vmem:[#allocation4] sm:$0xff] (!%p222_p2), %vm420_vm0, %v3559_v2  ;;  %422 = vst.msk [vmem:[#allocation4 + $0x8] sm:$0xff] (!%p222_p2), %vm420_vm0, %v3559_v2  ;;  %s3561_s8 = smov (!%p222_p2), 32   ;;  %vm325_vm2 = vcmask (!%p222_p2), 261120  }
   0x7   : > { %3208 = vmatpush3.bf16.msra.mxu0 (!%p222_p2), %v3345_v0  ;;  %v3092_v4 = vld [vmem:[%s4498_s5] ss:$0 sm:$0xff] (!%p222_p2)  ;;  %3220 = vmatpush3.bf16.msra.mxu1 (!%p222_p2), %v3621_v3  ;;  %s3562_s12 = smov (!%p222_p2), 64   ;;  %vm403_vm3 = vcmask (!%p222_p2), 785408   ;;  %s3563_s15 = smov (!%p222_p2), 96   ;;  %v3564_v57 = vmov (!%p222_p2), 0  }
   0x8   : > { %3209 = vmatprep.subr.bf16.mxu0 (!%p222_p2), %v3346_v1  ;;  %3221 = vmatprep.mubr.msk.bf16.mxu1 (!%p222_p2), %vm3560_vm1, %v3559_v2  ;;  %v3081_v12 = vld [vmem:[%s4496_s3] ss:$0 sm:$0xff] (!%p222_p2)  ;;  %s3565_s16 = smov (!%p222_p2), 48   ;;  %s3566_s23 = smov (!%p222_p2), 16   ;;  %vm587_vm12 = vcmask (!%p222_p2), 261248  }
   0x9   : > { %486 = vrot.lane.b32.xlu0 (!%p222_p2), %v3092_v4, %s3561_s8  ;;  %3225 = vmatprep.subr.bf16.mxu1 (!%p222_p2), %v3559_v2  ;;  %s3567_s24 = smov (!%p222_p2), 80  }
   0xa   : > { %3344 = vset.pattern.permute.xlu0 (!%p222_p2), %v3564_v57 }
   0xb   : > { %3210 = vmatpush3.bf16.msra.mxu0 (!%p222_p2), %v3346_v1 }
   0xc   : > { %3237 = vmatprep.subr.bf16.mxu0 (!%p222_p2), %v3559_v2 }
   0xd   : > { %s4501_s22 = smov (!%p255_p3, %s3071_s22), 1  ;;  %523 = vrot.lane.b32.xlu0 %v3092_v4, %s3562_s12  ;;  %v3645_v8 = vld [vmem:[#allocation4] sm:$0xff]  ;;  %v3647_v9 = vld [vmem:[#allocation4 + $0x8] sm:$0xff] }
   0xe   : > { %s3161_s7 = sshll.u32 %s4501_s22, 5  ;;  %v425_v10 = vpack.c.bf16 %v3647_v9, %v3645_v8  ;;  %s3078_s17 = sshll.u32 %s4501_s22, 3 }
   0xf   : > { %s259_s11 = scalar_lea.vmem %s4493_s0, %s3161_s7  ;;  %s263_s20 = scalar_lea.vmem %s4494_s1, %s3078_s17 }
  0x10   : > { %v3348_v5 = vld [vmem:[%s259_s11] sm:$0xff]   ;;  %v3349_v6 = vld [vmem:[%s259_s11 + $0x8] sm:$0xff]   ;;  %v3350_v7 = vld [vmem:[%s259_s11 + $0x10] sm:$0xff]   ;;  %3222 = vmatmul.mubr.msk.bf16.vlgmr.msra.gmra.mrb[0].mxu1 %vm420_vm0, %v425_v10 }
  0x11   : > { %3211 = vmatprep.mubr.msk.bf16.mxu0 %vm325_vm2, %v3348_v5  ;;  %v3351_v11 = vld [vmem:[%s259_s11 + $0x18] sm:$0xff]   ;;  %3226 = vmatpush3.bf16.msra.mxu1 %v3621_v3  ;;  %v270_v63 = vld [vmem:[%s263_s20] sm:$0xff] }
  0x12   : > { %3212 = vmatmul.mubr.msk.bf16.vlgmr.msra.gmra.mrb[0].mxu0 %vm325_vm2, %v3349_v6  ;;  %3227 = vmatprep.mubr.msk.bf16.mxu1 %vm3560_vm1, %v3559_v2 }
  0x13   : > { %3215 = vmatprep.mubr.msk.bf16.mxu0 %vm325_vm2, %v3350_v7  ;;  %3238 = vmatpush3.bf16.msra.mxu0 %v3621_v3 }
  0x14   : > { %3249 = vmatprep.subr.bf16.mxu0 %v3559_v2  ;;  %3231 = vmatprep.subr.bf16.mxu1 %v3559_v2 }
  0x1a   : > { %3216 = vmatmul.mubr.msk.bf16.gmra.mrb[4].mxu0 %vm325_vm2, %v3351_v11 }
  0x1b   : > { %3239 = vmatprep.mubr.msk.bf16.mxu0 %vm3560_vm1, %v3559_v2 }
  0x7b   : > { %v3665_v13 = vpop.permute.xlu0 %486 }
  0x7f   : > { %v3671_v25 = vpop.permute.xlu0 %523 }
  0xe3   : > { %v469_v21 = vpop.f32.mrb[0].mxu1 }
  0xe4   : > { %v3223_v23 = vpop.f32.mrb[1].mxu1  ;;  %v489_v24 = vadd.f32 %v3665_v13, %v469_v21 }
  0xe5   : > { %v3213_v14 = vpop.f32.mrb[0].mxu0  ;;  %v472_v26 = vpop.f32.mrb[2].mxu1 }
  0xe6   : > { %v381_v15 = vadd.f32 %v3213_v14, %v3081_v12  ;;  %v372_v16 = vpop.f32.mrb[1].mxu0  ;;  %491 = vrot.lane.b32.xlu1 %v489_v24, %s3563_s15  ;;  %v3224_v27 = vpop.f32.mrb[3].mxu1  ;;  %v526_v29 = vadd.f32 %v3671_v25, %v472_v26 }
  0xe7   : > { %v373_v17 = vadd.f32 %v3081_v12, %v372_v16  ;;  %v3214_v18 = vpop.f32.mrb[2].mxu0 }
  0xe8   : > { %406 = vst.msk [vmem:[#allocation3 + $0x10] sm:$0xff] %vm403_vm3, %v381_v15  ;;  %v384_v19 = vadd.f32 %v3214_v18, %v3081_v12  ;;  %v375_v20 = vpop.f32.mrb[3].mxu0 }
  0xe9   : > { %404 = vst.msk [vmem:[#allocation3] sm:$0xff] %vm403_vm3, %v373_v17  ;;  %v376_v22 = vadd.f32 %v3081_v12, %v375_v20 }
  0xea   : > { %407 = vst.msk [vmem:[#allocation3 + $0x18] sm:$0xff] %vm403_vm3, %v384_v19  ;;  %528 = vrot.lane.b32.xlu1 %v526_v29, %s3563_s15 }
  0xeb   : > { %405 = vst.msk [vmem:[#allocation3 + $0x8] sm:$0xff] %vm403_vm3, %v376_v22 }
  0xed   : > { %v3217_v28 = vpop.f32.mrb[4].mxu0 }
  0xee   : > { %v397_v30 = vadd.f32 %v3217_v28, %v3081_v12  ;;  %v388_v31 = vpop.f32.mrb[5].mxu0 }
  0xef   : > { %v389_v32 = vadd.f32 %v3081_v12, %v388_v31  ;;  %v3218_v33 = vpop.f32.mrb[6].mxu0 }
  0xf0   : > { %410 = vst.msk [vmem:[#allocation3 + $0x30] sm:$0xff] %vm403_vm3, %v397_v30  ;;  %v400_v34 = vadd.f32 %v3218_v33, %v3081_v12  ;;  %v391_v35 = vpop.f32.mrb[7].mxu0  ;;  %v476_v37 = vld [vmem:[#allocation3] sm:$0xff] }
  0xf1   : > { %408 = vst.msk [vmem:[#allocation3 + $0x20] sm:$0xff] %vm403_vm3, %v389_v32  ;;  %v392_v36 = vadd.f32 %v3081_v12, %v391_v35  ;;  %v479_v38 = vadd.f32 %v476_v37, %v469_v21 }
  0xf2   : > { %411 = vst.msk [vmem:[#allocation3 + $0x38] sm:$0xff] %vm403_vm3, %v400_v34  ;;  %v3726_v29 = vld [vmem:[#allocation3 + $0x8] sm:$0xff] }
  0xf3   : > { %409 = vst.msk [vmem:[#allocation3 + $0x28] sm:$0xff] %vm403_vm3, %v392_v36  ;;  %v3095_v40 = vmul.f32 -1.442695, %v479_v38 }
  0xf5   : > { %3355 = vpow2.f32 %v3095_v40 }
  0xf7   : > { %v3729_v31 = vld [vmem:[#allocation3 + $0x30] sm:$0xff] }
  0xf9   : > { %v478_v39 = vld [vmem:[#allocation3 + $0x38] sm:$0xff] }
  0xfa   : > { %v516_v41 = vadd.f32 %v478_v39, %v472_v26 }
  0xfc   : > { %v3096_v42 = vmul.f32 -1.442695, %v516_v41 }
  0xfe   : > { %3357 = vpow2.f32 %v3096_v42 }
  0xff   : > { %v3356_v43 = vpop.eup %3355 }
 0x100   : > { %v483_v44 = vadd.f32 1.0, %v3356_v43 }
 0x102   : > { %3359 = vrcp.f32 %v483_v44 }
 0x108   : > { %v3358_v45 = vpop.eup %3357 }
 0x109   : > { %v520_v46 = vadd.f32 1.0, %v3358_v45 }
 0x10b   : > { %3361 = vrcp.f32 %v520_v46 }
 0x10c   : > { %v3360_v47 = vpop.eup %3359 }
 0x115   : > { %v3362_v50 = vpop.eup %3361 }
 0x158   : > { %v492_v48 = vpop.permute.xlu1 %491 }
 0x159   : > { %v494_v49 = vmul.f32 %v3360_v47, %v492_v48 }
 0x15b   : > { %496 = vrot.lane.b32.xlu0 %v494_v49, %s3561_s8 }
 0x15c   : > { %v529_v51 = vpop.permute.xlu1 %528 }
 0x15d   : > { %v531_v52 = vmul.f32 %v3362_v50, %v529_v51 }
 0x15f   : > { %533 = vrot.lane.b32.xlu1 %v531_v52, %s3561_s8 }
 0x1cd   : > { %v497_v53 = vpop.permute.xlu0 %496 }
 0x1ce   : > { %v499_v54 = vadd.f32 %v497_v53, %v476_v37 }
 0x1d0   : > { %3363 = vtanh.f32 %v499_v54 }
 0x1d1   : > { %v534_v55 = vpop.permute.xlu1 %533 }
 0x1d2   : > { %v536_v56 = vadd.f32 %v534_v55, %v478_v39 }
 0x1d4   : > { %3365 = vtanh.f32 %v536_v56 }
 0x1da   : > { %v3364_v58 = vpop.eup %3363 }
 0x1db   : > { %502 = vrot.lane.b32.xlu0 %v3364_v58, %s3563_s15 }
 0x1de   : > { %v3366_v59 = vpop.eup %3365 }
 0x1df   : > { %539 = vrot.lane.b32.xlu1 %v3366_v59, %s3565_s16 }
 0x24d   : > { %v503_v60 = vpop.permute.xlu0 %502 }
 0x24e   : > { %v505_v61 = vsub.f32 %v3645_v8, %v503_v60 }
 0x250   : > { %507 = vrot.lane.b32.xlu0 %v505_v61, %s3566_s23 }
 0x251   : > { %v540_v62 = vpop.permute.xlu1 %539 }
 0x252   : > { %v542_v0 = vsub.f32 %v3647_v9, %v540_v62 }
 0x254   : > { %544 = vrot.lane.b32.xlu1 %v542_v0, %s3562_s12  ;;  %272 = vperm.xlu0 %3344, %v270_v63  }
 0x258   : > { %556 = vrot.lane.b32.xlu0 %v3645_v8, %s3561_s8 }
 0x2c2   : > { %v508_v1 = vpop.permute.xlu0 %507 }
 0x2c3   : > { %v510_v4 = vmul.f32 %v3360_v47, %v508_v1 }
 0x2c5   : > { %512 = vrot.lane.b32.xlu1 %v510_v4, %s3566_s23 }
 0x2c6   : > { %v545_v5 = vpop.permute.xlu1 %544 }
 0x2c7   : > { %v547_v6 = vmul.f32 %v3362_v50, %v545_v5 }
 0x2c9   : > { %549 = vrot.lane.b32.xlu1 %v547_v6, %s3566_s23 }
 0x2cd   : > { %566 = vrot.lane.b32.xlu1 %v3647_v9, %s3567_s24 }
 0x2d3   : > { %v3699_v7 = vpop.permute.xlu0 %272 }
 0x2d4   : > { %vm553_vm4 = vcmp.gt.s32.totalorder %v3699_v7, 0  ;;  %vm554_vm5 = vcmp.gt.s32.totalorder %v3699_v7, 7  ;;  %vm708_vm6 = vcmp.gt.s32.totalorder %v3699_v7, 1  ;;  %vm709_vm7 = vcmp.gt.s32.totalorder %v3699_v7, 6 }
 0x2d5   : > { %vm863_vm8 = vcmp.gt.s32.totalorder %v3699_v7, 2  ;;  %vm864_vm9 = vcmp.gt.s32.totalorder %v3699_v7, 5  ;;  %vm1018_vm10 = vcmp.gt.s32.totalorder %v3699_v7, 3  ;;  %vm1019_vm11 = vcmp.gt.s32.totalorder %v3699_v7, 4 }
 0x2d7   : > { %v557_v11 = vpop.permute.xlu0 %556 }
 0x337   : > { %v513_v10 = vpop.permute.xlu1 %512 }
 0x338   : > { %v3702_v12 = vadd.f32 %v3364_v58, %v513_v10 }
 0x33a   : > { %v559_v8 = vsel %vm553_vm4, %v3702_v12, %v557_v11 }
 0x33b   : > { %v550_v14 = vpop.permute.xlu1 %549  ;;  %561 = vrot.lane.b32.xlu0 %v559_v8, %s3563_s15 }
 0x33c   : > { %v3708_v15 = vadd.f32 %v3366_v59, %v550_v14 }
 0x33f   : > { %v567_v16 = vpop.permute.xlu1 %566 }
 0x340   : > { %v569_v9 = vsel %vm554_vm5, %v3708_v15, %v567_v16 }
 0x341   : > { %571 = vrot.lane.b32.xlu1 %v569_v9, %s3565_s16 }
 0x3ad   : > { %v562_v17 = vpop.permute.xlu0 %561 }
 0x3ae   : > { %564 = vst.msk [vmem:[#allocation4] sm:$0xff] %vm420_vm0, %v562_v17 }
 0x3b3   : > { %v572_v18 = vpop.permute.xlu1 %571 }
 0x3b4   : > { %574 = vst.msk [vmem:[#allocation4 + $0x8] sm:$0xff] %vm420_vm0, %v572_v18 }
 0x3b5   : > { %v589_v19 = vld [vmem:[#allocation4] sm:$0xff] }
 0x3bb   : > { %v590_v20 = vld [vmem:[#allocation4 + $0x8] sm:$0xff] }
 0x3bc   : > { %v591_v21 = vpack.c.bf16 %v590_v20, %v589_v19 }
 0x3be   : > { %3228 = vmatmul.mubr.msk.bf16.vlgmr.msra.gmra.mrb[4].mxu1 %vm420_vm0, %v591_v21 }
 0x3bf   : > { %3232 = vmatpush3.bf16.msra.mxu1 %v3621_v3  ;;  %3233 = vmatprep.mubr.msk.bf16.mxu1 %vm3560_vm1, %v3559_v2 }
 0x3c0   : > { %3243 = vmatprep.subr.bf16.mxu1 %v3559_v2 }
 0x491   : > { %v629_v22 = vpop.f32.mrb[4].mxu1 }
 0x492   : > { %v647_v23 = vadd.f32 %v629_v22, %v3665_v13  ;;  %v3229_v24 = vpop.f32.mrb[5].mxu1  ;;  %v640_v30 = vadd.f32 %v3726_v29, %v629_v22  ;;  %v3772_v22 = vld [vmem:[#allocation3 + $0x28] sm:$0xff] }
 0x493   : > { %v632_v26 = vpop.f32.mrb[6].mxu1 }
 0x494   : > { %v681_v27 = vadd.f32 %v632_v26, %v3671_v25  ;;  %649 = vrot.lane.b32.xlu0 %v647_v23, %s3563_s15  ;;  %v3230_v28 = vpop.f32.mrb[7].mxu1  ;;  %v674_v32 = vadd.f32 %v3729_v31, %v632_v26  ;;  %v3098_v33 = vmul.f32 -1.442695, %v640_v30 }
 0x496   : > { %683 = vrot.lane.b32.xlu1 %v681_v27, %s3563_s15  ;;  %v3099_v34 = vmul.f32 -1.442695, %v674_v32  ;;  %3367 = vpow2.f32 %v3098_v33 }
 0x498   : > { %3369 = vpow2.f32 %v3099_v34 }
 0x4a0   : > { %v3368_v35 = vpop.eup %3367 }
 0x4a1   : > { %v644_v37 = vadd.f32 1.0, %v3368_v35 }
 0x4a2   : > { %v3370_v36 = vpop.eup %3369 }
 0x4a3   : > { %v678_v38 = vadd.f32 1.0, %v3370_v36  ;;  %3371 = vrcp.f32 %v644_v37 }
 0x4a5   : > { %3373 = vrcp.f32 %v678_v38 }
 0x4ad   : > { %v3372_v39 = vpop.eup %3371 }
 0x4af   : > { %v3374_v42 = vpop.eup %3373 }
 0x506   : > { %v650_v40 = vpop.permute.xlu0 %649 }
 0x507   : > { %v652_v41 = vmul.f32 %v3372_v39, %v650_v40 }
 0x508   : > { %v684_v43 = vpop.permute.xlu1 %683 }
 0x509   : > { %v686_v44 = vmul.f32 %v3374_v42, %v684_v43  ;;  %654 = vrot.lane.b32.xlu0 %v652_v41, %s3561_s8 }
 0x50b   : > { %688 = vrot.lane.b32.xlu1 %v686_v44, %s3561_s8 }
 0x57b   : > { %v655_v45 = vpop.permute.xlu0 %654 }
 0x57c   : > { %v657_v46 = vadd.f32 %v655_v45, %v3726_v29 }
 0x57d   : > { %v689_v47 = vpop.permute.xlu1 %688 }
 0x57e   : > { %3375 = vtanh.f32 %v657_v46  ;;  %v691_v48 = vadd.f32 %v689_v47, %v3729_v31 }
 0x580   : > { %3377 = vtanh.f32 %v691_v48 }
 0x588   : > { %v3376_v49 = vpop.eup %3375 }
 0x589   : > { %660 = vrot.lane.b32.xlu0 %v3376_v49, %s3563_s15 }
 0x58a   : > { %v3378_v50 = vpop.eup %3377 }
 0x58b   : > { %694 = vrot.lane.b32.xlu1 %v3378_v50, %s3565_s16 }
 0x5fb   : > { %v661_v51 = vpop.permute.xlu0 %660 }
 0x5fc   : > { %v663_v52 = vsub.f32 %v589_v19, %v661_v51 }
 0x5fd   : > { %v695_v53 = vpop.permute.xlu1 %694 }
 0x5fe   : > { %v697_v54 = vsub.f32 %v590_v20, %v695_v53  ;;  %665 = vrot.lane.b32.xlu0 %v663_v52, %s3566_s23 }
 0x600   : > { %699 = vrot.lane.b32.xlu1 %v697_v54, %s3562_s12 }
 0x670   : > { %v666_v55 = vpop.permute.xlu0 %665 }
 0x671   : > { %v668_v56 = vmul.f32 %v3372_v39, %v666_v55 }
 0x672   : > { %v700_v57 = vpop.permute.xlu1 %699 }
 0x673   : > { %v702_v58 = vmul.f32 %v3374_v42, %v700_v57  ;;  %670 = vrot.lane.b32.xlu0 %v668_v56, %s3566_s23 }
 0x675   : > { %704 = vrot.lane.b32.xlu1 %v702_v58, %s3566_s23 }
 0x677   : > { %711 = vrot.lane.b32.xlu0 %v589_v19, %s3561_s8 }
 0x679   : > { %721 = vrot.lane.b32.xlu1 %v590_v20, %s3567_s24  ;;  %v3769_v20 = vld [vmem:[#allocation3 + $0x10] sm:$0xff] }
 0x6e5   : > { %v671_v59 = vpop.permute.xlu0 %670 }
 0x6e6   : > { %v3744_v61 = vadd.f32 %v3376_v49, %v671_v59 }
 0x6e7   : > { %v705_v60 = vpop.permute.xlu1 %704 }
 0x6e8   : > { %v3747_v63 = vadd.f32 %v3378_v50, %v705_v60 }
 0x6e9   : > { %v712_v62 = vpop.permute.xlu0 %711 }
 0x6ea   : > { %v714_v0 = vsel %vm708_vm6, %v3744_v61, %v712_v62 }
 0x6eb   : > { %716 = vrot.lane.b32.xlu0 %v714_v0, %s3563_s15  ;;  %v722_v1 = vpop.permute.xlu1 %721 }
 0x6ec   : > { %v724_v4 = vsel %vm709_vm7, %v3747_v63, %v722_v1 }
 0x6ed   : > { %726 = vrot.lane.b32.xlu1 %v724_v4, %s3565_s16 }
 0x75d   : > { %v717_v5 = vpop.permute.xlu0 %716 }
 0x75e   : > { %719 = vst.msk [vmem:[#allocation4] sm:$0xff] %vm420_vm0, %v717_v5 }
 0x75f   : > { %v727_v6 = vpop.permute.xlu1 %726 }
 0x760   : > { %729 = vst.msk [vmem:[#allocation4 + $0x8] sm:$0xff] %vm420_vm0, %v727_v6 }
 0x765   : > { %v744_v10 = vld [vmem:[#allocation4] sm:$0xff] }
 0x767   : > { %v745_v11 = vld [vmem:[#allocation4 + $0x8] sm:$0xff] }
 0x768   : > { %v746_v8 = vpack.c.bf16 %v745_v11, %v744_v10 }
 0x76a   : > { %3234 = vmatmul.mubr.msk.bf16.vlgmr.msra.gmra.mrb[8].mxu1 %vm420_vm0, %v746_v8 }
 0x76b   : > { %3244 = vmatpush3.bf16.msra.mxu1 %v3621_v3  ;;  %3245 = vmatprep.mubr.msk.bf16.mxu1 %vm3560_vm1, %v3559_v2 }
 0x76c   : > { %3255 = vmatprep.subr.bf16.mxu1 %v3559_v2 }
 0x83d   : > { %v784_v14 = vpop.f32.mrb[8].mxu1 }
 0x83e   : > { %v802_v16 = vadd.f32 %v784_v14, %v3665_v13  ;;  %v3235_v9 = vpop.f32.mrb[9].mxu1  ;;  %v795_v21 = vadd.f32 %v3769_v20, %v784_v14 }
 0x83f   : > { %v787_v17 = vpop.f32.mrb[10].mxu1  ;;  %v3812_v9 = vld [vmem:[#allocation3 + $0x18] sm:$0xff] }
 0x840   : > { %v836_v18 = vadd.f32 %v787_v17, %v3671_v25  ;;  %804 = vrot.lane.b32.xlu0 %v802_v16, %s3563_s15  ;;  %v3236_v19 = vpop.f32.mrb[11].mxu1  ;;  %v829_v23 = vadd.f32 %v3772_v22, %v787_v17  ;;  %v3101_v24 = vmul.f32 -1.442695, %v795_v21 }
 0x842   : > { %838 = vrot.lane.b32.xlu1 %v836_v18, %s3563_s15  ;;  %v3102_v26 = vmul.f32 -1.442695, %v829_v23  ;;  %3379 = vpow2.f32 %v3101_v24  ;;  %v3815_v18 = vld [vmem:[#allocation3 + $0x20] sm:$0xff] }
 0x844   : > { %3381 = vpow2.f32 %v3102_v26 }
 0x84c   : > { %v3380_v27 = vpop.eup %3379 }
 0x84d   : > { %v799_v30 = vadd.f32 1.0, %v3380_v27 }
 0x84e   : > { %v3382_v28 = vpop.eup %3381 }
 0x84f   : > { %v833_v32 = vadd.f32 1.0, %v3382_v28  ;;  %3383 = vrcp.f32 %v799_v30 }
 0x851   : > { %3385 = vrcp.f32 %v833_v32 }
 0x859   : > { %v3384_v33 = vpop.eup %3383 }
 0x85b   : > { %v3386_v36 = vpop.eup %3385 }
 0x8b2   : > { %v805_v34 = vpop.permute.xlu0 %804 }
 0x8b3   : > { %v807_v35 = vmul.f32 %v3384_v33, %v805_v34 }
 0x8b4   : > { %v839_v37 = vpop.permute.xlu1 %838 }
 0x8b5   : > { %v841_v38 = vmul.f32 %v3386_v36, %v839_v37  ;;  %809 = vrot.lane.b32.xlu0 %v807_v35, %s3561_s8 }
 0x8b7   : > { %843 = vrot.lane.b32.xlu1 %v841_v38, %s3561_s8 }
 0x927   : > { %v810_v39 = vpop.permute.xlu0 %809 }
 0x928   : > { %v812_v40 = vadd.f32 %v810_v39, %v3769_v20 }
 0x929   : > { %v844_v41 = vpop.permute.xlu1 %843 }
 0x92a   : > { %3387 = vtanh.f32 %v812_v40  ;;  %v846_v42 = vadd.f32 %v844_v41, %v3772_v22 }
 0x92c   : > { %3389 = vtanh.f32 %v846_v42 }
 0x934   : > { %v3388_v43 = vpop.eup %3387 }
 0x935   : > { %815 = vrot.lane.b32.xlu0 %v3388_v43, %s3563_s15 }
 0x936   : > { %v3390_v44 = vpop.eup %3389 }
 0x937   : > { %849 = vrot.lane.b32.xlu1 %v3390_v44, %s3565_s16 }
 0x9a7   : > { %v816_v45 = vpop.permute.xlu0 %815 }
 0x9a8   : > { %v818_v46 = vsub.f32 %v744_v10, %v816_v45 }
 0x9a9   : > { %v850_v47 = vpop.permute.xlu1 %849 }
 0x9aa   : > { %v852_v48 = vsub.f32 %v745_v11, %v850_v47  ;;  %820 = vrot.lane.b32.xlu0 %v818_v46, %s3566_s23 }
 0x9ac   : > { %854 = vrot.lane.b32.xlu1 %v852_v48, %s3562_s12 }
 0xa1c   : > { %v821_v49 = vpop.permute.xlu0 %820 }
 0xa1d   : > { %v823_v50 = vmul.f32 %v3384_v33, %v821_v49 }
 0xa1e   : > { %v855_v51 = vpop.permute.xlu1 %854 }
 0xa1f   : > { %v857_v52 = vmul.f32 %v3386_v36, %v855_v51  ;;  %825 = vrot.lane.b32.xlu0 %v823_v50, %s3566_s23 }
 0xa21   : > { %859 = vrot.lane.b32.xlu1 %v857_v52, %s3566_s23 }
 0xa23   : > { %866 = vrot.lane.b32.xlu0 %v744_v10, %s3561_s8 }
 0xa25   : > { %876 = vrot.lane.b32.xlu1 %v745_v11, %s3567_s24 }
 0xa91   : > { %v826_v53 = vpop.permute.xlu0 %825 }
 0xa92   : > { %v3787_v55 = vadd.f32 %v3388_v43, %v826_v53 }
 0xa93   : > { %v860_v54 = vpop.permute.xlu1 %859 }
 0xa94   : > { %v3790_v57 = vadd.f32 %v3390_v44, %v860_v54 }
 0xa95   : > { %v867_v56 = vpop.permute.xlu0 %866 }
 0xa96   : > { %v869_v58 = vsel %vm863_vm8, %v3787_v55, %v867_v56 }
 0xa97   : > { %871 = vrot.lane.b32.xlu0 %v869_v58, %s3563_s15  ;;  %v877_v59 = vpop.permute.xlu1 %876 }
 0xa98   : > { %v879_v60 = vsel %vm864_vm9, %v3790_v57, %v877_v59 }
 0xa99   : > { %881 = vrot.lane.b32.xlu1 %v879_v60, %s3565_s16 }
 0xb09   : > { %v872_v62 = vpop.permute.xlu0 %871 }
 0xb0a   : > { %874 = vst.msk [vmem:[#allocation4] sm:$0xff] %vm420_vm0, %v872_v62 }
 0xb0b   : > { %v882_v0 = vpop.permute.xlu1 %881 }
 0xb0c   : > { %884 = vst.msk [vmem:[#allocation4 + $0x8] sm:$0xff] %vm420_vm0, %v882_v0 }
 0xb11   : > { %v899_v1 = vld [vmem:[#allocation4] sm:$0xff] }
 0xb13   : > { %v900_v4 = vld [vmem:[#allocation4 + $0x8] sm:$0xff] }
 0xb14   : > { %v901_v5 = vpack.c.bf16 %v900_v4, %v899_v1 }
 0xb16   : > { %3240 = vmatmul.mubr.msk.bf16.vlgmr.msra.gmra.mrb[8].mxu0 %vm420_vm0, %v901_v5 }
 0xb17   : > { %3250 = vmatpush3.bf16.msra.mxu0 %v3621_v3  ;;  %3251 = vmatprep.mubr.msk.bf16.mxu0 %vm3560_vm1, %v3559_v2 }
 0xb18   : > { %3261 = vmatprep.subr.bf16.mxu0 %v3559_v2 }
 0xbe9   : > { %v939_v6 = vpop.f32.mrb[8].mxu0 }
 0xbea   : > { %v957_v10 = vadd.f32 %v939_v6, %v3665_v13  ;;  %v3241_v11 = vpop.f32.mrb[9].mxu0  ;;  %v950_v17 = vadd.f32 %v3812_v9, %v939_v6 }
 0xbeb   : > { %v942_v8 = vpop.f32.mrb[10].mxu0 }
 0xbec   : > { %v991_v14 = vadd.f32 %v942_v8, %v3671_v25  ;;  %959 = vrot.lane.b32.xlu0 %v957_v10, %s3563_s15  ;;  %v3242_v16 = vpop.f32.mrb[11].mxu0  ;;  %v984_v19 = vadd.f32 %v3815_v18, %v942_v8  ;;  %v3104_v21 = vmul.f32 -1.442695, %v950_v17 }
 0xbee   : > { %993 = vrot.lane.b32.xlu1 %v991_v14, %s3563_s15  ;;  %v3105_v23 = vmul.f32 -1.442695, %v984_v19  ;;  %3391 = vpow2.f32 %v3104_v21 }
 0xbf0   : > { %3393 = vpow2.f32 %v3105_v23 }
 0xbf8   : > { %v3392_v24 = vpop.eup %3391 }
 0xbf9   : > { %v954_v27 = vadd.f32 1.0, %v3392_v24 }
 0xbfa   : > { %v3394_v26 = vpop.eup %3393 }
 0xbfb   : > { %v988_v28 = vadd.f32 1.0, %v3394_v26  ;;  %3395 = vrcp.f32 %v954_v27 }
 0xbfd   : > { %3397 = vrcp.f32 %v988_v28 }
 0xc05   : > { %v3396_v30 = vpop.eup %3395 }
 0xc07   : > { %v3398_v34 = vpop.eup %3397 }
 0xc5e   : > { %v960_v32 = vpop.permute.xlu0 %959 }
 0xc5f   : > { %v962_v33 = vmul.f32 %v3396_v30, %v960_v32 }
 0xc60   : > { %v994_v35 = vpop.permute.xlu1 %993 }
 0xc61   : > { %v996_v36 = vmul.f32 %v3398_v34, %v994_v35  ;;  %964 = vrot.lane.b32.xlu0 %v962_v33, %s3561_s8 }
 0xc63   : > { %998 = vrot.lane.b32.xlu1 %v996_v36, %s3561_s8 }
 0xcd3   : > { %v965_v37 = vpop.permute.xlu0 %964 }
 0xcd4   : > { %v967_v38 = vadd.f32 %v965_v37, %v3812_v9 }
 0xcd5   : > { %v999_v39 = vpop.permute.xlu1 %998 }
 0xcd6   : > { %3399 = vtanh.f32 %v967_v38  ;;  %v1001_v40 = vadd.f32 %v999_v39, %v3815_v18 }
 0xcd8   : > { %3401 = vtanh.f32 %v1001_v40 }
 0xce0   : > { %v3400_v41 = vpop.eup %3399 }
 0xce1   : > { %970 = vrot.lane.b32.xlu0 %v3400_v41, %s3563_s15 }
 0xce2   : > { %v3402_v42 = vpop.eup %3401 }
 0xce3   : > { %1004 = vrot.lane.b32.xlu1 %v3402_v42, %s3565_s16 }
 0xd53   : > { %v971_v43 = vpop.permute.xlu0 %970 }
 0xd54   : > { %v973_v44 = vsub.f32 %v899_v1, %v971_v43 }
 0xd55   : > { %v1005_v45 = vpop.permute.xlu1 %1004 }
 0xd56   : > { %v1007_v46 = vsub.f32 %v900_v4, %v1005_v45  ;;  %975 = vrot.lane.b32.xlu0 %v973_v44, %s3566_s23 }
 0xd58   : > { %1009 = vrot.lane.b32.xlu1 %v1007_v46, %s3562_s12 }
 0xdc8   : > { %v976_v47 = vpop.permute.xlu0 %975 }
 0xdc9   : > { %v978_v48 = vmul.f32 %v3396_v30, %v976_v47 }
 0xdca   : > { %v1010_v49 = vpop.permute.xlu1 %1009 }
 0xdcb   : > { %v1012_v50 = vmul.f32 %v3398_v34, %v1010_v49  ;;  %980 = vrot.lane.b32.xlu0 %v978_v48, %s3566_s23 }
 0xdcd   : > { %1014 = vrot.lane.b32.xlu1 %v1012_v50, %s3566_s23 }
 0xdcf   : > { %1021 = vrot.lane.b32.xlu0 %v899_v1, %s3561_s8 }
 0xdd1   : > { %1031 = vrot.lane.b32.xlu1 %v900_v4, %s3567_s24 }
 0xe3d   : > { %v981_v51 = vpop.permute.xlu0 %980 }
 0xe3e   : > { %v3830_v53 = vadd.f32 %v3400_v41, %v981_v51 }
 0xe3f   : > { %v1015_v52 = vpop.permute.xlu1 %1014 }
 0xe40   : > { %v3833_v56 = vadd.f32 %v3402_v42, %v1015_v52 }
 0xe41   : > { %v1022_v54 = vpop.permute.xlu0 %1021 }
 0xe42   : > { %v1024_v58 = vsel %vm1018_vm10, %v3830_v53, %v1022_v54 }
 0xe43   : > { %1026 = vrot.lane.b32.xlu0 %v1024_v58, %s3563_s15  ;;  %v1032_v59 = vpop.permute.xlu1 %1031 }
 0xe44   : > { %v1034_v60 = vsel %vm1019_vm11, %v3833_v56, %v1032_v59 }
 0xe45   : > { %1036 = vrot.lane.b32.xlu1 %v1034_v60, %s3565_s16 }
 0xeb5   : > { %v1027_v62 = vpop.permute.xlu0 %1026 }
 0xeb6   : > { %1029 = vst.msk [vmem:[#allocation4] sm:$0xff] %vm420_vm0, %v1027_v62 }
 0xeb7   : > { %v1037_v0 = vpop.permute.xlu1 %1036 }
 0xeb8   : > { %1039 = vst.msk [vmem:[#allocation4 + $0x8] sm:$0xff] %vm420_vm0, %v1037_v0 }
 0xebd   : > { %v1054_v1 = vld [vmem:[#allocation4] sm:$0xff] }
 0xebf   : > { %v1055_v4 = vld [vmem:[#allocation4 + $0x8] sm:$0xff] }
 0xec0   : > { %v1056_v5 = vpack.c.bf16 %v1055_v4, %v1054_v1 }
 0xec2   : > { %3246 = vmatmul.mubr.msk.bf16.vlgmr.msra.gmra.mrb[12].mxu1 %vm420_vm0, %v1056_v5 }
 0xec3   : > { %3256 = vmatpush3.bf16.msra.mxu1 %v3621_v3  ;;  %3257 = vmatprep.mubr.msk.bf16.mxu1 %vm3560_vm1, %v3559_v2 }
 0xf95   : > { %v1094_v6 = vpop.f32.mrb[12].mxu1 }
 0xf96   : > { %v1110_v10 = vadd.f32 %v1094_v6, %v3665_v13  ;;  %v3247_v11 = vpop.f32.mrb[13].mxu1  ;;  %v1103_v17 = vadd.f32 %v1094_v6, %v3815_v18 }
 0xf97   : > { %v1097_v8 = vpop.f32.mrb[14].mxu1 }
 0xf98   : > { %v1144_v14 = vadd.f32 %v1097_v8, %v3671_v25  ;;  %1112 = vrot.lane.b32.xlu0 %v1110_v10, %s3563_s15  ;;  %v3248_v16 = vpop.f32.mrb[15].mxu1  ;;  %v1137_v19 = vadd.f32 %v1097_v8, %v3812_v9  ;;  %v3107_v21 = vmul.f32 -1.442695, %v1103_v17 }
 0xf9a   : > { %1146 = vrot.lane.b32.xlu1 %v1144_v14, %s3563_s15  ;;  %v3108_v23 = vmul.f32 -1.442695, %v1137_v19  ;;  %3403 = vpow2.f32 %v3107_v21 }
 0xf9c   : > { %3405 = vpow2.f32 %v3108_v23 }
 0xfa4   : > { %v3404_v24 = vpop.eup %3403 }
 0xfa5   : > { %v1107_v27 = vadd.f32 1.0, %v3404_v24 }
 0xfa6   : > { %v3406_v26 = vpop.eup %3405 }
 0xfa7   : > { %v1141_v28 = vadd.f32 1.0, %v3406_v26  ;;  %3407 = vrcp.f32 %v1107_v27 }
 0xfa9   : > { %3409 = vrcp.f32 %v1141_v28 }
 0xfb1   : > { %v3408_v30 = vpop.eup %3407 }
 0xfb3   : > { %v3410_v34 = vpop.eup %3409 }
0x100a   : > { %v1113_v32 = vpop.permute.xlu0 %1112 }
0x100b   : > { %v1115_v33 = vmul.f32 %v3408_v30, %v1113_v32 }
0x100c   : > { %v1147_v35 = vpop.permute.xlu1 %1146 }
0x100d   : > { %v1149_v36 = vmul.f32 %v3410_v34, %v1147_v35  ;;  %1117 = vrot.lane.b32.xlu0 %v1115_v33, %s3561_s8 }
0x100f   : > { %1151 = vrot.lane.b32.xlu1 %v1149_v36, %s3561_s8 }
0x107f   : > { %v1118_v37 = vpop.permute.xlu0 %1117 }
0x1080   : > { %v1120_v38 = vadd.f32 %v1118_v37, %v3815_v18 }
0x1081   : > { %v1152_v39 = vpop.permute.xlu1 %1151 }
0x1082   : > { %3411 = vtanh.f32 %v1120_v38  ;;  %v1154_v40 = vadd.f32 %v1152_v39, %v3812_v9 }
0x1084   : > { %3413 = vtanh.f32 %v1154_v40 }
0x108c   : > { %v3412_v41 = vpop.eup %3411 }
0x108d   : > { %1123 = vrot.lane.b32.xlu0 %v3412_v41, %s3563_s15 }
0x108e   : > { %v3414_v42 = vpop.eup %3413 }
0x108f   : > { %1157 = vrot.lane.b32.xlu1 %v3414_v42, %s3565_s16 }
0x10ff   : > { %v1124_v43 = vpop.permute.xlu0 %1123 }
0x1100   : > { %v1126_v44 = vsub.f32 %v1054_v1, %v1124_v43 }
0x1101   : > { %v1158_v45 = vpop.permute.xlu1 %1157 }
0x1102   : > { %v1160_v46 = vsub.f32 %v1055_v4, %v1158_v45  ;;  %1128 = vrot.lane.b32.xlu0 %v1126_v44, %s3566_s23 }
0x1104   : > { %1162 = vrot.lane.b32.xlu1 %v1160_v46, %s3562_s12 }
0x1174   : > { %v1129_v18 = vpop.permute.xlu0 %1128 }
0x1175   : > { %v1131_v47 = vmul.f32 %v3408_v30, %v1129_v18 }
0x1176   : > { %v1163_v48 = vpop.permute.xlu1 %1162 }
0x1177   : > { %v1165_v49 = vmul.f32 %v3410_v34, %v1163_v48  ;;  %1133 = vrot.lane.b32.xlu0 %v1131_v47, %s3566_s23 }
0x1179   : > { %1167 = vrot.lane.b32.xlu1 %v1165_v49, %s3566_s23 }
0x117b   : > { %1172 = vrot.lane.b32.xlu0 %v1054_v1, %s3561_s8 }
0x117d   : > { %1182 = vrot.lane.b32.xlu1 %v1055_v4, %s3567_s24 }
0x11e9   : > { %v1134_v9 = vpop.permute.xlu0 %1133 }
0x11ea   : > { %v3868_v51 = vadd.f32 %v3412_v41, %v1134_v9 }
0x11eb   : > { %v1168_v50 = vpop.permute.xlu1 %1167 }
0x11ec   : > { %v3870_v54 = vadd.f32 %v3414_v42, %v1168_v50 }
0x11ed   : > { %v1173_v52 = vpop.permute.xlu0 %1172 }
0x11ee   : > { %v1175_v58 = vsel %vm1019_vm11, %v3868_v51, %v1173_v52 }
0x11ef   : > { %1177 = vrot.lane.b32.xlu0 %v1175_v58, %s3563_s15  ;;  %v1183_v59 = vpop.permute.xlu1 %1182 }
0x11f0   : > { %v1185_v60 = vsel %vm1018_vm10, %v3870_v54, %v1183_v59 }
0x11f1   : > { %1187 = vrot.lane.b32.xlu1 %v1185_v60, %s3565_s16 }
0x1261   : > { %v1178_v62 = vpop.permute.xlu0 %1177 }
0x1262   : > { %1180 = vst.msk [vmem:[#allocation4] sm:$0xff] %vm420_vm0, %v1178_v62 }
0x1263   : > { %v1188_v0 = vpop.permute.xlu1 %1187 }
0x1264   : > { %1190 = vst.msk [vmem:[#allocation4 + $0x8] sm:$0xff] %vm420_vm0, %v1188_v0 }
0x1269   : > { %v1203_v1 = vld [vmem:[#allocation4] sm:$0xff] }
0x126b   : > { %v1204_v4 = vld [vmem:[#allocation4 + $0x8] sm:$0xff] }
0x126c   : > { %v1205_v5 = vpack.c.bf16 %v1204_v4, %v1203_v1 }
0x126e   : > { %3252 = vmatmul.mubr.msk.bf16.vlgmr.msra.gmra.mrb[12].mxu0 %vm420_vm0, %v1205_v5 }
0x126f   : > { %3262 = vmatpush3.bf16.msra.mxu0 %v3621_v3  ;;  %3263 = vmatprep.mubr.msk.bf16.mxu0 %vm3560_vm1, %v3559_v2 }
0x1270   : > { %3279 = vmatprep.subr.bf16.mxu0 %v3559_v2 }
0x1341   : > { %v1243_v6 = vpop.f32.mrb[12].mxu0 }
0x1342   : > { %v1259_v10 = vadd.f32 %v1243_v6, %v3665_v13  ;;  %v3253_v11 = vpop.f32.mrb[13].mxu0  ;;  %v1252_v17 = vadd.f32 %v1243_v6, %v3772_v22 }
0x1343   : > { %v1246_v8 = vpop.f32.mrb[14].mxu0 }
0x1344   : > { %v1293_v14 = vadd.f32 %v1246_v8, %v3671_v25  ;;  %1261 = vrot.lane.b32.xlu0 %v1259_v10, %s3563_s15  ;;  %v3254_v16 = vpop.f32.mrb[15].mxu0  ;;  %v1286_v3 = vadd.f32 %v1246_v8, %v3769_v20  ;;  %v3110_v19 = vmul.f32 -1.442695, %v1252_v17 }
0x1346   : > { %1295 = vrot.lane.b32.xlu1 %v1293_v14, %s3563_s15  ;;  %v3111_v21 = vmul.f32 -1.442695, %v1286_v3  ;;  %3415 = vpow2.f32 %v3110_v19 }
0x1348   : > { %3417 = vpow2.f32 %v3111_v21 }
0x1350   : > { %v3416_v23 = vpop.eup %3415 }
0x1351   : > { %v1256_v26 = vadd.f32 1.0, %v3416_v23 }
0x1352   : > { %v3418_v24 = vpop.eup %3417 }
0x1353   : > { %v1290_v27 = vadd.f32 1.0, %v3418_v24  ;;  %3419 = vrcp.f32 %v1256_v26 }
0x1355   : > { %3421 = vrcp.f32 %v1290_v27 }
0x135d   : > { %v3420_v28 = vpop.eup %3419 }
0x135f   : > { %v3422_v33 = vpop.eup %3421 }
0x13b6   : > { %v1262_v30 = vpop.permute.xlu0 %1261 }
0x13b7   : > { %v1264_v32 = vmul.f32 %v3420_v28, %v1262_v30 }
0x13b8   : > { %v1296_v34 = vpop.permute.xlu1 %1295 }
0x13b9   : > { %v1298_v35 = vmul.f32 %v3422_v33, %v1296_v34  ;;  %1266 = vrot.lane.b32.xlu0 %v1264_v32, %s3561_s8 }
0x13bb   : > { %1300 = vrot.lane.b32.xlu1 %v1298_v35, %s3561_s8 }
0x142b   : > { %v1267_v36 = vpop.permute.xlu0 %1266 }
0x142c   : > { %v1269_v37 = vadd.f32 %v1267_v36, %v3772_v22 }
0x142d   : > { %v1301_v38 = vpop.permute.xlu1 %1300 }
0x142e   : > { %3423 = vtanh.f32 %v1269_v37  ;;  %v1303_v39 = vadd.f32 %v1301_v38, %v3769_v20 }
0x1430   : > { %3425 = vtanh.f32 %v1303_v39 }
0x1438   : > { %v3424_v40 = vpop.eup %3423 }
0x1439   : > { %1272 = vrot.lane.b32.xlu0 %v3424_v40, %s3563_s15 }
0x143a   : > { %v3426_v41 = vpop.eup %3425 }
0x143b   : > { %1306 = vrot.lane.b32.xlu1 %v3426_v41, %s3565_s16 }
0x14ab   : > { %v1273_v42 = vpop.permute.xlu0 %1272 }
0x14ac   : > { %v1275_v43 = vsub.f32 %v1203_v1, %v1273_v42 }
0x14ad   : > { %v1307_v44 = vpop.permute.xlu1 %1306 }
0x14ae   : > { %v1309_v45 = vsub.f32 %v1204_v4, %v1307_v44  ;;  %1277 = vrot.lane.b32.xlu0 %v1275_v43, %s3566_s23 }
0x14b0   : > { %1311 = vrot.lane.b32.xlu1 %v1309_v45, %s3562_s12 }
0x1520   : > { %v1278_v22 = vpop.permute.xlu0 %1277 }
0x1521   : > { %v1280_v46 = vmul.f32 %v3420_v28, %v1278_v22 }
0x1522   : > { %v1312_v18 = vpop.permute.xlu1 %1311 }
0x1523   : > { %v1314_v47 = vmul.f32 %v3422_v33, %v1312_v18  ;;  %1282 = vrot.lane.b32.xlu0 %v1280_v46, %s3566_s23 }
0x1525   : > { %1316 = vrot.lane.b32.xlu1 %v1314_v47, %s3566_s23 }
0x1527   : > { %1321 = vrot.lane.b32.xlu0 %v1203_v1, %s3561_s8 }
0x1529   : > { %1331 = vrot.lane.b32.xlu1 %v1204_v4, %s3567_s24 }
0x1595   : > { %v1283_v20 = vpop.permute.xlu0 %1282 }
0x1596   : > { %v3905_v49 = vadd.f32 %v3424_v40, %v1283_v20 }
0x1597   : > { %v1317_v48 = vpop.permute.xlu1 %1316 }
0x1598   : > { %v3907_v50 = vadd.f32 %v3426_v41, %v1317_v48 }
0x1599   : > { %v1322_v9 = vpop.permute.xlu0 %1321 }
0x159a   : > { %v1324_v52 = vsel %vm864_vm9, %v3905_v49, %v1322_v9 }
0x159b   : > { %1326 = vrot.lane.b32.xlu0 %v1324_v52, %s3563_s15  ;;  %v1332_v58 = vpop.permute.xlu1 %1331 }
0x159c   : > { %v1334_v59 = vsel %vm863_vm8, %v3907_v50, %v1332_v58 }
0x159d   : > { %1336 = vrot.lane.b32.xlu1 %v1334_v59, %s3565_s16 }
0x160d   : > { %v1327_v60 = vpop.permute.xlu0 %1326 }
0x160e   : > { %1329 = vst.msk [vmem:[#allocation4] sm:$0xff] %vm420_vm0, %v1327_v60 }
0x160f   : > { %v1337_v62 = vpop.permute.xlu1 %1336 }
0x1610   : > { %1339 = vst.msk [vmem:[#allocation4 + $0x8] sm:$0xff] %vm420_vm0, %v1337_v62 }
0x1615   : > { %v1352_v0 = vld [vmem:[#allocation4] sm:$0xff] }
0x1617   : > { %v1353_v1 = vld [vmem:[#allocation4 + $0x8] sm:$0xff] }
0x1618   : > { %v1354_v4 = vpack.c.bf16 %v1353_v1, %v1352_v0 }
0x161a   : > { %3258 = vmatmul.mubr.msk.bf16.vlgmr.msra.gmra.mrb[16].mxu1 %vm420_vm0, %v1354_v4 }
0x16ed   : > { %v1392_v5 = vpop.f32.mrb[16].mxu1 }
0x16ee   : > { %v1408_v6 = vadd.f32 %v1392_v5, %v3665_v13  ;;  %v3259_v10 = vpop.f32.mrb[17].mxu1  ;;  %v1401_v16 = vadd.f32 %v1392_v5, %v3729_v31 }
0x16ef   : > { %v1395_v11 = vpop.f32.mrb[18].mxu1 }
0x16f0   : > { %v1442_v8 = vadd.f32 %v1395_v11, %v3671_v25  ;;  %1410 = vrot.lane.b32.xlu0 %v1408_v6, %s3563_s15  ;;  %v3260_v14 = vpop.f32.mrb[19].mxu1  ;;  %v1435_v17 = vadd.f32 %v1395_v11, %v3726_v29  ;;  %v3113_v3 = vmul.f32 -1.442695, %v1401_v16 }
0x16f1   : > { %v3547_v14 = vld [vmem:[#allocation3 + $0x38] sm:$0xff] }
0x16f2   : > { %1444 = vrot.lane.b32.xlu1 %v1442_v8, %s3563_s15  ;;  %v3114_v19 = vmul.f32 -1.442695, %v1435_v17  ;;  %3427 = vpow2.f32 %v3113_v3  ;;  %v3548_v17 = vld [vmem:[#allocation3] sm:$0xff] }
0x16f4   : > { %3429 = vpow2.f32 %v3114_v19 }
0x16fc   : > { %v3428_v21 = vpop.eup %3427 }
0x16fd   : > { %v1405_v24 = vadd.f32 1.0, %v3428_v21 }
0x16fe   : > { %v3430_v23 = vpop.eup %3429 }
0x16ff   : > { %v1439_v26 = vadd.f32 1.0, %v3430_v23  ;;  %3431 = vrcp.f32 %v1405_v24 }
0x1701   : > { %3433 = vrcp.f32 %v1439_v26 }
0x1709   : > { %v3432_v27 = vpop.eup %3431 }
0x170b   : > { %v3434_v32 = vpop.eup %3433 }
0x1762   : > { %v1411_v28 = vpop.permute.xlu0 %1410 }
0x1763   : > { %v1413_v30 = vmul.f32 %v3432_v27, %v1411_v28 }
0x1764   : > { %v1445_v33 = vpop.permute.xlu1 %1444 }
0x1765   : > { %v1447_v34 = vmul.f32 %v3434_v32, %v1445_v33  ;;  %1415 = vrot.lane.b32.xlu0 %v1413_v30, %s3561_s8 }
0x1767   : > { %1449 = vrot.lane.b32.xlu1 %v1447_v34, %s3561_s8 }
0x17d7   : > { %v1416_v35 = vpop.permute.xlu0 %1415 }
0x17d8   : > { %v1418_v36 = vadd.f32 %v1416_v35, %v3729_v31 }
0x17d9   : > { %v1450_v37 = vpop.permute.xlu1 %1449 }
0x17da   : > { %3435 = vtanh.f32 %v1418_v36  ;;  %v1452_v38 = vadd.f32 %v1450_v37, %v3726_v29 }
0x17dc   : > { %3437 = vtanh.f32 %v1452_v38 }
0x17e4   : > { %v3436_v39 = vpop.eup %3435 }
0x17e5   : > { %1421 = vrot.lane.b32.xlu0 %v3436_v39, %s3563_s15 }
0x17e6   : > { %v3438_v40 = vpop.eup %3437 }
0x17e7   : > { %1455 = vrot.lane.b32.xlu1 %v3438_v40, %s3565_s16 }
0x1857   : > { %v1422_v41 = vpop.permute.xlu0 %1421 }
0x1858   : > { %v1424_v42 = vsub.f32 %v1352_v0, %v1422_v41 }
0x1859   : > { %v1456_v43 = vpop.permute.xlu1 %1455 }
0x185a   : > { %v1458_v44 = vsub.f32 %v1353_v1, %v1456_v43  ;;  %1426 = vrot.lane.b32.xlu0 %v1424_v42, %s3566_s23 }
0x185c   : > { %1460 = vrot.lane.b32.xlu1 %v1458_v44, %s3562_s12 }
0x18cc   : > { %v1427_v31 = vpop.permute.xlu0 %1426 }
0x18cd   : > { %v1429_v45 = vmul.f32 %v3432_v27, %v1427_v31 }
0x18ce   : > { %v1461_v22 = vpop.permute.xlu1 %1460 }
0x18cf   : > { %v1463_v46 = vmul.f32 %v3434_v32, %v1461_v22  ;;  %1431 = vrot.lane.b32.xlu0 %v1429_v45, %s3566_s23 }
0x18d1   : > { %1465 = vrot.lane.b32.xlu1 %v1463_v46, %s3566_s23  ;;  %v575_v46 = vsel %vm553_vm4, %v3702_v12, 0.0  ;;  %v3988_v12 = vld [vmem:[%s4497_s4 + $0x8] sm:$0xff]  }
0x18d3   : > { %1470 = vrot.lane.b32.xlu0 %v1352_v0, %s3561_s8 }
0x18d5   : > { %1480 = vrot.lane.b32.xlu1 %v1353_v1, %s3567_s24 }
0x1941   : > { %v1432_v29 = vpop.permute.xlu0 %1431 }
0x1942   : > { %v3938_v47 = vadd.f32 %v3436_v39, %v1432_v29  ;;  %v730_v29 = vsel %vm708_vm6, %v3744_v61, 0.0 }
0x1943   : > { %v1466_v18 = vpop.permute.xlu1 %1465 }
0x1944   : > { %v3940_v48 = vadd.f32 %v3438_v40, %v1466_v18  ;;  %v885_v18 = vsel %vm863_vm8, %v3787_v55, 0.0 }
0x1945   : > { %v1471_v20 = vpop.permute.xlu0 %1470 }
0x1946   : > { %v1473_v9 = vsel %vm709_vm7, %v3938_v47, %v1471_v20  ;;  %v1040_v20 = vsel %vm1018_vm10, %v3830_v53, 0.0 }
0x1947   : > { %1475 = vrot.lane.b32.xlu0 %v1473_v9, %s3563_s15  ;;  %v1481_v52 = vpop.permute.xlu1 %1480 }
0x1948   : > { %v1483_v58 = vsel %vm708_vm6, %v3940_v48, %v1481_v52 }
0x1949   : > { %1485 = vrot.lane.b32.xlu1 %v1483_v58, %s3565_s16 }
0x19b9   : > { %v1476_v59 = vpop.permute.xlu0 %1475 }
0x19ba   : > { %1478 = vst.msk [vmem:[#allocation4] sm:$0xff] %vm420_vm0, %v1476_v59 }
0x19bb   : > { %v1486_v60 = vpop.permute.xlu1 %1485 }
0x19bc   : > { %1488 = vst.msk [vmem:[#allocation4 + $0x8] sm:$0xff] %vm420_vm0, %v1486_v60 }
0x19c1   : > { %v1501_v62 = vld [vmem:[#allocation4] sm:$0xff] }
0x19c3   : > { %v1502_v0 = vld [vmem:[#allocation4 + $0x8] sm:$0xff] }
0x19c4   : > { %v1503_v1 = vpack.c.bf16 %v1502_v0, %v1501_v62 }
0x19c6   : > { %3264 = vmatmul.mubr.msk.bf16.vlgmr.msra.gmra.mrb[16].mxu0 %vm420_vm0, %v1503_v1  ;;  %v1495_v1 = vsel %vm708_vm6, %v3940_v48, 0.0  ;;  %v1197_v48 = vsel %vm1018_vm10, %v3870_v54, 0.0 }
0x19c7   : > { %3281 = vmatprep.mubr.msk.bf16.mxu0 %vm3560_vm1, %v3559_v2  ;;  %3280 = vmatpush3.bf16.msra.mxu0 %v3988_v12 }
0x19c8   : > { %3285 = vmatprep.subr.bf16.mxu0 %v3559_v2 }
0x1a99   : > { %v1541_v4 = vpop.f32.mrb[16].mxu0 }
0x1a9a   : > { %v1557_v5 = vadd.f32 %v1541_v4, %v3665_v13  ;;  %v3265_v6 = vpop.f32.mrb[17].mxu0  ;;  %v1550_v16 = vadd.f32 %v3547_v14, %v1541_v4 }
0x1a9b   : > { %v1544_v10 = vpop.f32.mrb[18].mxu0 }
0x1a9c   : > { %v1591_v11 = vadd.f32 %v1544_v10, %v3671_v25  ;;  %1559 = vrot.lane.b32.xlu0 %v1557_v5, %s3563_s15  ;;  %v3266_v8 = vpop.f32.mrb[19].mxu0  ;;  %v1584_v3 = vadd.f32 %v3548_v17, %v1544_v10  ;;  %v3116_v19 = vmul.f32 -1.442695, %v1550_v16  ;;  %v1346_v5 = vsel %vm863_vm8, %v3907_v50, 0.0  ;;  %v3354_v10 = vld [vmem:[%s4495_s2 + $0x18] sm:$0xff]  }
0x1a9d   : > { %v1047_v50 = vsel %vm1019_vm11, %v3833_v56, 0.0  ;;  %v892_v8 = vsel %vm864_vm9, %v3790_v57, 0.0  ;;  %v581_v56 = vsel %vm554_vm5, %v3708_v15, 0.0  ;;  %v1191_v57 = vsel %vm1019_vm11, %v3868_v51, 0.0  ;;  %v3133_v51 = vld [vmem:[%s4498_s5 + $0x1] ss:$0 sm:$0xff] }
0x1a9e   : > { %1593 = vrot.lane.b32.xlu1 %v1591_v11, %s3563_s15  ;;  %v3117_v21 = vmul.f32 -1.442695, %v1584_v3  ;;  %3439 = vpow2.f32 %v3116_v19  ;;  %v1340_v16 = vsel %vm864_vm9, %v3905_v49, 0.0  ;;  %v1489_v15 = vsel %vm709_vm7, %v3938_v47, 0.0 }
0x1aa0   : > { %3441 = vpow2.f32 %v3117_v21 }
0x1aa8   : > { %v3440_v23 = vpop.eup %3439 }
0x1aa9   : > { %v1554_v13 = vadd.f32 1.0, %v3440_v23 }
0x1aaa   : > { %v3442_v24 = vpop.eup %3441 }
0x1aab   : > { %v1588_v26 = vadd.f32 1.0, %v3442_v24  ;;  %3443 = vrcp.f32 %v1554_v13 }
0x1aad   : > { %3445 = vrcp.f32 %v1588_v26 }
0x1ab5   : > { %v3444_v25 = vpop.eup %3443 }
0x1ab7   : > { %v3446_v30 = vpop.eup %3445 }
0x1b0e   : > { %v1560_v27 = vpop.permute.xlu0 %1559 }
0x1b0f   : > { %v1562_v28 = vmul.f32 %v3444_v25, %v1560_v27 }
0x1b10   : > { %v1594_v32 = vpop.permute.xlu1 %1593 }
0x1b11   : > { %v1596_v33 = vmul.f32 %v3446_v30, %v1594_v32  ;;  %1564 = vrot.lane.b32.xlu0 %v1562_v28, %s3561_s8 }
0x1b13   : > { %1598 = vrot.lane.b32.xlu1 %v1596_v33, %s3561_s8 }
0x1b83   : > { %v1565_v34 = vpop.permute.xlu0 %1564 }
0x1b84   : > { %v1567_v35 = vadd.f32 %v3547_v14, %v1565_v34  ;;  %v737_v14 = vsel %vm709_vm7, %v3747_v63, 0.0 }
0x1b85   : > { %v1599_v36 = vpop.permute.xlu1 %1598 }
0x1b86   : > { %3447 = vtanh.f32 %v1567_v35  ;;  %v1601_v37 = vadd.f32 %v3548_v17, %v1599_v36 }
0x1b88   : > { %3449 = vtanh.f32 %v1601_v37 }
0x1b90   : > { %v3448_v38 = vpop.eup %3447 }
0x1b91   : > { %1570 = vrot.lane.b32.xlu0 %v3448_v38, %s3563_s15 }
0x1b92   : > { %v3450_v39 = vpop.eup %3449 }
0x1b93   : > { %1604 = vrot.lane.b32.xlu1 %v3450_v39, %s3565_s16 }
0x1c03   : > { %v1571_v40 = vpop.permute.xlu0 %1570 }
0x1c04   : > { %v1573_v41 = vsub.f32 %v1501_v62, %v1571_v40 }
0x1c05   : > { %v1605_v42 = vpop.permute.xlu1 %1604 }
0x1c06   : > { %v1607_v43 = vsub.f32 %v1502_v0, %v1605_v42  ;;  %1575 = vrot.lane.b32.xlu0 %v1573_v41, %s3566_s23 }
0x1c08   : > { %1609 = vrot.lane.b32.xlu1 %v1607_v43, %s3562_s12 }
0x1c78   : > { %v1576_v44 = vpop.permute.xlu0 %1575 }
0x1c79   : > { %v1578_v31 = vmul.f32 %v3444_v25, %v1576_v44 }
0x1c7a   : > { %v1610_v45 = vpop.permute.xlu1 %1609 }
0x1c7b   : > { %v1612_v22 = vmul.f32 %v3446_v30, %v1610_v45  ;;  %1580 = vrot.lane.b32.xlu0 %v1578_v31, %s3566_s23 }
0x1c7d   : > { %1614 = vrot.lane.b32.xlu1 %v1612_v22, %s3566_s23 }
0x1c7f   : > { %1619 = vrot.lane.b32.xlu0 %v1501_v62, %s3561_s8 }
0x1c81   : > { %1629 = vrot.lane.b32.xlu1 %v1502_v0, %s3567_s24  ;;  %v3353_v0 = vld [vmem:[%s4495_s2 + $0x10] sm:$0xff]  }
0x1c82   : > { %3267 = vmatprep.subr.bf16.mxu1 %v3353_v0 }
0x1c83   : > { %577 = vrot.lane.b32.xlu0 %v575_v46, %s3563_s15  ;;  %3268 = vmatpush3.bf16.msra.mxu1 %v3353_v0 }
0x1c84   : > { %3269 = vmatprep.subr.bf16.mxu1 %v3354_v10 }
0x1c85   : > { %732 = vrot.lane.b32.xlu1 %v730_v29, %s3563_s15 }
0x1c87   : > { %887 = vrot.lane.b32.xlu0 %v885_v18, %s3563_s15  ;;  %3270 = vmatpush3.bf16.msra.mxu1 %v3354_v10 }
0x1c88   : > { %3291 = vmatprep.subr.bf16.mxu1 %v3559_v2 }
0x1c89   : > { %1042 = vrot.lane.b32.xlu1 %v1040_v20, %s3563_s15 }
0x1ced   : > { %v1581_v61 = vpop.permute.xlu0 %1580 }
0x1cee   : > { %v1583_v55 = vadd.f32 %v3448_v38, %v1581_v61 }
0x1cef   : > { %v1615_v9 = vpop.permute.xlu1 %1614 }
0x1cf0   : > { %v1617_v58 = vadd.f32 %v3450_v39, %v1615_v9  ;;  %v1638_v63 = vsel %vm554_vm5, %v1583_v55, 0.0 }
0x1cf1   : > { %v1620_v52 = vpop.permute.xlu0 %1619 }
0x1cf2   : > { %v1622_v59 = vsel %vm554_vm5, %v1583_v55, %v1620_v52  ;;  %v1644_v54 = vsel %vm553_vm4, %v1617_v58, 0.0  ;;  %v3123_v52 = vld [vmem:[%s4496_s3 + $0x1] ss:$0 sm:$0xff] }
0x1cf3   : > { %1624 = vrot.lane.b32.xlu0 %v1622_v59, %s3563_s15  ;;  %v1630_v53 = vpop.permute.xlu1 %1629 }
0x1cf4   : > { %v1632_v60 = vsel %vm553_vm4, %v1617_v58, %v1630_v53 }
0x1cf5   : > { %v578_v62 = vpop.permute.xlu0 %577  ;;  %1634 = vrot.lane.b32.xlu1 %v1632_v60, %s3565_s16 }
0x1cf6   : > { %580 = vst.msk [vmem:[#allocation2] sm:$0xff] %vm420_vm0, %v578_v62 }
0x1cf7   : > { %1497 = vrot.lane.b32.xlu0 %v1495_v1, %s3562_s12  ;;  %v733_v4 = vpop.permute.xlu1 %732 }
0x1cf8   : > { %736 = vst.msk [vmem:[#allocation2 + $0x8] sm:$0xff] %vm420_vm0, %v733_v4 }
0x1cf9   : > { %v888_v6 = vpop.permute.xlu0 %887  ;;  %1348 = vrot.lane.b32.xlu1 %v1346_v5, %s3562_s12 }
0x1cfa   : > { %891 = vst.msk [vmem:[#allocation2 + $0x10] sm:$0xff] %vm420_vm0, %v888_v6 }
0x1cfb   : > { %1199 = vrot.lane.b32.xlu0 %v1197_v48, %s3562_s12  ;;  %v1043_v11 = vpop.permute.xlu1 %1042 }
0x1cfc   : > { %1046 = vst.msk [vmem:[#allocation2 + $0x18] sm:$0xff] %vm420_vm0, %v1043_v11 }
0x1cfd   : > { %1049 = vrot.lane.b32.xlu1 %v1047_v50, %s3562_s12 }
0x1cff   : > { %894 = vrot.lane.b32.xlu0 %v892_v8, %s3562_s12 }
0x1d01   : > { %1646 = vrot.lane.b32.xlu1 %v1644_v54, %s3562_s12 }
0x1d03   : > { %583 = vrot.lane.b32.xlu0 %v581_v56, %s3562_s12 }
0x1d05   : > { %739 = vrot.lane.b32.xlu1 %v737_v14, %s3562_s12 }
0x1d07   : > { %1193 = vrot.lane.b32.xlu0 %v1191_v57, %s3563_s15 }
0x1d09   : > { %1342 = vrot.lane.b32.xlu1 %v1340_v16, %s3563_s15 }
0x1d0b   : > { %1491 = vrot.lane.b32.xlu0 %v1489_v15, %s3563_s15 }
0x1d0d   : > { %1640 = vrot.lane.b32.xlu1 %v1638_v63, %s3563_s15 }
0x1d0f   : > { %1846 = vrot.lane.b32.xlu0 %v3133_v51, %s3561_s8 }
0x1d11   : > { %1883 = vrot.lane.b32.xlu1 %v3133_v51, %s3562_s12 }
0x1d65   : > { %v1625_v49 = vpop.permute.xlu0 %1624 }
0x1d66   : > { %1627 = vst.msk [vmem:[#allocation4] sm:$0xff] %vm420_vm0, %v1625_v49 }
0x1d67   : > { %1782 = vst.msk [vmem:[#allocation4] sm:$0xff] %vm420_vm0, %v3559_v2  ;;  %v1635_v47 = vpop.permute.xlu1 %1634 }
0x1d68   : > { %1637 = vst.msk [vmem:[#allocation4 + $0x8] sm:$0xff] %vm420_vm0, %v1635_v47 }
0x1d69   : > { %1783 = vst.msk [vmem:[#allocation4 + $0x8] sm:$0xff] %vm420_vm0, %v3559_v2  ;;  %v1498_v17 = vpop.permute.xlu0 %1497 }
0x1d6a   : > { %1500 = vst.msk [vmem:[#allocation2 + $0x8] sm:$0xff] %vm587_vm12, %v1498_v17 }
0x1d6b   : > { %v1349_v3 = vpop.permute.xlu1 %1348 }
0x1d6c   : > { %1351 = vst.msk [vmem:[#allocation2 + $0x10] sm:$0xff] %vm587_vm12, %v1349_v3 }
0x1d6d   : > { %v1200_v19 = vpop.permute.xlu0 %1199 }
0x1d6e   : > { %1202 = vst.msk [vmem:[#allocation2 + $0x18] sm:$0xff] %vm587_vm12, %v1200_v19  ;;  %v4069_v21 = vld [vmem:[#allocation4] sm:$0xff] }
0x1d6f   : > { %v1050_v23 = vpop.permute.xlu1 %1049 }
0x1d70   : > { %1053 = vst.msk [vmem:[#allocation2 + $0x20] sm:$0xff] %vm587_vm12, %v1050_v23  ;;  %v4072_v24 = vld [vmem:[#allocation4 + $0x8] sm:$0xff] }
0x1d71   : > { %v895_v13 = vpop.permute.xlu0 %894  ;;  %v1786_v26 = vpack.c.bf16 %v4072_v24, %v4069_v21  ;;  %v1651_v35 = vld [vmem:[#allocation2 + $0x8] sm:$0xff] }
0x1d72   : > { %898 = vst.msk [vmem:[#allocation2 + $0x28] sm:$0xff] %vm587_vm12, %v895_v13 }
0x1d73   : > { %3282 = vmatmul.mubr.msk.bf16.vlgmr.msra.gmra.mrb[20].mxu0 %vm420_vm0, %v1786_v26  ;;  %v1647_v25 = vpop.permute.xlu1 %1646  ;;  %v1652_v37 = vld [vmem:[#allocation2 + $0x10] sm:$0xff] }
0x1d74   : > { %1649 = vst.msk [vmem:[#allocation2] sm:$0xff] %vm587_vm12, %v1647_v25  ;;  %3286 = vmatpush3.bf16.msra.mxu0 %v3988_v12  ;;  %3287 = vmatprep.mubr.msk.bf16.mxu0 %vm3560_vm1, %v3559_v2 }
0x1d75   : > { %v584_v27 = vpop.permute.xlu0 %583  ;;  %3297 = vmatprep.subr.bf16.mxu0 %v3559_v2  ;;  %v1653_v32 = vld [vmem:[#allocation2 + $0x18] sm:$0xff] }
0x1d76   : > { %588 = vst.msk [vmem:[#allocation2 + $0x38] sm:$0xff] %vm587_vm12, %v584_v27  ;;  %v1659_v39 = vpack.c.bf16 %v1653_v32, %v1652_v37 }
0x1d77   : > { %v740_v28 = vpop.permute.xlu1 %739 }
0x1d78   : > { %743 = vst.msk [vmem:[#allocation2 + $0x30] sm:$0xff] %vm587_vm12, %v740_v28 }
0x1d79   : > { %v1194_v30 = vpop.permute.xlu0 %1193 }
0x1d7a   : > { %1196 = vst.msk [vmem:[#allocation2 + $0x20] sm:$0xff] %vm420_vm0, %v1194_v30 }
0x1d7b   : > { %v1343_v33 = vpop.permute.xlu1 %1342  ;;  %v1650_v34 = vld [vmem:[#allocation2] sm:$0xff] }
0x1d7c   : > { %1345 = vst.msk [vmem:[#allocation2 + $0x28] sm:$0xff] %vm420_vm0, %v1343_v33  ;;  %v1658_v36 = vpack.c.bf16 %v1651_v35, %v1650_v34 }
0x1d7d   : > { %v1492_v38 = vpop.permute.xlu0 %1491 }
0x1d7e   : > { %1494 = vst.msk [vmem:[#allocation2 + $0x30] sm:$0xff] %vm420_vm0, %v1492_v38  ;;  %3271 = vmatprep.mubr.msk.bf16.mxu1 %vm325_vm2, %v1658_v36 }
0x1d7f   : > { %3272 = vmatmul.mubr.msk.bf16.vlgmr.msra.gmra.mrb[20].mxu1 %vm325_vm2, %v1659_v39  ;;  %v1641_v40 = vpop.permute.xlu1 %1640 }
0x1d80   : > { %1643 = vst.msk [vmem:[#allocation2 + $0x38] sm:$0xff] %vm420_vm0, %v1641_v40  ;;  %3292 = vmatpush3.bf16.msra.mxu1 %v3988_v12 }
0x1d81   : > { %3303 = vmatprep.subr.bf16.mxu1 %v3559_v2  ;;  %v1654_v41 = vld [vmem:[#allocation2 + $0x20] sm:$0xff]  ;;  %v4097_v22 = vpop.permute.xlu0 %1846 }
0x1d83   : > { %v1655_v42 = vld [vmem:[#allocation2 + $0x28] sm:$0xff]  ;;  %v4099_v29 = vpop.permute.xlu1 %1883 }
0x1d84   : > { %v1660_v43 = vpack.c.bf16 %v1655_v42, %v1654_v41 }
0x1d85   : > { %v1656_v44 = vld [vmem:[#allocation2 + $0x30] sm:$0xff] }
0x1d86   : > { %3275 = vmatprep.mubr.msk.bf16.mxu1 %vm325_vm2, %v1660_v43 }
0x1d87   : > { %v1657_v31 = vld [vmem:[#allocation2 + $0x38] sm:$0xff] }
0x1d88   : > { %v1661_v45 = vpack.c.bf16 %v1657_v31, %v1656_v44 }
0x1d8a   : > { %3276 = vmatmul.mubr.msk.bf16.gmra.mrb[24].mxu1 %vm325_vm2, %v1661_v45 }
0x1d8b   : > { %3293 = vmatprep.mubr.msk.bf16.mxu1 %vm3560_vm1, %v3559_v2 }
0x1e46   : > { %v1830_v46 = vpop.f32.mrb[20].mxu0 }
0x1e47   : > { %v1849_v18 = vadd.f32 %v4097_v22, %v1830_v46  ;;  %v3283_v20 = vpop.f32.mrb[21].mxu0 }
0x1e48   : > { %v1833_v61 = vpop.f32.mrb[22].mxu0 }
0x1e49   : > { %v1886_v9 = vadd.f32 %v4099_v29, %v1833_v61  ;;  %1851 = vrot.lane.b32.xlu0 %v1849_v18, %s3563_s15  ;;  %v3284_v55 = vpop.f32.mrb[23].mxu0 }
0x1e4b   : > { %1888 = vrot.lane.b32.xlu1 %v1886_v9, %s3563_s15 }
0x1e52   : > { %v3273_v58 = vpop.f32.mrb[20].mxu1 }
0x1e53   : > { %v1742_v59 = vadd.f32 %v3273_v58, %v3123_v52  ;;  %v1733_v53 = vpop.f32.mrb[21].mxu1 }
0x1e54   : > { %v1734_v60 = vadd.f32 %v3123_v52, %v1733_v53  ;;  %v3274_v62 = vpop.f32.mrb[22].mxu1 }
0x1e55   : > { %1766 = vst.msk [vmem:[#allocation3 + $0x10] sm:$0xff] %vm403_vm3, %v1742_v59  ;;  %v1745_v0 = vadd.f32 %v3274_v62, %v3123_v52  ;;  %v1736_v1 = vpop.f32.mrb[23].mxu1 }
0x1e56   : > { %1764 = vst.msk [vmem:[#allocation3] sm:$0xff] %vm403_vm3, %v1734_v60  ;;  %v1737_v4 = vadd.f32 %v3123_v52, %v1736_v1 }
0x1e57   : > { %1767 = vst.msk [vmem:[#allocation3 + $0x18] sm:$0xff] %vm403_vm3, %v1745_v0 }
0x1e58   : > { %1765 = vst.msk [vmem:[#allocation3 + $0x8] sm:$0xff] %vm403_vm3, %v1737_v4 }
0x1e5d   : > { %v3277_v5 = vpop.f32.mrb[24].mxu1  ;;  %v1837_v56 = vld [vmem:[#allocation3] sm:$0xff] }
0x1e5e   : > { %v1758_v6 = vadd.f32 %v3277_v5, %v3123_v52  ;;  %v1749_v10 = vpop.f32.mrb[25].mxu1  ;;  %v1839_v57 = vadd.f32 %v1837_v56, %v1830_v46 }
0x1e5f   : > { %v1750_v48 = vadd.f32 %v3123_v52, %v1749_v10  ;;  %v3278_v11 = vpop.f32.mrb[26].mxu1  ;;  %v4157_v1 = vld [vmem:[#allocation3 + $0x8] sm:$0xff] }
0x1e60   : > { %1770 = vst.msk [vmem:[#allocation3 + $0x30] sm:$0xff] %vm403_vm3, %v1758_v6  ;;  %v1761_v50 = vadd.f32 %v3278_v11, %v3123_v52  ;;  %v1752_v8 = vpop.f32.mrb[27].mxu1  ;;  %v3136_v15 = vmul.f32 -1.442695, %v1839_v57 }
0x1e61   : > { %1768 = vst.msk [vmem:[#allocation3 + $0x20] sm:$0xff] %vm403_vm3, %v1750_v48  ;;  %v1753_v54 = vadd.f32 %v3123_v52, %v1752_v8 }
0x1e62   : > { %1771 = vst.msk [vmem:[#allocation3 + $0x38] sm:$0xff] %vm403_vm3, %v1761_v50  ;;  %3451 = vpow2.f32 %v3136_v15 }
0x1e63   : > { %1769 = vst.msk [vmem:[#allocation3 + $0x28] sm:$0xff] %vm403_vm3, %v1753_v54 }
0x1e67   : > { %v4160_v5 = vld [vmem:[#allocation3 + $0x30] sm:$0xff] }
0x1e69   : > { %v4116_v14 = vld [vmem:[#allocation3 + $0x38] sm:$0xff] }
0x1e6a   : > { %v1876_v16 = vadd.f32 %v4116_v14, %v1833_v61 }
0x1e6c   : > { %v3137_v63 = vmul.f32 -1.442695, %v1876_v16  ;;  %v3452_v51 = vpop.eup %3451 }
0x1e6d   : > { %v1843_v47 = vadd.f32 1.0, %v3452_v51 }
0x1e6e   : > { %3453 = vpow2.f32 %v3137_v63 }
0x1e6f   : > { %3455 = vrcp.f32 %v1843_v47 }
0x1e78   : > { %v3454_v49 = vpop.eup %3453 }
0x1e79   : > { %v1880_v17 = vadd.f32 1.0, %v3454_v49  ;;  %v3456_v3 = vpop.eup %3455 }
0x1e7b   : > { %3457 = vrcp.f32 %v1880_v17 }
0x1e85   : > { %v3458_v13 = vpop.eup %3457 }
0x1ebb   : > { %v1852_v19 = vpop.permute.xlu0 %1851 }
0x1ebc   : > { %v1854_v23 = vmul.f32 %v3456_v3, %v1852_v19 }
0x1ebd   : > { %v1889_v26 = vpop.permute.xlu1 %1888 }
0x1ebe   : > { %v1891_v25 = vmul.f32 %v3458_v13, %v1889_v26  ;;  %1856 = vrot.lane.b32.xlu0 %v1854_v23, %s3561_s8 }
0x1ec0   : > { %1893 = vrot.lane.b32.xlu1 %v1891_v25, %s3561_s8 }
0x1f30   : > { %v1857_v27 = vpop.permute.xlu0 %1856 }
0x1f31   : > { %v1859_v28 = vadd.f32 %v1857_v27, %v1837_v56 }
0x1f32   : > { %v1894_v30 = vpop.permute.xlu1 %1893 }
0x1f33   : > { %3459 = vtanh.f32 %v1859_v28  ;;  %v1896_v32 = vadd.f32 %v1894_v30, %v4116_v14 }
0x1f35   : > { %3461 = vtanh.f32 %v1896_v32 }
0x1f3d   : > { %v3460_v33 = vpop.eup %3459 }
0x1f3e   : > { %1862 = vrot.lane.b32.xlu0 %v3460_v33, %s3563_s15 }
0x1f3f   : > { %v3462_v34 = vpop.eup %3461 }
0x1f40   : > { %1899 = vrot.lane.b32.xlu1 %v3462_v34, %s3565_s16 }
0x1fb0   : > { %v1863_v35 = vpop.permute.xlu0 %1862 }
0x1fb1   : > { %v1865_v36 = vsub.f32 %v4069_v21, %v1863_v35 }
0x1fb2   : > { %v1900_v37 = vpop.permute.xlu1 %1899 }
0x1fb3   : > { %v1902_v38 = vsub.f32 %v4072_v24, %v1900_v37  ;;  %1867 = vrot.lane.b32.xlu0 %v1865_v36, %s3566_s23 }
0x1fb5   : > { %1904 = vrot.lane.b32.xlu1 %v1902_v38, %s3562_s12 }
0x2025   : > { %v1868_v39 = vpop.permute.xlu0 %1867 }
0x2026   : > { %v1870_v40 = vmul.f32 %v3456_v3, %v1868_v39 }
0x2027   : > { %v1905_v41 = vpop.permute.xlu1 %1904 }
0x2028   : > { %v1907_v42 = vmul.f32 %v3458_v13, %v1905_v41  ;;  %1872 = vrot.lane.b32.xlu0 %v1870_v40, %s3566_s23 }
0x202a   : > { %1909 = vrot.lane.b32.xlu1 %v1907_v42, %s3566_s23 }
0x202c   : > { %1914 = vrot.lane.b32.xlu0 %v4069_v21, %s3561_s8 }
0x202e   : > { %1924 = vrot.lane.b32.xlu1 %v4072_v24, %s3567_s24 }
0x209a   : > { %v1873_v43 = vpop.permute.xlu0 %1872 }
0x209b   : > { %v4134_v31 = vadd.f32 %v3460_v33, %v1873_v43 }
0x209c   : > { %v1910_v44 = vpop.permute.xlu1 %1909 }
0x209d   : > { %v4136_v46 = vadd.f32 %v3462_v34, %v1910_v44 }
0x209e   : > { %v1915_v45 = vpop.permute.xlu0 %1914 }
0x209f   : > { %v1917_v18 = vsel %vm553_vm4, %v4134_v31, %v1915_v45 }
0x20a0   : > { %v1925_v20 = vpop.permute.xlu1 %1924  ;;  %1919 = vrot.lane.b32.xlu0 %v1917_v18, %s3563_s15 }
0x20a1   : > { %v1927_v21 = vsel %vm554_vm5, %v4136_v46, %v1925_v20 }
0x20a2   : > { %1929 = vrot.lane.b32.xlu1 %v1927_v21, %s3565_s16 }
0x2112   : > { %v1920_v24 = vpop.permute.xlu0 %1919 }
0x2113   : > { %1922 = vst.msk [vmem:[#allocation4] sm:$0xff] %vm420_vm0, %v1920_v24 }
0x2114   : > { %v1930_v61 = vpop.permute.xlu1 %1929 }
0x2115   : > { %1932 = vst.msk [vmem:[#allocation4 + $0x8] sm:$0xff] %vm420_vm0, %v1930_v61 }
0x211a   : > { %v1945_v9 = vld [vmem:[#allocation4] sm:$0xff] }
0x211c   : > { %v1946_v55 = vld [vmem:[#allocation4 + $0x8] sm:$0xff] }
0x211d   : > { %v1947_v52 = vpack.c.bf16 %v1946_v55, %v1945_v9 }
0x211f   : > { %3288 = vmatmul.mubr.msk.bf16.vlgmr.msra.gmra.mrb[24].mxu0 %vm420_vm0, %v1947_v52  ;;  %v4198_v52 = vld [vmem:[#allocation3 + $0x10] sm:$0xff] }
0x2120   : > { %3298 = vmatpush3.bf16.msra.mxu0 %v3988_v12  ;;  %3299 = vmatprep.mubr.msk.bf16.mxu0 %vm3560_vm1, %v3559_v2 }
0x2121   : > { %3309 = vmatprep.subr.bf16.mxu0 %v3559_v2 }
0x21f2   : > { %v1985_v58 = vpop.f32.mrb[24].mxu0 }
0x21f3   : > { %v2001_v59 = vadd.f32 %v1985_v58, %v4097_v22  ;;  %v3289_v53 = vpop.f32.mrb[25].mxu0  ;;  %v1994_v4 = vadd.f32 %v4157_v1, %v1985_v58 }
0x21f4   : > { %v1988_v60 = vpop.f32.mrb[26].mxu0 }
0x21f5   : > { %v2035_v62 = vadd.f32 %v1988_v60, %v4099_v29  ;;  %2003 = vrot.lane.b32.xlu0 %v2001_v59, %s3563_s15  ;;  %v3290_v0 = vpop.f32.mrb[27].mxu0  ;;  %v2028_v6 = vadd.f32 %v4160_v5, %v1988_v60  ;;  %v3139_v10 = vmul.f32 -1.442695, %v1994_v4  ;;  %v4201_v59 = vld [vmem:[#allocation3 + $0x28] sm:$0xff] }
0x21f7   : > { %2037 = vrot.lane.b32.xlu1 %v2035_v62, %s3563_s15  ;;  %v3140_v48 = vmul.f32 -1.442695, %v2028_v6  ;;  %3463 = vpow2.f32 %v3139_v10 }
0x21f9   : > { %3465 = vpow2.f32 %v3140_v48 }
0x2201   : > { %v3464_v11 = vpop.eup %3463 }
0x2202   : > { %v1998_v8 = vadd.f32 1.0, %v3464_v11 }
0x2203   : > { %v3466_v50 = vpop.eup %3465 }
0x2204   : > { %v2032_v54 = vadd.f32 1.0, %v3466_v50  ;;  %3467 = vrcp.f32 %v1998_v8 }
0x2206   : > { %3469 = vrcp.f32 %v2032_v54 }
0x220e   : > { %v3468_v56 = vpop.eup %3467 }
0x2210   : > { %v3470_v15 = vpop.eup %3469 }
0x2267   : > { %v2004_v57 = vpop.permute.xlu0 %2003 }
0x2268   : > { %v2006_v16 = vmul.f32 %v3468_v56, %v2004_v57 }
0x2269   : > { %v2038_v63 = vpop.permute.xlu1 %2037 }
0x226a   : > { %v2040_v51 = vmul.f32 %v3470_v15, %v2038_v63  ;;  %2008 = vrot.lane.b32.xlu0 %v2006_v16, %s3561_s8 }
0x226c   : > { %2042 = vrot.lane.b32.xlu1 %v2040_v51, %s3561_s8 }
0x22dc   : > { %v2009_v49 = vpop.permute.xlu0 %2008 }
0x22dd   : > { %v2011_v47 = vadd.f32 %v2009_v49, %v4157_v1 }
0x22de   : > { %v2043_v17 = vpop.permute.xlu1 %2042 }
0x22df   : > { %3471 = vtanh.f32 %v2011_v47  ;;  %v2045_v3 = vadd.f32 %v2043_v17, %v4160_v5 }
0x22e1   : > { %3473 = vtanh.f32 %v2045_v3 }
0x22e9   : > { %v3472_v19 = vpop.eup %3471 }
0x22ea   : > { %2014 = vrot.lane.b32.xlu0 %v3472_v19, %s3563_s15 }
0x22eb   : > { %v3474_v23 = vpop.eup %3473 }
0x22ec   : > { %2048 = vrot.lane.b32.xlu1 %v3474_v23, %s3565_s16 }
0x235c   : > { %v2015_v13 = vpop.permute.xlu0 %2014 }
0x235d   : > { %v2017_v26 = vsub.f32 %v1945_v9, %v2015_v13 }
0x235e   : > { %v2049_v25 = vpop.permute.xlu1 %2048 }
0x235f   : > { %v2051_v27 = vsub.f32 %v1946_v55, %v2049_v25  ;;  %2019 = vrot.lane.b32.xlu0 %v2017_v26, %s3566_s23 }
0x2361   : > { %2053 = vrot.lane.b32.xlu1 %v2051_v27, %s3562_s12 }
0x23d1   : > { %v2020_v28 = vpop.permute.xlu0 %2019 }
0x23d2   : > { %v2022_v30 = vmul.f32 %v3468_v56, %v2020_v28 }
0x23d3   : > { %v2054_v32 = vpop.permute.xlu1 %2053 }
0x23d4   : > { %v2056_v33 = vmul.f32 %v3470_v15, %v2054_v32  ;;  %2024 = vrot.lane.b32.xlu0 %v2022_v30, %s3566_s23 }
0x23d6   : > { %2058 = vrot.lane.b32.xlu1 %v2056_v33, %s3566_s23 }
0x23d8   : > { %2063 = vrot.lane.b32.xlu0 %v1945_v9, %s3561_s8 }
0x23da   : > { %2073 = vrot.lane.b32.xlu1 %v1946_v55, %s3567_s24 }
0x2446   : > { %v2025_v34 = vpop.permute.xlu0 %2024 }
0x2447   : > { %v4175_v36 = vadd.f32 %v3472_v19, %v2025_v34 }
0x2448   : > { %v2059_v35 = vpop.permute.xlu1 %2058 }
0x2449   : > { %v4177_v38 = vadd.f32 %v3474_v23, %v2059_v35 }
0x244a   : > { %v2064_v37 = vpop.permute.xlu0 %2063 }
0x244b   : > { %v2066_v39 = vsel %vm708_vm6, %v4175_v36, %v2064_v37 }
0x244c   : > { %2068 = vrot.lane.b32.xlu0 %v2066_v39, %s3563_s15  ;;  %v2074_v40 = vpop.permute.xlu1 %2073 }
0x244d   : > { %v2076_v41 = vsel %vm709_vm7, %v4177_v38, %v2074_v40 }
0x244e   : > { %2078 = vrot.lane.b32.xlu1 %v2076_v41, %s3565_s16 }
0x24be   : > { %v2069_v42 = vpop.permute.xlu0 %2068 }
0x24bf   : > { %2071 = vst.msk [vmem:[#allocation4] sm:$0xff] %vm420_vm0, %v2069_v42 }
0x24c0   : > { %v2079_v43 = vpop.permute.xlu1 %2078 }
0x24c1   : > { %2081 = vst.msk [vmem:[#allocation4 + $0x8] sm:$0xff] %vm420_vm0, %v2079_v43 }
0x24c6   : > { %v2094_v44 = vld [vmem:[#allocation4] sm:$0xff] }
0x24c8   : > { %v2095_v45 = vld [vmem:[#allocation4 + $0x8] sm:$0xff] }
0x24c9   : > { %v2096_v18 = vpack.c.bf16 %v2095_v45, %v2094_v44 }
0x24cb   : > { %3294 = vmatmul.mubr.msk.bf16.vlgmr.msra.gmra.mrb[28].mxu1 %vm420_vm0, %v2096_v18 }
0x24cc   : > { %3304 = vmatpush3.bf16.msra.mxu1 %v3988_v12  ;;  %3305 = vmatprep.mubr.msk.bf16.mxu1 %vm3560_vm1, %v3559_v2 }
0x24cd   : > { %3315 = vmatprep.subr.bf16.mxu1 %v3559_v2 }
0x259e   : > { %v2134_v20 = vpop.f32.mrb[28].mxu1 }
0x259f   : > { %v2150_v21 = vadd.f32 %v2134_v20, %v4097_v22  ;;  %v3295_v24 = vpop.f32.mrb[29].mxu1  ;;  %v2143_v58 = vadd.f32 %v4198_v52, %v2134_v20 }
0x25a0   : > { %v2137_v61 = vpop.f32.mrb[30].mxu1 }
0x25a1   : > { %v2184_v9 = vadd.f32 %v2137_v61, %v4099_v29  ;;  %2152 = vrot.lane.b32.xlu0 %v2150_v21, %s3563_s15  ;;  %v3296_v55 = vpop.f32.mrb[31].mxu1  ;;  %v2177_v53 = vadd.f32 %v4201_v59, %v2137_v61  ;;  %v3142_v60 = vmul.f32 -1.442695, %v2143_v58  ;;  %v4239_v61 = vld [vmem:[#allocation3 + $0x18] sm:$0xff] }
0x25a2   : > { %v4242_v55 = vld [vmem:[#allocation3 + $0x20] sm:$0xff] }
0x25a3   : > { %2186 = vrot.lane.b32.xlu1 %v2184_v9, %s3563_s15  ;;  %v3143_v62 = vmul.f32 -1.442695, %v2177_v53  ;;  %3475 = vpow2.f32 %v3142_v60 }
0x25a5   : > { %3477 = vpow2.f32 %v3143_v62 }
0x25ad   : > { %v3476_v0 = vpop.eup %3475 }
0x25ae   : > { %v2147_v6 = vadd.f32 1.0, %v3476_v0 }
0x25af   : > { %v3478_v4 = vpop.eup %3477 }
0x25b0   : > { %v2181_v10 = vadd.f32 1.0, %v3478_v4  ;;  %3479 = vrcp.f32 %v2147_v6 }
0x25b2   : > { %3481 = vrcp.f32 %v2181_v10 }
0x25ba   : > { %v3480_v48 = vpop.eup %3479 }
0x25bc   : > { %v3482_v8 = vpop.eup %3481 }
0x2613   : > { %v2153_v11 = vpop.permute.xlu0 %2152 }
0x2614   : > { %v2155_v50 = vmul.f32 %v3480_v48, %v2153_v11 }
0x2615   : > { %v2187_v54 = vpop.permute.xlu1 %2186 }
0x2616   : > { %v2189_v56 = vmul.f32 %v3482_v8, %v2187_v54  ;;  %2157 = vrot.lane.b32.xlu0 %v2155_v50, %s3561_s8 }
0x2618   : > { %2191 = vrot.lane.b32.xlu1 %v2189_v56, %s3561_s8 }
0x2688   : > { %v2158_v57 = vpop.permute.xlu0 %2157 }
0x2689   : > { %v2160_v16 = vadd.f32 %v2158_v57, %v4198_v52 }
0x268a   : > { %v2192_v15 = vpop.permute.xlu1 %2191 }
0x268b   : > { %3483 = vtanh.f32 %v2160_v16  ;;  %v2194_v63 = vadd.f32 %v2192_v15, %v4201_v59 }
0x268d   : > { %3485 = vtanh.f32 %v2194_v63 }
0x2695   : > { %v3484_v51 = vpop.eup %3483 }
0x2696   : > { %2163 = vrot.lane.b32.xlu0 %v3484_v51, %s3563_s15 }
0x2697   : > { %v3486_v49 = vpop.eup %3485 }
0x2698   : > { %2197 = vrot.lane.b32.xlu1 %v3486_v49, %s3565_s16 }
0x2708   : > { %v2164_v47 = vpop.permute.xlu0 %2163 }
0x2709   : > { %v2166_v17 = vsub.f32 %v2094_v44, %v2164_v47 }
0x270a   : > { %v2198_v3 = vpop.permute.xlu1 %2197 }
0x270b   : > { %v2200_v19 = vsub.f32 %v2095_v45, %v2198_v3  ;;  %2168 = vrot.lane.b32.xlu0 %v2166_v17, %s3566_s23 }
0x270d   : > { %2202 = vrot.lane.b32.xlu1 %v2200_v19, %s3562_s12 }
0x277d   : > { %v2169_v23 = vpop.permute.xlu0 %2168 }
0x277e   : > { %v2171_v13 = vmul.f32 %v3480_v48, %v2169_v23 }
0x277f   : > { %v2203_v26 = vpop.permute.xlu1 %2202 }
0x2780   : > { %v2205_v25 = vmul.f32 %v3482_v8, %v2203_v26  ;;  %2173 = vrot.lane.b32.xlu0 %v2171_v13, %s3566_s23 }
0x2782   : > { %2207 = vrot.lane.b32.xlu1 %v2205_v25, %s3566_s23 }
0x2784   : > { %2212 = vrot.lane.b32.xlu0 %v2094_v44, %s3561_s8 }
0x2786   : > { %2222 = vrot.lane.b32.xlu1 %v2095_v45, %s3567_s24 }
0x27f2   : > { %v2174_v27 = vpop.permute.xlu0 %2173 }
0x27f3   : > { %v4216_v30 = vadd.f32 %v3484_v51, %v2174_v27 }
0x27f4   : > { %v2208_v28 = vpop.permute.xlu1 %2207 }
0x27f5   : > { %v4218_v33 = vadd.f32 %v3486_v49, %v2208_v28 }
0x27f6   : > { %v2213_v32 = vpop.permute.xlu0 %2212 }
0x27f7   : > { %v2215_v34 = vsel %vm863_vm8, %v4216_v30, %v2213_v32 }
0x27f8   : > { %2217 = vrot.lane.b32.xlu0 %v2215_v34, %s3563_s15  ;;  %v2223_v35 = vpop.permute.xlu1 %2222 }
0x27f9   : > { %v2225_v37 = vsel %vm864_vm9, %v4218_v33, %v2223_v35 }
0x27fa   : > { %2227 = vrot.lane.b32.xlu1 %v2225_v37, %s3565_s16 }
0x286a   : > { %v2218_v39 = vpop.permute.xlu0 %2217 }
0x286b   : > { %2220 = vst.msk [vmem:[#allocation4] sm:$0xff] %vm420_vm0, %v2218_v39 }
0x286c   : > { %v2228_v40 = vpop.permute.xlu1 %2227 }
0x286d   : > { %2230 = vst.msk [vmem:[#allocation4 + $0x8] sm:$0xff] %vm420_vm0, %v2228_v40 }
0x2872   : > { %v2243_v41 = vld [vmem:[#allocation4] sm:$0xff] }
0x2874   : > { %v2244_v42 = vld [vmem:[#allocation4 + $0x8] sm:$0xff] }
0x2875   : > { %v2245_v43 = vpack.c.bf16 %v2244_v42, %v2243_v41 }
0x2877   : > { %3300 = vmatmul.mubr.msk.bf16.vlgmr.msra.gmra.mrb[28].mxu0 %vm420_vm0, %v2245_v43 }
0x2878   : > { %3310 = vmatpush3.bf16.msra.mxu0 %v3988_v12  ;;  %3311 = vmatprep.mubr.msk.bf16.mxu0 %vm3560_vm1, %v3559_v2 }
0x2879   : > { %3321 = vmatprep.subr.bf16.mxu0 %v3559_v2 }
0x294a   : > { %v2283_v44 = vpop.f32.mrb[28].mxu0 }
0x294b   : > { %v2299_v45 = vadd.f32 %v2283_v44, %v4097_v22  ;;  %v3301_v18 = vpop.f32.mrb[29].mxu0  ;;  %v2292_v9 = vadd.f32 %v4239_v61, %v2283_v44 }
0x294c   : > { %v2286_v20 = vpop.f32.mrb[30].mxu0 }
0x294d   : > { %v2333_v21 = vadd.f32 %v2286_v20, %v4099_v29  ;;  %2301 = vrot.lane.b32.xlu0 %v2299_v45, %s3563_s15  ;;  %v3302_v24 = vpop.f32.mrb[31].mxu0  ;;  %v2326_v58 = vadd.f32 %v4242_v55, %v2286_v20  ;;  %v3145_v53 = vmul.f32 -1.442695, %v2292_v9 }
0x294f   : > { %2335 = vrot.lane.b32.xlu1 %v2333_v21, %s3563_s15  ;;  %v3146_v60 = vmul.f32 -1.442695, %v2326_v58  ;;  %3487 = vpow2.f32 %v3145_v53 }
0x2951   : > { %3489 = vpow2.f32 %v3146_v60 }
0x2959   : > { %v3488_v62 = vpop.eup %3487 }
0x295a   : > { %v2296_v4 = vadd.f32 1.0, %v3488_v62 }
0x295b   : > { %v3490_v0 = vpop.eup %3489 }
0x295c   : > { %v2330_v6 = vadd.f32 1.0, %v3490_v0  ;;  %3491 = vrcp.f32 %v2296_v4 }
0x295e   : > { %3493 = vrcp.f32 %v2330_v6 }
0x2966   : > { %v3492_v10 = vpop.eup %3491 }
0x2968   : > { %v3494_v50 = vpop.eup %3493 }
0x29bf   : > { %v2302_v48 = vpop.permute.xlu0 %2301 }
0x29c0   : > { %v2304_v11 = vmul.f32 %v3492_v10, %v2302_v48 }
0x29c1   : > { %v2336_v8 = vpop.permute.xlu1 %2335 }
0x29c2   : > { %v2338_v54 = vmul.f32 %v3494_v50, %v2336_v8  ;;  %2306 = vrot.lane.b32.xlu0 %v2304_v11, %s3561_s8 }
0x29c4   : > { %2340 = vrot.lane.b32.xlu1 %v2338_v54, %s3561_s8 }
0x2a34   : > { %v2307_v56 = vpop.permute.xlu0 %2306 }
0x2a35   : > { %v2309_v57 = vadd.f32 %v2307_v56, %v4239_v61 }
0x2a36   : > { %v2341_v16 = vpop.permute.xlu1 %2340 }
0x2a37   : > { %3495 = vtanh.f32 %v2309_v57  ;;  %v2343_v15 = vadd.f32 %v2341_v16, %v4242_v55 }
0x2a39   : > { %3497 = vtanh.f32 %v2343_v15 }
0x2a41   : > { %v3496_v63 = vpop.eup %3495 }
0x2a42   : > { %2312 = vrot.lane.b32.xlu0 %v3496_v63, %s3563_s15 }
0x2a43   : > { %v3498_v51 = vpop.eup %3497 }
0x2a44   : > { %2346 = vrot.lane.b32.xlu1 %v3498_v51, %s3565_s16 }
0x2ab4   : > { %v2313_v49 = vpop.permute.xlu0 %2312 }
0x2ab5   : > { %v2315_v47 = vsub.f32 %v2243_v41, %v2313_v49 }
0x2ab6   : > { %v2347_v17 = vpop.permute.xlu1 %2346 }
0x2ab7   : > { %v2349_v3 = vsub.f32 %v2244_v42, %v2347_v17  ;;  %2317 = vrot.lane.b32.xlu0 %v2315_v47, %s3566_s23 }
0x2ab9   : > { %2351 = vrot.lane.b32.xlu1 %v2349_v3, %s3562_s12 }
0x2b29   : > { %v2318_v19 = vpop.permute.xlu0 %2317 }
0x2b2a   : > { %v2320_v23 = vmul.f32 %v3492_v10, %v2318_v19 }
0x2b2b   : > { %v2352_v13 = vpop.permute.xlu1 %2351 }
0x2b2c   : > { %v2354_v26 = vmul.f32 %v3494_v50, %v2352_v13  ;;  %2322 = vrot.lane.b32.xlu0 %v2320_v23, %s3566_s23 }
0x2b2e   : > { %2356 = vrot.lane.b32.xlu1 %v2354_v26, %s3566_s23 }
0x2b30   : > { %2361 = vrot.lane.b32.xlu0 %v2243_v41, %s3561_s8 }
0x2b32   : > { %2371 = vrot.lane.b32.xlu1 %v2244_v42, %s3567_s24 }
0x2b9e   : > { %v2323_v25 = vpop.permute.xlu0 %2322 }
0x2b9f   : > { %v4257_v28 = vadd.f32 %v3496_v63, %v2323_v25 }
0x2ba0   : > { %v2357_v27 = vpop.permute.xlu1 %2356 }
0x2ba1   : > { %v4259_v34 = vadd.f32 %v3498_v51, %v2357_v27 }
0x2ba2   : > { %v2362_v32 = vpop.permute.xlu0 %2361 }
0x2ba3   : > { %v2364_v35 = vsel %vm1018_vm10, %v4257_v28, %v2362_v32 }
0x2ba4   : > { %2366 = vrot.lane.b32.xlu0 %v2364_v35, %s3563_s15  ;;  %v2372_v37 = vpop.permute.xlu1 %2371 }
0x2ba5   : > { %v2374_v39 = vsel %vm1019_vm11, %v4259_v34, %v2372_v37 }
0x2ba6   : > { %2376 = vrot.lane.b32.xlu1 %v2374_v39, %s3565_s16 }
0x2c16   : > { %v2367_v40 = vpop.permute.xlu0 %2366 }
0x2c17   : > { %2369 = vst.msk [vmem:[#allocation4] sm:$0xff] %vm420_vm0, %v2367_v40 }
0x2c18   : > { %v2377_v41 = vpop.permute.xlu1 %2376 }
0x2c19   : > { %2379 = vst.msk [vmem:[#allocation4 + $0x8] sm:$0xff] %vm420_vm0, %v2377_v41 }
0x2c1e   : > { %v2392_v42 = vld [vmem:[#allocation4] sm:$0xff] }
0x2c20   : > { %v2393_v43 = vld [vmem:[#allocation4 + $0x8] sm:$0xff] }
0x2c21   : > { %v2394_v44 = vpack.c.bf16 %v2393_v43, %v2392_v42 }
0x2c23   : > { %3306 = vmatmul.mubr.msk.bf16.vlgmr.msra.gmra.mrb[32].mxu1 %vm420_vm0, %v2394_v44 }
0x2c24   : > { %3316 = vmatpush3.bf16.msra.mxu1 %v3988_v12  ;;  %3317 = vmatprep.mubr.msk.bf16.mxu1 %vm3560_vm1, %v3559_v2 }
0x2cf6   : > { %v2432_v45 = vpop.f32.mrb[32].mxu1 }
0x2cf7   : > { %v2448_v18 = vadd.f32 %v2432_v45, %v4097_v22  ;;  %v3307_v20 = vpop.f32.mrb[33].mxu1  ;;  %v2441_v58 = vadd.f32 %v2432_v45, %v4242_v55 }
0x2cf8   : > { %v2435_v21 = vpop.f32.mrb[34].mxu1 }
0x2cf9   : > { %v2482_v24 = vadd.f32 %v2435_v21, %v4099_v29  ;;  %2450 = vrot.lane.b32.xlu0 %v2448_v18, %s3563_s15  ;;  %v3308_v9 = vpop.f32.mrb[35].mxu1  ;;  %v2475_v53 = vadd.f32 %v2435_v21, %v4239_v61  ;;  %v3148_v60 = vmul.f32 -1.442695, %v2441_v58 }
0x2cfb   : > { %2484 = vrot.lane.b32.xlu1 %v2482_v24, %s3563_s15  ;;  %v3149_v62 = vmul.f32 -1.442695, %v2475_v53  ;;  %3499 = vpow2.f32 %v3148_v60 }
0x2cfd   : > { %3501 = vpow2.f32 %v3149_v62 }
0x2d05   : > { %v3500_v0 = vpop.eup %3499 }
0x2d06   : > { %v2445_v6 = vadd.f32 1.0, %v3500_v0 }
0x2d07   : > { %v3502_v4 = vpop.eup %3501 }
0x2d08   : > { %v2479_v10 = vadd.f32 1.0, %v3502_v4  ;;  %3503 = vrcp.f32 %v2445_v6 }
0x2d0a   : > { %3505 = vrcp.f32 %v2479_v10 }
0x2d12   : > { %v3504_v48 = vpop.eup %3503 }
0x2d14   : > { %v3506_v8 = vpop.eup %3505 }
0x2d6b   : > { %v2451_v11 = vpop.permute.xlu0 %2450 }
0x2d6c   : > { %v2453_v50 = vmul.f32 %v3504_v48, %v2451_v11 }
0x2d6d   : > { %v2485_v54 = vpop.permute.xlu1 %2484 }
0x2d6e   : > { %v2487_v56 = vmul.f32 %v3506_v8, %v2485_v54  ;;  %2455 = vrot.lane.b32.xlu0 %v2453_v50, %s3561_s8 }
0x2d70   : > { %2489 = vrot.lane.b32.xlu1 %v2487_v56, %s3561_s8 }
0x2de0   : > { %v2456_v57 = vpop.permute.xlu0 %2455 }
0x2de1   : > { %v2458_v16 = vadd.f32 %v2456_v57, %v4242_v55 }
0x2de2   : > { %v2490_v15 = vpop.permute.xlu1 %2489 }
0x2de3   : > { %3507 = vtanh.f32 %v2458_v16  ;;  %v2492_v63 = vadd.f32 %v2490_v15, %v4239_v61 }
0x2de5   : > { %3509 = vtanh.f32 %v2492_v63 }
0x2ded   : > { %v3508_v51 = vpop.eup %3507 }
0x2dee   : > { %2461 = vrot.lane.b32.xlu0 %v3508_v51, %s3563_s15 }
0x2def   : > { %v3510_v49 = vpop.eup %3509 }
0x2df0   : > { %2495 = vrot.lane.b32.xlu1 %v3510_v49, %s3565_s16 }
0x2e60   : > { %v2462_v47 = vpop.permute.xlu0 %2461 }
0x2e61   : > { %v2464_v17 = vsub.f32 %v2392_v42, %v2462_v47 }
0x2e62   : > { %v2496_v3 = vpop.permute.xlu1 %2495 }
0x2e63   : > { %v2498_v19 = vsub.f32 %v2393_v43, %v2496_v3  ;;  %2466 = vrot.lane.b32.xlu0 %v2464_v17, %s3566_s23 }
0x2e65   : > { %2500 = vrot.lane.b32.xlu1 %v2498_v19, %s3562_s12 }
0x2ed5   : > { %v2467_v55 = vpop.permute.xlu0 %2466 }
0x2ed6   : > { %v2469_v23 = vmul.f32 %v3504_v48, %v2467_v55 }
0x2ed7   : > { %v2501_v13 = vpop.permute.xlu1 %2500 }
0x2ed8   : > { %v2503_v26 = vmul.f32 %v3506_v8, %v2501_v13  ;;  %2471 = vrot.lane.b32.xlu0 %v2469_v23, %s3566_s23 }
0x2eda   : > { %2505 = vrot.lane.b32.xlu1 %v2503_v26, %s3566_s23 }
0x2edc   : > { %2510 = vrot.lane.b32.xlu0 %v2392_v42, %s3561_s8 }
0x2ede   : > { %2520 = vrot.lane.b32.xlu1 %v2393_v43, %s3567_s24 }
0x2f4a   : > { %v2472_v61 = vpop.permute.xlu0 %2471 }
0x2f4b   : > { %v4293_v27 = vadd.f32 %v3508_v51, %v2472_v61 }
0x2f4c   : > { %v2506_v25 = vpop.permute.xlu1 %2505 }
0x2f4d   : > { %v4295_v35 = vadd.f32 %v3510_v49, %v2506_v25 }
0x2f4e   : > { %v2511_v32 = vpop.permute.xlu0 %2510 }
0x2f4f   : > { %v2513_v37 = vsel %vm1019_vm11, %v4293_v27, %v2511_v32 }
0x2f50   : > { %2515 = vrot.lane.b32.xlu0 %v2513_v37, %s3563_s15  ;;  %v2521_v39 = vpop.permute.xlu1 %2520 }
0x2f51   : > { %v2523_v40 = vsel %vm1018_vm10, %v4295_v35, %v2521_v39 }
0x2f52   : > { %2525 = vrot.lane.b32.xlu1 %v2523_v40, %s3565_s16 }
0x2fc2   : > { %v2516_v41 = vpop.permute.xlu0 %2515 }
0x2fc3   : > { %2518 = vst.msk [vmem:[#allocation4] sm:$0xff] %vm420_vm0, %v2516_v41 }
0x2fc4   : > { %v2526_v42 = vpop.permute.xlu1 %2525 }
0x2fc5   : > { %2528 = vst.msk [vmem:[#allocation4 + $0x8] sm:$0xff] %vm420_vm0, %v2526_v42 }
0x2fca   : > { %v2541_v43 = vld [vmem:[#allocation4] sm:$0xff] }
0x2fcc   : > { %v2542_v44 = vld [vmem:[#allocation4 + $0x8] sm:$0xff] }
0x2fcd   : > { %v2543_v45 = vpack.c.bf16 %v2542_v44, %v2541_v43 }
0x2fcf   : > { %3312 = vmatmul.mubr.msk.bf16.vlgmr.msra.gmra.mrb[32].mxu0 %vm420_vm0, %v2543_v45 }
0x2fd0   : > { %3322 = vmatpush3.bf16.msra.mxu0 %v3988_v12  ;;  %3323 = vmatprep.mubr.msk.bf16.mxu0 %vm3560_vm1, %v3559_v2 }
0x30a2   : > { %v2581_v18 = vpop.f32.mrb[32].mxu0 }
0x30a3   : > { %v2597_v20 = vadd.f32 %v2581_v18, %v4097_v22  ;;  %v3313_v21 = vpop.f32.mrb[33].mxu0  ;;  %v2590_v53 = vadd.f32 %v2581_v18, %v4201_v59 }
0x30a4   : > { %v2584_v24 = vpop.f32.mrb[34].mxu0 }
0x30a5   : > { %v2631_v9 = vadd.f32 %v2584_v24, %v4099_v29  ;;  %2599 = vrot.lane.b32.xlu0 %v2597_v20, %s3563_s15  ;;  %v3314_v58 = vpop.f32.mrb[35].mxu0  ;;  %v2624_v60 = vadd.f32 %v2584_v24, %v4198_v52  ;;  %v3151_v12 = vmul.f32 -1.442695, %v2590_v53 }
0x30a7   : > { %2633 = vrot.lane.b32.xlu1 %v2631_v9, %s3563_s15  ;;  %v3152_v62 = vmul.f32 -1.442695, %v2624_v60  ;;  %3511 = vpow2.f32 %v3151_v12 }
0x30a9   : > { %3513 = vpow2.f32 %v3152_v62 }
0x30b1   : > { %v3512_v2 = vpop.eup %3511 }
0x30b2   : > { %v2594_v4 = vadd.f32 1.0, %v3512_v2 }
0x30b3   : > { %v3514_v0 = vpop.eup %3513 }
0x30b4   : > { %v2628_v6 = vadd.f32 1.0, %v3514_v0  ;;  %3515 = vrcp.f32 %v2594_v4 }
0x30b6   : > { %3517 = vrcp.f32 %v2628_v6 }
0x30be   : > { %v3516_v10 = vpop.eup %3515 }
0x30c0   : > { %v3518_v50 = vpop.eup %3517 }
0x3117   : > { %v2600_v48 = vpop.permute.xlu0 %2599 }
0x3118   : > { %v2602_v11 = vmul.f32 %v3516_v10, %v2600_v48 }
0x3119   : > { %v2634_v8 = vpop.permute.xlu1 %2633 }
0x311a   : > { %v2636_v54 = vmul.f32 %v3518_v50, %v2634_v8  ;;  %2604 = vrot.lane.b32.xlu0 %v2602_v11, %s3561_s8 }
0x311c   : > { %2638 = vrot.lane.b32.xlu1 %v2636_v54, %s3561_s8 }
0x318c   : > { %v2605_v56 = vpop.permute.xlu0 %2604 }
0x318d   : > { %v2607_v57 = vadd.f32 %v2605_v56, %v4201_v59 }
0x318e   : > { %v2639_v16 = vpop.permute.xlu1 %2638 }
0x318f   : > { %3519 = vtanh.f32 %v2607_v57  ;;  %v2641_v15 = vadd.f32 %v2639_v16, %v4198_v52 }
0x3191   : > { %3521 = vtanh.f32 %v2641_v15 }
0x3199   : > { %v3520_v63 = vpop.eup %3519 }
0x319a   : > { %2610 = vrot.lane.b32.xlu0 %v3520_v63, %s3563_s15 }
0x319b   : > { %v3522_v51 = vpop.eup %3521 }
0x319c   : > { %2644 = vrot.lane.b32.xlu1 %v3522_v51, %s3565_s16 }
0x320c   : > { %v2611_v49 = vpop.permute.xlu0 %2610 }
0x320d   : > { %v2613_v47 = vsub.f32 %v2541_v43, %v2611_v49 }
0x320e   : > { %v2645_v17 = vpop.permute.xlu1 %2644 }
0x320f   : > { %v2647_v3 = vsub.f32 %v2542_v44, %v2645_v17  ;;  %2615 = vrot.lane.b32.xlu0 %v2613_v47, %s3566_s23 }
0x3211   : > { %2649 = vrot.lane.b32.xlu1 %v2647_v3, %s3562_s12 }
0x3281   : > { %v2616_v59 = vpop.permute.xlu0 %2615 }
0x3282   : > { %v2618_v19 = vmul.f32 %v3516_v10, %v2616_v59 }
0x3283   : > { %v2650_v55 = vpop.permute.xlu1 %2649 }
0x3284   : > { %v2652_v23 = vmul.f32 %v3518_v50, %v2650_v55  ;;  %2620 = vrot.lane.b32.xlu0 %v2618_v19, %s3566_s23 }
0x3286   : > { %2654 = vrot.lane.b32.xlu1 %v2652_v23, %s3566_s23 }
0x3288   : > { %2659 = vrot.lane.b32.xlu0 %v2541_v43, %s3561_s8 }
0x328a   : > { %2669 = vrot.lane.b32.xlu1 %v2542_v44, %s3567_s24 }
0x32f6   : > { %v2621_v52 = vpop.permute.xlu0 %2620 }
0x32f7   : > { %v4329_v26 = vadd.f32 %v3520_v63, %v2621_v52 }
0x32f8   : > { %v2655_v13 = vpop.permute.xlu1 %2654 }
0x32f9   : > { %v4331_v25 = vadd.f32 %v3522_v51, %v2655_v13 }
0x32fa   : > { %v2660_v61 = vpop.permute.xlu0 %2659 }
0x32fb   : > { %v2662_v32 = vsel %vm864_vm9, %v4329_v26, %v2660_v61 }
0x32fc   : > { %2664 = vrot.lane.b32.xlu0 %v2662_v32, %s3563_s15  ;;  %v2670_v37 = vpop.permute.xlu1 %2669 }
0x32fd   : > { %v2672_v39 = vsel %vm863_vm8, %v4331_v25, %v2670_v37 }
0x32fe   : > { %2674 = vrot.lane.b32.xlu1 %v2672_v39, %s3565_s16 }
0x336e   : > { %v2665_v40 = vpop.permute.xlu0 %2664 }
0x336f   : > { %2667 = vst.msk [vmem:[#allocation4] sm:$0xff] %vm420_vm0, %v2665_v40 }
0x3370   : > { %v2675_v41 = vpop.permute.xlu1 %2674 }
0x3371   : > { %2677 = vst.msk [vmem:[#allocation4 + $0x8] sm:$0xff] %vm420_vm0, %v2675_v41 }
0x3376   : > { %v2690_v42 = vld [vmem:[#allocation4] sm:$0xff] }
0x3378   : > { %v2691_v43 = vld [vmem:[#allocation4 + $0x8] sm:$0xff] }
0x3379   : > { %v2692_v44 = vpack.c.bf16 %v2691_v43, %v2690_v42 }
0x337b   : > { %3318 = vmatmul.mubr.msk.bf16.vlgmr.msra.gmra.mrb[36].mxu1 %vm420_vm0, %v2692_v44 }
0x344e   : > { %v2730_v45 = vpop.f32.mrb[36].mxu1 }
0x344f   : > { %v2746_v18 = vadd.f32 %v2730_v45, %v4097_v22  ;;  %v3319_v20 = vpop.f32.mrb[37].mxu1  ;;  %v2739_v58 = vadd.f32 %v2730_v45, %v4160_v5 }
0x3450   : > { %v2733_v21 = vpop.f32.mrb[38].mxu1 }
0x3451   : > { %v2780_v24 = vadd.f32 %v2733_v21, %v4099_v29  ;;  %2748 = vrot.lane.b32.xlu0 %v2746_v18, %s3563_s15  ;;  %v3320_v9 = vpop.f32.mrb[39].mxu1  ;;  %v2773_v53 = vadd.f32 %v2733_v21, %v4157_v1  ;;  %v3154_v60 = vmul.f32 -1.442695, %v2739_v58  ;;  %v3549_v58 = vld [vmem:[#allocation3] sm:$0xff] }
0x3453   : > { %2782 = vrot.lane.b32.xlu1 %v2780_v24, %s3563_s15  ;;  %v3155_v12 = vmul.f32 -1.442695, %v2773_v53  ;;  %3523 = vpow2.f32 %v3154_v60 }
0x3455   : > { %3525 = vpow2.f32 %v3155_v12 }
0x345d   : > { %v3524_v62 = vpop.eup %3523 }
0x345e   : > { %v2743_v0 = vadd.f32 1.0, %v3524_v62 }
0x345f   : > { %v3526_v2 = vpop.eup %3525 }
0x3460   : > { %v2777_v4 = vadd.f32 1.0, %v3526_v2  ;;  %3527 = vrcp.f32 %v2743_v0 }
0x3462   : > { %3529 = vrcp.f32 %v2777_v4 }
0x346a   : > { %v3528_v6 = vpop.eup %3527 }
0x346c   : > { %v3530_v11 = vpop.eup %3529 }
0x34c3   : > { %v2749_v10 = vpop.permute.xlu0 %2748 }
0x34c4   : > { %v2751_v48 = vmul.f32 %v3528_v6, %v2749_v10 }
0x34c5   : > { %v2783_v50 = vpop.permute.xlu1 %2782 }
0x34c6   : > { %v2785_v8 = vmul.f32 %v3530_v11, %v2783_v50  ;;  %2753 = vrot.lane.b32.xlu0 %v2751_v48, %s3561_s8  ;;  %v3550_v50 = vld [vmem:[#allocation3 + $0x38] sm:$0xff] }
0x34c8   : > { %2787 = vrot.lane.b32.xlu1 %v2785_v8, %s3561_s8 }
0x3538   : > { %v2754_v54 = vpop.permute.xlu0 %2753 }
0x3539   : > { %v2756_v56 = vadd.f32 %v2754_v54, %v4160_v5 }
0x353a   : > { %v2788_v57 = vpop.permute.xlu1 %2787 }
0x353b   : > { %3531 = vtanh.f32 %v2756_v56  ;;  %v2790_v16 = vadd.f32 %v2788_v57, %v4157_v1 }
0x353d   : > { %3533 = vtanh.f32 %v2790_v16 }
0x3545   : > { %v3532_v15 = vpop.eup %3531 }
0x3546   : > { %2759 = vrot.lane.b32.xlu0 %v3532_v15, %s3563_s15 }
0x3547   : > { %v3534_v63 = vpop.eup %3533 }
0x3548   : > { %2793 = vrot.lane.b32.xlu1 %v3534_v63, %s3565_s16 }
0x35b8   : > { %v2760_v51 = vpop.permute.xlu0 %2759 }
0x35b9   : > { %v2762_v49 = vsub.f32 %v2690_v42, %v2760_v51 }
0x35ba   : > { %v2794_v47 = vpop.permute.xlu1 %2793 }
0x35bb   : > { %v2796_v17 = vsub.f32 %v2691_v43, %v2794_v47  ;;  %2764 = vrot.lane.b32.xlu0 %v2762_v49, %s3566_s23 }
0x35bd   : > { %2798 = vrot.lane.b32.xlu1 %v2796_v17, %s3562_s12 }
0x362d   : > { %v2765_v5 = vpop.permute.xlu0 %2764 }
0x362e   : > { %v2767_v3 = vmul.f32 %v3528_v6, %v2765_v5 }
0x362f   : > { %v2799_v59 = vpop.permute.xlu1 %2798 }
0x3630   : > { %v2801_v19 = vmul.f32 %v3530_v11, %v2799_v59  ;;  %2769 = vrot.lane.b32.xlu0 %v2767_v3, %s3566_s23  ;;  %v1933_v59 = vsel %vm553_vm4, %v4134_v31, 0.0  ;;  %v2231_v31 = vsel %vm863_vm8, %v4216_v30, 0.0  ;;  %v2529_v30 = vsel %vm1019_vm11, %v4293_v27, 0.0 }
0x3632   : > { %2803 = vrot.lane.b32.xlu1 %v2801_v19, %s3566_s23  ;;  %v1939_v19 = vsel %vm554_vm5, %v4136_v46, 0.0  ;;  %v2237_v46 = vsel %vm864_vm9, %v4218_v33, 0.0  ;;  %v2535_v33 = vsel %vm1018_vm10, %v4295_v35, 0.0 }
0x3634   : > { %2808 = vrot.lane.b32.xlu0 %v2690_v42, %s3561_s8 }
0x3636   : > { %2818 = vrot.lane.b32.xlu1 %v2691_v43, %s3567_s24 }
0x36a2   : > { %v2770_v1 = vpop.permute.xlu0 %2769 }
0x36a3   : > { %v4362_v23 = vadd.f32 %v3532_v15, %v2770_v1  ;;  %v2082_v1 = vsel %vm708_vm6, %v4175_v36, 0.0  ;;  %v2380_v36 = vsel %vm1018_vm10, %v4257_v28, 0.0  ;;  %v2678_v28 = vsel %vm864_vm9, %v4329_v26, 0.0 }
0x36a4   : > { %v2804_v55 = vpop.permute.xlu1 %2803 }
0x36a5   : > { %v4364_v13 = vadd.f32 %v3534_v63, %v2804_v55  ;;  %v2088_v55 = vsel %vm709_vm7, %v4177_v38, 0.0  ;;  %v2386_v38 = vsel %vm1019_vm11, %v4259_v34, 0.0  ;;  %v2684_v34 = vsel %vm863_vm8, %v4331_v25, 0.0 }
0x36a6   : > { %v2809_v52 = vpop.permute.xlu0 %2808  ;;  %v2827_v27 = vsel %vm709_vm7, %v4362_v23, 0.0 }
0x36a7   : > { %v2811_v61 = vsel %vm709_vm7, %v4362_v23, %v2809_v52  ;;  %v2833_v35 = vsel %vm708_vm6, %v4364_v13, 0.0 }
0x36a8   : > { %2813 = vrot.lane.b32.xlu0 %v2811_v61, %s3563_s15  ;;  %v2819_v32 = vpop.permute.xlu1 %2818 }
0x36a9   : > { %v2821_v37 = vsel %vm708_vm6, %v4364_v13, %v2819_v32 }
0x36aa   : > { %2823 = vrot.lane.b32.xlu1 %v2821_v37, %s3565_s16 }
0x371a   : > { %v2814_v39 = vpop.permute.xlu0 %2813 }
0x371b   : > { %2816 = vst.msk [vmem:[#allocation4] sm:$0xff] %vm420_vm0, %v2814_v39 }
0x371c   : > { %v2824_v40 = vpop.permute.xlu1 %2823 }
0x371d   : > { %2826 = vst.msk [vmem:[#allocation4 + $0x8] sm:$0xff] %vm420_vm0, %v2824_v40 }
0x3722   : > { %v2839_v41 = vld [vmem:[#allocation4] sm:$0xff] }
0x3724   : > { %v2840_v42 = vld [vmem:[#allocation4 + $0x8] sm:$0xff] }
0x3725   : > { %v2841_v43 = vpack.c.bf16 %v2840_v42, %v2839_v41 }
0x3727   : > { %3324 = vmatmul.mubr.msk.bf16.vlgmr.msra.gmra.mrb[36].mxu0 %vm420_vm0, %v2841_v43 }
0x37fa   : > { %v2879_v44 = vpop.f32.mrb[36].mxu0 }
0x37fb   : > { %v2895_v45 = vadd.f32 %v2879_v44, %v4097_v22  ;;  %v3325_v18 = vpop.f32.mrb[37].mxu0  ;;  %v2888_v9 = vadd.f32 %v2879_v44, %v4116_v14 }
0x37fc   : > { %v2882_v20 = vpop.f32.mrb[38].mxu0 }
0x37fd   : > { %v2929_v21 = vadd.f32 %v2882_v20, %v4099_v29  ;;  %2897 = vrot.lane.b32.xlu0 %v2895_v45, %s3563_s15  ;;  %v3326_v24 = vpop.f32.mrb[39].mxu0  ;;  %v2922_v53 = vadd.f32 %v3549_v58, %v2882_v20  ;;  %v3157_v60 = vmul.f32 -1.442695, %v2888_v9 }
0x37ff   : > { %2931 = vrot.lane.b32.xlu1 %v2929_v21, %s3563_s15  ;;  %v3158_v12 = vmul.f32 -1.442695, %v2922_v53  ;;  %3535 = vpow2.f32 %v3157_v60 }
0x3801   : > { %3537 = vpow2.f32 %v3158_v12 }
0x3809   : > { %v3536_v62 = vpop.eup %3535 }
0x380a   : > { %v2892_v22 = vadd.f32 1.0, %v3536_v62 }
0x380b   : > { %v3538_v2 = vpop.eup %3537 }
0x380c   : > { %v2926_v0 = vadd.f32 1.0, %v3538_v2  ;;  %3539 = vrcp.f32 %v2892_v22 }
0x380e   : > { %3541 = vrcp.f32 %v2926_v0 }
0x3816   : > { %v3540_v29 = vpop.eup %3539 }
0x3818   : > { %v3542_v10 = vpop.eup %3541 }
0x386f   : > { %v2898_v4 = vpop.permute.xlu0 %2897 }
0x3870   : > { %v2900_v6 = vmul.f32 %v3540_v29, %v2898_v4 }
0x3871   : > { %v2932_v48 = vpop.permute.xlu1 %2931 }
0x3872   : > { %v2934_v11 = vmul.f32 %v3542_v10, %v2932_v48  ;;  %2902 = vrot.lane.b32.xlu0 %v2900_v6, %s3561_s8 }
0x3874   : > { %2936 = vrot.lane.b32.xlu1 %v2934_v11, %s3561_s8 }
0x38e4   : > { %v2903_v14 = vpop.permute.xlu0 %2902 }
0x38e5   : > { %v2905_v8 = vadd.f32 %v3550_v50, %v2903_v14 }
0x38e6   : > { %v2937_v54 = vpop.permute.xlu1 %2936 }
0x38e7   : > { %3543 = vtanh.f32 %v2905_v8  ;;  %v2939_v56 = vadd.f32 %v3549_v58, %v2937_v54 }
0x38e9   : > { %3545 = vtanh.f32 %v2939_v56 }
0x38f1   : > { %v3544_v57 = vpop.eup %3543 }
0x38f2   : > { %2908 = vrot.lane.b32.xlu0 %v3544_v57, %s3563_s15 }
0x38f3   : > { %v3546_v16 = vpop.eup %3545 }
0x38f4   : > { %2942 = vrot.lane.b32.xlu1 %v3546_v16, %s3565_s16 }
0x3964   : > { %v2909_v15 = vpop.permute.xlu0 %2908 }
0x3965   : > { %v2911_v63 = vsub.f32 %v2839_v41, %v2909_v15 }
0x3966   : > { %v2943_v51 = vpop.permute.xlu1 %2942 }
0x3967   : > { %v2945_v49 = vsub.f32 %v2840_v42, %v2943_v51  ;;  %2913 = vrot.lane.b32.xlu0 %v2911_v63, %s3566_s23 }
0x3969   : > { %2947 = vrot.lane.b32.xlu1 %v2945_v49, %s3562_s12 }
0x39d9   : > { %v2914_v47 = vpop.permute.xlu0 %2913 }
0x39da   : > { %v2916_v17 = vmul.f32 %v3540_v29, %v2914_v47 }
0x39db   : > { %v2948_v5 = vpop.permute.xlu1 %2947 }
0x39dc   : > { %v2950_v3 = vmul.f32 %v3542_v10, %v2948_v5  ;;  %2918 = vrot.lane.b32.xlu0 %v2916_v17, %s3566_s23 }
0x39de   : > { %2952 = vrot.lane.b32.xlu1 %v2950_v3, %s3566_s23 }
0x39e0   : > { %2957 = vrot.lane.b32.xlu0 %v2839_v41, %s3561_s8  ;;  %s3162_s8 = sshll.u32 %s4501_s22, 6 }
0x39e1   : > { %s268_s14 = scalar_lea.vmem %s4499_s6, %s3162_s8 }
0x39e2   : > { %2967 = vrot.lane.b32.xlu1 %v2840_v42, %s3567_s24 }
0x39e4   : > { %1935 = vrot.lane.b32.xlu0 %v1933_v59, %s3563_s15 }
0x39e6   : > { %1941 = vrot.lane.b32.xlu1 %v1939_v19, %s3562_s12 }
0x39e8   : > { %2084 = vrot.lane.b32.xlu0 %v2082_v1, %s3563_s15 }
0x39ea   : > { %2090 = vrot.lane.b32.xlu1 %v2088_v55, %s3562_s12 }
0x39ec   : > { %2233 = vrot.lane.b32.xlu0 %v2231_v31, %s3563_s15 }
0x39ee   : > { %2239 = vrot.lane.b32.xlu1 %v2237_v46, %s3562_s12 }
0x39f0   : > { %2382 = vrot.lane.b32.xlu0 %v2380_v36, %s3563_s15 }
0x39f2   : > { %2388 = vrot.lane.b32.xlu1 %v2386_v38, %s3562_s12 }
0x39f4   : > { %2531 = vrot.lane.b32.xlu0 %v2529_v30, %s3563_s15 }
0x39f6   : > { %2537 = vrot.lane.b32.xlu1 %v2535_v33, %s3562_s12 }
0x39f8   : > { %2680 = vrot.lane.b32.xlu0 %v2678_v28, %s3563_s15 }
0x39fa   : > { %2686 = vrot.lane.b32.xlu1 %v2684_v34, %s3562_s12 }
0x39fc   : > { %2829 = vrot.lane.b32.xlu0 %v2827_v27, %s3563_s15 }
0x39fe   : > { %2835 = vrot.lane.b32.xlu1 %v2833_v35, %s3562_s12 }
0x3a4e   : > { %v2919_v26 = vpop.permute.xlu0 %2918 }
0x3a4f   : > { %v2921_v52 = vadd.f32 %v3544_v57, %v2919_v26 }
0x3a50   : > { %v2953_v61 = vpop.permute.xlu1 %2952 }
0x3a51   : > { %v2976_v25 = vsel %vm554_vm5, %v2921_v52, 0.0  ;;  %v2955_v32 = vadd.f32 %v3546_v16, %v2953_v61 }
0x3a52   : > { %2978 = vrot.lane.b32.xlu0 %v2976_v25, %s3563_s15  ;;  %v2958_v37 = vpop.permute.xlu0 %2957 }
0x3a53   : > { %v2982_v23 = vsel %vm553_vm4, %v2955_v32, 0.0  ;;  %v2960_v13 = vsel %vm554_vm5, %v2921_v52, %v2958_v37 }
0x3a54   : > { %2984 = vrot.lane.b32.xlu1 %v2982_v23, %s3562_s12  ;;  %v2968_v39 = vpop.permute.xlu1 %2967 }
0x3a55   : > { %v2970_v41 = vsel %vm553_vm4, %v2955_v32, %v2968_v39 }
0x3a56   : > { %2962 = vrot.lane.b32.xlu0 %v2960_v13, %s3563_s15  ;;  %v1936_v40 = vpop.permute.xlu0 %1935 }
0x3a57   : > { %1938 = vst.msk [vmem:[#allocation2] sm:$0xff] %vm420_vm0, %v1936_v40 }
0x3a58   : > { %2972 = vrot.lane.b32.xlu1 %v2970_v41, %s3565_s16  ;;  %v1942_v42 = vpop.permute.xlu1 %1941 }
0x3a59   : > { %1944 = vst.msk [vmem:[#allocation2 + $0x38] sm:$0xff] %vm587_vm12, %v1942_v42 }
0x3a5a   : > { %v2085_v43 = vpop.permute.xlu0 %2084 }
0x3a5b   : > { %2087 = vst.msk [vmem:[#allocation2 + $0x8] sm:$0xff] %vm420_vm0, %v2085_v43 }
0x3a5c   : > { %v2091_v44 = vpop.permute.xlu1 %2090 }
0x3a5d   : > { %2093 = vst.msk [vmem:[#allocation2 + $0x30] sm:$0xff] %vm587_vm12, %v2091_v44 }
0x3a5e   : > { %v2234_v45 = vpop.permute.xlu0 %2233 }
0x3a5f   : > { %2236 = vst.msk [vmem:[#allocation2 + $0x10] sm:$0xff] %vm420_vm0, %v2234_v45 }
0x3a60   : > { %v2240_v18 = vpop.permute.xlu1 %2239 }
0x3a61   : > { %2242 = vst.msk [vmem:[#allocation2 + $0x28] sm:$0xff] %vm587_vm12, %v2240_v18 }
0x3a62   : > { %v2383_v7 = vpop.permute.xlu0 %2382 }
0x3a63   : > { %2385 = vst.msk [vmem:[#allocation2 + $0x18] sm:$0xff] %vm420_vm0, %v2383_v7 }
0x3a64   : > { %v2389_v20 = vpop.permute.xlu1 %2388 }
0x3a65   : > { %2391 = vst.msk [vmem:[#allocation2 + $0x20] sm:$0xff] %vm587_vm12, %v2389_v20 }
0x3a66   : > { %v2532_v21 = vpop.permute.xlu0 %2531 }
0x3a67   : > { %2534 = vst.msk [vmem:[#allocation2 + $0x20] sm:$0xff] %vm420_vm0, %v2532_v21 }
0x3a68   : > { %v2538_v24 = vpop.permute.xlu1 %2537 }
0x3a69   : > { %2540 = vst.msk [vmem:[#allocation2 + $0x18] sm:$0xff] %vm587_vm12, %v2538_v24 }
0x3a6a   : > { %v2681_v9 = vpop.permute.xlu0 %2680 }
0x3a6b   : > { %2683 = vst.msk [vmem:[#allocation2 + $0x28] sm:$0xff] %vm420_vm0, %v2681_v9 }
0x3a6c   : > { %v2687_v58 = vpop.permute.xlu1 %2686 }
0x3a6d   : > { %2689 = vst.msk [vmem:[#allocation2 + $0x10] sm:$0xff] %vm587_vm12, %v2687_v58 }
0x3a6e   : > { %v2992_v53 = vld [vmem:[#allocation2 + $0x20] sm:$0xff]  ;;  %v2830_v60 = vpop.permute.xlu0 %2829 }
0x3a6f   : > { %3000 = vst.msk [vmem:[%s268_s14 + $0x20] sm:$0xff] %vm325_vm2, %v2992_v53 }
0x3a70   : > { %2832 = vst.msk [vmem:[#allocation2 + $0x30] sm:$0xff] %vm420_vm0, %v2830_v60  ;;  %v2991_v12 = vld [vmem:[#allocation2 + $0x18] sm:$0xff]  ;;  %v2836_v62 = vpop.permute.xlu1 %2835 }
0x3a71   : > { %2999 = vst.msk [vmem:[%s268_s14 + $0x18] sm:$0xff] %vm325_vm2, %v2991_v12 }
0x3a72   : > { %2838 = vst.msk [vmem:[#allocation2 + $0x8] sm:$0xff] %vm587_vm12, %v2836_v62  ;;  %v2993_v2 = vld [vmem:[#allocation2 + $0x28] sm:$0xff] }
0x3a73   : > { %3001 = vst.msk [vmem:[%s268_s14 + $0x28] sm:$0xff] %vm325_vm2, %v2993_v2 }
0x3a74   : > { %v2990_v22 = vld [vmem:[#allocation2 + $0x10] sm:$0xff] }
0x3a75   : > { %2998 = vst.msk [vmem:[%s268_s14 + $0x10] sm:$0xff] %vm325_vm2, %v2990_v22 }
0x3a77   : > { %v2994_v0 = vld [vmem:[#allocation2 + $0x30] sm:$0xff] }
0x3a78   : > { %3002 = vst.msk [vmem:[%s268_s14 + $0x30] sm:$0xff] %vm325_vm2, %v2994_v0 }
0x3a79   : > { %v2989_v29 = vld [vmem:[#allocation2 + $0x8] sm:$0xff] }
0x3a7a   : > { %2997 = vst.msk [vmem:[%s268_s14 + $0x8] sm:$0xff] %vm325_vm2, %v2989_v29 }
0x3ac4   : > { %v2979_v4 = vpop.permute.xlu0 %2978 }
0x3ac5   : > { %2981 = vst.msk [vmem:[#allocation2 + $0x38] sm:$0xff] %vm420_vm0, %v2979_v4 }
0x3ac6   : > { %v2985_v6 = vpop.permute.xlu1 %2984 }
0x3ac7   : > { %2987 = vst.msk [vmem:[#allocation2] sm:$0xff] %vm587_vm12, %v2985_v6 }
0x3ac8   : > { %v2963_v10 = vpop.permute.xlu0 %2962 }
0x3ac9   : > { %2965 = vst.msk [vmem:[#allocation4] sm:$0xff] %vm420_vm0, %v2963_v10 }
0x3aca   : > { %v2973_v48 = vpop.permute.xlu1 %2972 }
0x3acb   : > { %2975 = vst.msk [vmem:[#allocation4 + $0x8] sm:$0xff] %vm420_vm0, %v2973_v48 }
0x3acc   : > { %v2995_v11 = vld [vmem:[#allocation2 + $0x38] sm:$0xff] }
0x3acd   : > { %3003 = vst.msk [vmem:[%s268_s14 + $0x38] sm:$0xff] %vm325_vm2, %v2995_v11 }
0x3ace   : > { %v2988_v14 = vld [vmem:[#allocation2] sm:$0xff] }
0x3acf   : > { %2996 = vst.msk [vmem:[%s268_s14] sm:$0xff] %vm325_vm2, %v2988_v14 }
0x3ad0 PF: > { %s16_s21 = sadd.s32 1, %s3557_s21  }
0x3ad1   : > { %p13_p4 = scmp.ge.s32.totalorder %s16_s21, 4  }
0x3ad3   :  { %15 = sbr.rel (!%p13_p4) target bundleno = 1 (0x1), region = 95 }

</bundles_post_ra>
